<compile_context>
chip_gen: v7x
topology: tpu7x:2x2x1
jax: 0.10.0
libtpu: 0.0.40
codegen_flags: <defaults>
</compile_context>

<pallas_src>
import jax
import jax.numpy as jnp
from jax import lax
from jax.experimental import pallas as pl
from jax.experimental.pallas import tpu as pltpu

KSIZE = 3


def cfgm_kernel(w_ref, b_ref, a_ref, x_ref, o_ref, pbuf_ref):
    # w_ref   : SMEM flat (num_conv*2 * C * 9,) f32, ordering (branch j, channel c, ky, kx)
    # b_ref   : SMEM flat (num_conv*2 * C,)     f32, conv biases, ordering (j, c)
    # a_ref   : SMEM flat (num_conv*2 * C,)     f32, per-channel PReLU slopes, ordering (j, c)
    # x_ref   : VMEM (Bt, C, H, W)  input block (also the residual source)
    # o_ref   : VMEM (Bt, C, H, W)
    # pbuf_ref: VMEM (Bt, H+2, W+2) f32 scratch — zero-padded working planes, reused per channel
    Bt, C, H, W = x_ref.shape
    n_branch = b_ref.shape[0] // C
    num_conv = n_branch // 2
    K2 = KSIZE * KSIZE

    # Zero the padded scratch once per grid step; only the interior is rewritten
    # below, so the 1-pixel zero border (== Conv2d padding=1) survives all
    # stages and channels.
    pbuf_ref[...] = jnp.zeros((Bt, H + 2, W + 2), jnp.float32)

    for c in range(C):
        x_planes = x_ref[:, c, :, :].astype(jnp.float32)           # (Bt, H, W)
        pbuf_ref[:, 1:H + 1, 1:W + 1] = x_planes
        for s in range(num_conv):
            # Load the 9 shifted taps once; both branches of this stage reuse
            # the same values (one load per tap, two mul/add chains).
            taps = [pbuf_ref[:, ky:ky + H, kx:kx + W]
                    for ky in range(KSIZE) for kx in range(KSIZE)]
            stage_out = None
            for j in (2 * s, 2 * s + 1):
                base = j * C + c
                acc = jnp.full((Bt, H, W), b_ref[base], jnp.float32)   # init = bias
                for t in range(K2):
                    acc = acc + taps[t] * w_ref[base * K2 + t]
                slope = a_ref[base]
                y = jnp.where(acc >= 0.0, acc, slope * acc)            # per-channel PReLU
                stage_out = y if stage_out is None else stage_out + y
            if s + 1 < num_conv:
                pbuf_ref[:, 1:H + 1, 1:W + 1] = stage_out              # feed next stage
            else:
                # last stage: fuse the outer residual and write out
                o_ref[:, c, :, :] = (stage_out + x_planes).astype(o_ref.dtype)


def _pick_batch_block(B, C, H, W, itemsize, target_bytes=1 << 19):
    """Batch elems per grid step: big enough to amortize the ~0.35us step
    overhead, but keep >=2 grid steps when B permits (v7x has 2 TensorCores)."""
    per_elem = C * H * W * itemsize
    bt = max(1, min(B, target_bytes // max(per_elem, 1)))
    while bt > 1 and pl.cdiv(B, bt) < 2:
        bt -= 1
    while B % bt != 0:          # keep every block full
        bt -= 1
    return bt


def cfgm_forward(x, dw_w, dw_b, pr_a):
    """CFGM_v1 forward.

    x    : (B, C, H, W)
    dw_w : (num_conv*2, C, 3, 3)  depthwise conv weights (PyTorch (C,1,3,3) squeezed)
    dw_b : (num_conv*2, C)        conv biases
    pr_a : (num_conv*2, C)        per-channel PReLU slopes
    """
    B, C, H, W = x.shape
    n_branch = dw_w.shape[0]
    if n_branch == 0:                       # C == 1 -> num_conv == 0 -> out = x + x
        return x + x

    bt = _pick_batch_block(B, C, H, W, x.dtype.itemsize)
    w_flat = dw_w.reshape(-1).astype(jnp.float32)
    b_flat = dw_b.reshape(-1).astype(jnp.float32)
    a_flat = pr_a.reshape(-1).astype(jnp.float32)

    return pl.pallas_call(
        cfgm_kernel,
        out_shape=jax.ShapeDtypeStruct((B, C, H, W), x.dtype),
        grid=(B // bt,),
        in_specs=[
            pl.BlockSpec(memory_space=pltpu.MemorySpace.SMEM),   # conv weights (flat)
            pl.BlockSpec(memory_space=pltpu.MemorySpace.SMEM),   # conv biases
            pl.BlockSpec(memory_space=pltpu.MemorySpace.SMEM),   # PReLU slopes
            pl.BlockSpec((bt, C, H, W), lambda i: (i, 0, 0, 0)),
        ],
        out_specs=pl.BlockSpec((bt, C, H, W), lambda i: (i, 0, 0, 0)),
        scratch_shapes=[pltpu.VMEM((bt, H + 2, W + 2), jnp.float32)],
        compiler_params=pltpu.CompilerParams(dimension_semantics=("parallel",)),
    )(w_flat, b_flat, a_flat, x)


# ----------------------------- pure-JAX reference -----------------------------

def _dwconv_prelu_ref(x, w, b, a):
    C = x.shape[1]
    y = lax.conv_general_dilated(
        x, w.reshape(C, 1, KSIZE, KSIZE), (1, 1), ((1, 1), (1, 1)),
        dimension_numbers=("NCHW", "OIHW", "NCHW"), feature_group_count=C)
    y = y + b[None, :, None, None]
    return jnp.where(y >= 0.0, y, a[None, :, None, None] * y)


def cfgm_reference(x, dw_w, dw_b, pr_a):
    num_conv = dw_w.shape[0] // 2
    out = x
    for i in range(num_conv):
        ya = _dwconv_prelu_ref(out, dw_w[2 * i], dw_b[2 * i], pr_a[2 * i])
        yb = _dwconv_prelu_ref(out, dw_w[2 * i + 1], dw_b[2 * i + 1], pr_a[2 * i + 1])
        out = ya + yb
    return out + x


if __name__ == "__main__":
    B, C, H, W = 2, 4, 16, 16

    # num_conv exactly as CFGM_v1.__init__ computes it (C=4 -> 2)
    num_conv = 0
    for i in range(10000):
        if 2 ** i >= C:
            num_conv = i
            break
    n_branch = 2 * num_conv

    key = jax.random.PRNGKey(0)
    kx, kw, kb, ka = jax.random.split(key, 4)
    x = jax.random.normal(kx, (B, C, H, W), dtype=jnp.float32)
    dw_w = 0.2 * jax.random.normal(kw, (n_branch, C, KSIZE, KSIZE), dtype=jnp.float32)
    dw_b = 0.1 * jax.random.normal(kb, (n_branch, C), dtype=jnp.float32)
    # PReLU init is 0.05 in the module; perturb so the per-channel path is exercised.
    pr_a = 0.05 + 0.02 * jax.random.normal(ka, (n_branch, C), dtype=jnp.float32)

    out = jax.block_until_ready(cfgm_forward(x, dw_w, dw_b, pr_a))
    ref = jax.block_until_ready(cfgm_reference(x, dw_w, dw_b, pr_a))

    assert out.shape == (B, C, H, W)
    assert jnp.allclose(out, ref, atol=1e-4, rtol=1e-4), "mismatch vs reference"

    print("KERNEL_OK")
</pallas_src>

<mosaic_0001>
module attributes {stable_mosaic.version = 11 : i64} {
  func.func @cfgm_kernel(%arg0: i32, %arg1: memref<144xf32, #tpu.memory_space<smem>>, %arg2: memref<16xf32, #tpu.memory_space<smem>>, %arg3: memref<16xf32, #tpu.memory_space<smem>>, %arg4: memref<1x4x16x16xf32, #tpu.memory_space<vmem>>, %arg5: memref<1x4x16x16xf32, #tpu.memory_space<vmem>>, %arg6: memref<1x18x18xf32, #tpu.memory_space<vmem>>) attributes {dimension_semantics = [#tpu.dimension_semantics<parallel>], iteration_bounds = array<i64: 2>, scalar_prefetch = 0 : i64, scratch_operands = 1 : i64, tpu.core_type = #tpu.core_type<tc>, window_params = [{transform_indices = @transform_0, window_bounds = array<i64: 144>}, {transform_indices = @transform_1, window_bounds = array<i64: 16>}, {transform_indices = @transform_2, window_bounds = array<i64: 16>}, {transform_indices = @transform_3, window_bounds = array<i64: 1, 4, 16, 16>}, {transform_indices = @transform_4, window_bounds = array<i64: 1, 4, 16, 16>}]} {
    %cst = arith.constant 0.000000e+00 : f32
    %0 = vector.broadcast %cst : f32 to vector<1x18x18xf32>
    %c0 = arith.constant 0 : index
    %c0_0 = arith.constant 0 : index
    %c0_1 = arith.constant 0 : index
    %1 = vector.load %arg6[%c0, %c0_0, %c0_1] : memref<1x18x18xf32, #tpu.memory_space<vmem>>, vector<1x18x18xf32>
    tpu.vector_store %arg6[%c0, %c0_0, %c0_1], %0 {strides = array<i32>} : memref<1x18x18xf32, #tpu.memory_space<vmem>>, vector<1x18x18xf32>,
    %c0_2 = arith.constant 0 : index
    %c0_3 = arith.constant 0 : index
    %c0_4 = arith.constant 0 : index
    %c0_5 = arith.constant 0 : index
    %2 = vector.load %arg4[%c0_2, %c0_3, %c0_4, %c0_5] : memref<1x4x16x16xf32, #tpu.memory_space<vmem>>, vector<1x1x16x16xf32>
    %3 = vector.shape_cast %2 : vector<1x1x16x16xf32> to vector<1x16x16xf32>
    %c0_6 = arith.constant 0 : index
    %c1 = arith.constant 1 : index
    %c1_7 = arith.constant 1 : index
    %4 = vector.load %arg6[%c0_6, %c1, %c1_7] : memref<1x18x18xf32, #tpu.memory_space<vmem>>, vector<1x16x16xf32>
    tpu.vector_store %arg6[%c0_6, %c1, %c1_7], %3 {strides = array<i32>} : memref<1x18x18xf32, #tpu.memory_space<vmem>>, vector<1x16x16xf32>,
    %c0_8 = arith.constant 0 : index
    %c0_9 = arith.constant 0 : index
    %c0_10 = arith.constant 0 : index
    %5 = vector.load %arg6[%c0_8, %c0_9, %c0_10] : memref<1x18x18xf32, #tpu.memory_space<vmem>>, vector<1x16x16xf32>
    %c0_11 = arith.constant 0 : index
    %c0_12 = arith.constant 0 : index
    %c1_13 = arith.constant 1 : index
    %6 = vector.load %arg6[%c0_11, %c0_12, %c1_13] : memref<1x18x18xf32, #tpu.memory_space<vmem>>, vector<1x16x16xf32>
    %c0_14 = arith.constant 0 : index
    %c0_15 = arith.constant 0 : index
    %c2 = arith.constant 2 : index
    %7 = vector.load %arg6[%c0_14, %c0_15, %c2] : memref<1x18x18xf32, #tpu.memory_space<vmem>>, vector<1x16x16xf32>
    %c0_16 = arith.constant 0 : index
    %c1_17 = arith.constant 1 : index
    %c0_18 = arith.constant 0 : index
    %8 = vector.load %arg6[%c0_16, %c1_17, %c0_18] : memref<1x18x18xf32, #tpu.memory_space<vmem>>, vector<1x16x16xf32>
    %c0_19 = arith.constant 0 : index
    %c1_20 = arith.constant 1 : index
    %c1_21 = arith.constant 1 : index
    %9 = vector.load %arg6[%c0_19, %c1_20, %c1_21] : memref<1x18x18xf32, #tpu.memory_space<vmem>>, vector<1x16x16xf32>
    %c0_22 = arith.constant 0 : index
    %c1_23 = arith.constant 1 : index
    %c2_24 = arith.constant 2 : index
    %10 = vector.load %arg6[%c0_22, %c1_23, %c2_24] : memref<1x18x18xf32, #tpu.memory_space<vmem>>, vector<1x16x16xf32>
    %c0_25 = arith.constant 0 : index
    %c2_26 = arith.constant 2 : index
    %c0_27 = arith.constant 0 : index
    %11 = vector.load %arg6[%c0_25, %c2_26, %c0_27] : memref<1x18x18xf32, #tpu.memory_space<vmem>>, vector<1x16x16xf32>
    %c0_28 = arith.constant 0 : index
    %c2_29 = arith.constant 2 : index
    %c1_30 = arith.constant 1 : index
    %12 = vector.load %arg6[%c0_28, %c2_29, %c1_30] : memref<1x18x18xf32, #tpu.memory_space<vmem>>, vector<1x16x16xf32>
    %c0_31 = arith.constant 0 : index
    %c2_32 = arith.constant 2 : index
    %c2_33 = arith.constant 2 : index
    %13 = vector.load %arg6[%c0_31, %c2_32, %c2_33] : memref<1x18x18xf32, #tpu.memory_space<vmem>>, vector<1x16x16xf32>
    %c0_34 = arith.constant 0 : index
    %14 = memref.load %arg2[%c0_34] : memref<16xf32, #tpu.memory_space<smem>>
    %15 = vector.broadcast %14 : f32 to vector<1x16x16xf32>
    %c0_35 = arith.constant 0 : index
    %16 = memref.load %arg1[%c0_35] : memref<144xf32, #tpu.memory_space<smem>>
    %17 = vector.broadcast %16 : f32 to vector<1x16x16xf32>
    %18 = arith.mulf %5, %17 : vector<1x16x16xf32>
    %19 = arith.addf %15, %18 : vector<1x16x16xf32>
    %c1_36 = arith.constant 1 : index
    %20 = memref.load %arg1[%c1_36] : memref<144xf32, #tpu.memory_space<smem>>
    %21 = vector.broadcast %20 : f32 to vector<1x16x16xf32>
    %22 = arith.mulf %6, %21 : vector<1x16x16xf32>
    %23 = arith.addf %19, %22 : vector<1x16x16xf32>
    %c2_37 = arith.constant 2 : index
    %24 = memref.load %arg1[%c2_37] : memref<144xf32, #tpu.memory_space<smem>>
    %25 = vector.broadcast %24 : f32 to vector<1x16x16xf32>
    %26 = arith.mulf %7, %25 : vector<1x16x16xf32>
    %27 = arith.addf %23, %26 : vector<1x16x16xf32>
    %c3 = arith.constant 3 : index
    %28 = memref.load %arg1[%c3] : memref<144xf32, #tpu.memory_space<smem>>
    %29 = vector.broadcast %28 : f32 to vector<1x16x16xf32>
    %30 = arith.mulf %8, %29 : vector<1x16x16xf32>
    %31 = arith.addf %27, %30 : vector<1x16x16xf32>
    %c4 = arith.constant 4 : index
    %32 = memref.load %arg1[%c4] : memref<144xf32, #tpu.memory_space<smem>>
    %33 = vector.broadcast %32 : f32 to vector<1x16x16xf32>
    %34 = arith.mulf %9, %33 : vector<1x16x16xf32>
    %35 = arith.addf %31, %34 : vector<1x16x16xf32>
    %c5 = arith.constant 5 : index
    %36 = memref.load %arg1[%c5] : memref<144xf32, #tpu.memory_space<smem>>
    %37 = vector.broadcast %36 : f32 to vector<1x16x16xf32>
    %38 = arith.mulf %10, %37 : vector<1x16x16xf32>
    %39 = arith.addf %35, %38 : vector<1x16x16xf32>
    %c6 = arith.constant 6 : index
    %40 = memref.load %arg1[%c6] : memref<144xf32, #tpu.memory_space<smem>>
    %41 = vector.broadcast %40 : f32 to vector<1x16x16xf32>
    %42 = arith.mulf %11, %41 : vector<1x16x16xf32>
    %43 = arith.addf %39, %42 : vector<1x16x16xf32>
    %c7 = arith.constant 7 : index
    %44 = memref.load %arg1[%c7] : memref<144xf32, #tpu.memory_space<smem>>
    %45 = vector.broadcast %44 : f32 to vector<1x16x16xf32>
    %46 = arith.mulf %12, %45 : vector<1x16x16xf32>
    %47 = arith.addf %43, %46 : vector<1x16x16xf32>
    %c8 = arith.constant 8 : index
    %48 = memref.load %arg1[%c8] : memref<144xf32, #tpu.memory_space<smem>>
    %49 = vector.broadcast %48 : f32 to vector<1x16x16xf32>
    %50 = arith.mulf %13, %49 : vector<1x16x16xf32>
    %51 = arith.addf %47, %50 : vector<1x16x16xf32>
    %c0_38 = arith.constant 0 : index
    %52 = memref.load %arg3[%c0_38] : memref<16xf32, #tpu.memory_space<smem>>
    %cst_39 = arith.constant 0.000000e+00 : f32
    %53 = vector.broadcast %cst_39 : f32 to vector<1x16x16xf32>
    %54 = arith.cmpf oge, %51, %53 : vector<1x16x16xf32>
    %55 = vector.broadcast %52 : f32 to vector<1x16x16xf32>
    %56 = arith.mulf %55, %51 : vector<1x16x16xf32>
    %57 = arith.select %54, %51, %56 : vector<1x16x16xi1>, vector<1x16x16xf32>
    %c4_40 = arith.constant 4 : index
    %58 = memref.load %arg2[%c4_40] : memref<16xf32, #tpu.memory_space<smem>>
    %59 = vector.broadcast %58 : f32 to vector<1x16x16xf32>
    %c36 = arith.constant 36 : index
    %60 = memref.load %arg1[%c36] : memref<144xf32, #tpu.memory_space<smem>>
    %61 = vector.broadcast %60 : f32 to vector<1x16x16xf32>
    %62 = arith.mulf %5, %61 : vector<1x16x16xf32>
    %63 = arith.addf %59, %62 : vector<1x16x16xf32>
    %c37 = arith.constant 37 : index
    %64 = memref.load %arg1[%c37] : memref<144xf32, #tpu.memory_space<smem>>
    %65 = vector.broadcast %64 : f32 to vector<1x16x16xf32>
    %66 = arith.mulf %6, %65 : vector<1x16x16xf32>
    %67 = arith.addf %63, %66 : vector<1x16x16xf32>
    %c38 = arith.constant 38 : index
    %68 = memref.load %arg1[%c38] : memref<144xf32, #tpu.memory_space<smem>>
    %69 = vector.broadcast %68 : f32 to vector<1x16x16xf32>
    %70 = arith.mulf %7, %69 : vector<1x16x16xf32>
    %71 = arith.addf %67, %70 : vector<1x16x16xf32>
    %c39 = arith.constant 39 : index
    %72 = memref.load %arg1[%c39] : memref<144xf32, #tpu.memory_space<smem>>
    %73 = vector.broadcast %72 : f32 to vector<1x16x16xf32>
    %74 = arith.mulf %8, %73 : vector<1x16x16xf32>
    %75 = arith.addf %71, %74 : vector<1x16x16xf32>
    %c40 = arith.constant 40 : index
    %76 = memref.load %arg1[%c40] : memref<144xf32, #tpu.memory_space<smem>>
    %77 = vector.broadcast %76 : f32 to vector<1x16x16xf32>
    %78 = arith.mulf %9, %77 : vector<1x16x16xf32>
    %79 = arith.addf %75, %78 : vector<1x16x16xf32>
    %c41 = arith.constant 41 : index
    %80 = memref.load %arg1[%c41] : memref<144xf32, #tpu.memory_space<smem>>
    %81 = vector.broadcast %80 : f32 to vector<1x16x16xf32>
    %82 = arith.mulf %10, %81 : vector<1x16x16xf32>
    %83 = arith.addf %79, %82 : vector<1x16x16xf32>
    %c42 = arith.constant 42 : index
    %84 = memref.load %arg1[%c42] : memref<144xf32, #tpu.memory_space<smem>>
    %85 = vector.broadcast %84 : f32 to vector<1x16x16xf32>
    %86 = arith.mulf %11, %85 : vector<1x16x16xf32>
    %87 = arith.addf %83, %86 : vector<1x16x16xf32>
    %c43 = arith.constant 43 : index
    %88 = memref.load %arg1[%c43] : memref<144xf32, #tpu.memory_space<smem>>
    %89 = vector.broadcast %88 : f32 to vector<1x16x16xf32>
    %90 = arith.mulf %12, %89 : vector<1x16x16xf32>
    %91 = arith.addf %87, %90 : vector<1x16x16xf32>
    %c44 = arith.constant 44 : index
    %92 = memref.load %arg1[%c44] : memref<144xf32, #tpu.memory_space<smem>>
    %93 = vector.broadcast %92 : f32 to vector<1x16x16xf32>
    %94 = arith.mulf %13, %93 : vector<1x16x16xf32>
    %95 = arith.addf %91, %94 : vector<1x16x16xf32>
    %c4_41 = arith.constant 4 : index
    %96 = memref.load %arg3[%c4_41] : memref<16xf32, #tpu.memory_space<smem>>
    %cst_42 = arith.constant 0.000000e+00 : f32
    %97 = vector.broadcast %cst_42 : f32 to vector<1x16x16xf32>
    %98 = arith.cmpf oge, %95, %97 : vector<1x16x16xf32>
    %99 = vector.broadcast %96 : f32 to vector<1x16x16xf32>
    %100 = arith.mulf %99, %95 : vector<1x16x16xf32>
    %101 = arith.select %98, %95, %100 : vector<1x16x16xi1>, vector<1x16x16xf32>
    %102 = arith.addf %57, %101 : vector<1x16x16xf32>
    %c0_43 = arith.constant 0 : index
    %c1_44 = arith.constant 1 : index
    %c1_45 = arith.constant 1 : index
    %103 = vector.load %arg6[%c0_43, %c1_44, %c1_45] : memref<1x18x18xf32, #tpu.memory_space<vmem>>, vector<1x16x16xf32>
    tpu.vector_store %arg6[%c0_43, %c1_44, %c1_45], %102 {strides = array<i32>} : memref<1x18x18xf32, #tpu.memory_space<vmem>>, vector<1x16x16xf32>,
    %c0_46 = arith.constant 0 : index
    %c0_47 = arith.constant 0 : index
    %c0_48 = arith.constant 0 : index
    %104 = vector.load %arg6[%c0_46, %c0_47, %c0_48] : memref<1x18x18xf32, #tpu.memory_space<vmem>>, vector<1x16x16xf32>
    %c0_49 = arith.constant 0 : index
    %c0_50 = arith.constant 0 : index
    %c1_51 = arith.constant 1 : index
    %105 = vector.load %arg6[%c0_49, %c0_50, %c1_51] : memref<1x18x18xf32, #tpu.memory_space<vmem>>, vector<1x16x16xf32>
    %c0_52 = arith.constant 0 : index
    %c0_53 = arith.constant 0 : index
    %c2_54 = arith.constant 2 : index
    %106 = vector.load %arg6[%c0_52, %c0_53, %c2_54] : memref<1x18x18xf32, #tpu.memory_space<vmem>>, vector<1x16x16xf32>
    %c0_55 = arith.constant 0 : index
    %c1_56 = arith.constant 1 : index
    %c0_57 = arith.constant 0 : index
    %107 = vector.load %arg6[%c0_55, %c1_56, %c0_57] : memref<1x18x18xf32, #tpu.memory_space<vmem>>, vector<1x16x16xf32>
    %c0_58 = arith.constant 0 : index
    %c1_59 = arith.constant 1 : index
    %c1_60 = arith.constant 1 : index
    %108 = vector.load %arg6[%c0_58, %c1_59, %c1_60] : memref<1x18x18xf32, #tpu.memory_space<vmem>>, vector<1x16x16xf32>
    %c0_61 = arith.constant 0 : index
    %c1_62 = arith.constant 1 : index
    %c2_63 = arith.constant 2 : index
    %109 = vector.load %arg6[%c0_61, %c1_62, %c2_63] : memref<1x18x18xf32, #tpu.memory_space<vmem>>, vector<1x16x16xf32>
    %c0_64 = arith.constant 0 : index
    %c2_65 = arith.constant 2 : index
    %c0_66 = arith.constant 0 : index
    %110 = vector.load %arg6[%c0_64, %c2_65, %c0_66] : memref<1x18x18xf32, #tpu.memory_space<vmem>>, vector<1x16x16xf32>
    %c0_67 = arith.constant 0 : index
    %c2_68 = arith.constant 2 : index
    %c1_69 = arith.constant 1 : index
    %111 = vector.load %arg6[%c0_67, %c2_68, %c1_69] : memref<1x18x18xf32, #tpu.memory_space<vmem>>, vector<1x16x16xf32>
    %c0_70 = arith.constant 0 : index
    %c2_71 = arith.constant 2 : index
    %c2_72 = arith.constant 2 : index
    %112 = vector.load %arg6[%c0_70, %c2_71, %c2_72] : memref<1x18x18xf32, #tpu.memory_space<vmem>>, vector<1x16x16xf32>
    %c8_73 = arith.constant 8 : index
    %113 = memref.load %arg2[%c8_73] : memref<16xf32, #tpu.memory_space<smem>>
    %114 = vector.broadcast %113 : f32 to vector<1x16x16xf32>
    %c72 = arith.constant 72 : index
    %115 = memref.load %arg1[%c72] : memref<144xf32, #tpu.memory_space<smem>>
    %116 = vector.broadcast %115 : f32 to vector<1x16x16xf32>
    %117 = arith.mulf %104, %116 : vector<1x16x16xf32>
    %118 = arith.addf %114, %117 : vector<1x16x16xf32>
    %c73 = arith.constant 73 : index
    %119 = memref.load %arg1[%c73] : memref<144xf32, #tpu.memory_space<smem>>
    %120 = vector.broadcast %119 : f32 to vector<1x16x16xf32>
    %121 = arith.mulf %105, %120 : vector<1x16x16xf32>
    %122 = arith.addf %118, %121 : vector<1x16x16xf32>
    %c74 = arith.constant 74 : index
    %123 = memref.load %arg1[%c74] : memref<144xf32, #tpu.memory_space<smem>>
    %124 = vector.broadcast %123 : f32 to vector<1x16x16xf32>
    %125 = arith.mulf %106, %124 : vector<1x16x16xf32>
    %126 = arith.addf %122, %125 : vector<1x16x16xf32>
    %c75 = arith.constant 75 : index
    %127 = memref.load %arg1[%c75] : memref<144xf32, #tpu.memory_space<smem>>
    %128 = vector.broadcast %127 : f32 to vector<1x16x16xf32>
    %129 = arith.mulf %107, %128 : vector<1x16x16xf32>
    %130 = arith.addf %126, %129 : vector<1x16x16xf32>
    %c76 = arith.constant 76 : index
    %131 = memref.load %arg1[%c76] : memref<144xf32, #tpu.memory_space<smem>>
    %132 = vector.broadcast %131 : f32 to vector<1x16x16xf32>
    %133 = arith.mulf %108, %132 : vector<1x16x16xf32>
    %134 = arith.addf %130, %133 : vector<1x16x16xf32>
    %c77 = arith.constant 77 : index
    %135 = memref.load %arg1[%c77] : memref<144xf32, #tpu.memory_space<smem>>
    %136 = vector.broadcast %135 : f32 to vector<1x16x16xf32>
    %137 = arith.mulf %109, %136 : vector<1x16x16xf32>
    %138 = arith.addf %134, %137 : vector<1x16x16xf32>
    %c78 = arith.constant 78 : index
    %139 = memref.load %arg1[%c78] : memref<144xf32, #tpu.memory_space<smem>>
    %140 = vector.broadcast %139 : f32 to vector<1x16x16xf32>
    %141 = arith.mulf %110, %140 : vector<1x16x16xf32>
    %142 = arith.addf %138, %141 : vector<1x16x16xf32>
    %c79 = arith.constant 79 : index
    %143 = memref.load %arg1[%c79] : memref<144xf32, #tpu.memory_space<smem>>
    %144 = vector.broadcast %143 : f32 to vector<1x16x16xf32>
    %145 = arith.mulf %111, %144 : vector<1x16x16xf32>
    %146 = arith.addf %142, %145 : vector<1x16x16xf32>
    %c80 = arith.constant 80 : index
    %147 = memref.load %arg1[%c80] : memref<144xf32, #tpu.memory_space<smem>>
    %148 = vector.broadcast %147 : f32 to vector<1x16x16xf32>
    %149 = arith.mulf %112, %148 : vector<1x16x16xf32>
    %150 = arith.addf %146, %149 : vector<1x16x16xf32>
    %c8_74 = arith.constant 8 : index
    %151 = memref.load %arg3[%c8_74] : memref<16xf32, #tpu.memory_space<smem>>
    %cst_75 = arith.constant 0.000000e+00 : f32
    %152 = vector.broadcast %cst_75 : f32 to vector<1x16x16xf32>
    %153 = arith.cmpf oge, %150, %152 : vector<1x16x16xf32>
    %154 = vector.broadcast %151 : f32 to vector<1x16x16xf32>
    %155 = arith.mulf %154, %150 : vector<1x16x16xf32>
    %156 = arith.select %153, %150, %155 : vector<1x16x16xi1>, vector<1x16x16xf32>
    %c12 = arith.constant 12 : index
    %157 = memref.load %arg2[%c12] : memref<16xf32, #tpu.memory_space<smem>>
    %158 = vector.broadcast %157 : f32 to vector<1x16x16xf32>
    %c108 = arith.constant 108 : index
    %159 = memref.load %arg1[%c108] : memref<144xf32, #tpu.memory_space<smem>>
    %160 = vector.broadcast %159 : f32 to vector<1x16x16xf32>
    %161 = arith.mulf %104, %160 : vector<1x16x16xf32>
    %162 = arith.addf %158, %161 : vector<1x16x16xf32>
    %c109 = arith.constant 109 : index
    %163 = memref.load %arg1[%c109] : memref<144xf32, #tpu.memory_space<smem>>
    %164 = vector.broadcast %163 : f32 to vector<1x16x16xf32>
    %165 = arith.mulf %105, %164 : vector<1x16x16xf32>
    %166 = arith.addf %162, %165 : vector<1x16x16xf32>
    %c110 = arith.constant 110 : index
    %167 = memref.load %arg1[%c110] : memref<144xf32, #tpu.memory_space<smem>>
    %168 = vector.broadcast %167 : f32 to vector<1x16x16xf32>
    %169 = arith.mulf %106, %168 : vector<1x16x16xf32>
    %170 = arith.addf %166, %169 : vector<1x16x16xf32>
    %c111 = arith.constant 111 : index
    %171 = memref.load %arg1[%c111] : memref<144xf32, #tpu.memory_space<smem>>
    %172 = vector.broadcast %171 : f32 to vector<1x16x16xf32>
    %173 = arith.mulf %107, %172 : vector<1x16x16xf32>
    %174 = arith.addf %170, %173 : vector<1x16x16xf32>
    %c112 = arith.constant 112 : index
    %175 = memref.load %arg1[%c112] : memref<144xf32, #tpu.memory_space<smem>>
    %176 = vector.broadcast %175 : f32 to vector<1x16x16xf32>
    %177 = arith.mulf %108, %176 : vector<1x16x16xf32>
    %178 = arith.addf %174, %177 : vector<1x16x16xf32>
    %c113 = arith.constant 113 : index
    %179 = memref.load %arg1[%c113] : memref<144xf32, #tpu.memory_space<smem>>
    %180 = vector.broadcast %179 : f32 to vector<1x16x16xf32>
    %181 = arith.mulf %109, %180 : vector<1x16x16xf32>
    %182 = arith.addf %178, %181 : vector<1x16x16xf32>
    %c114 = arith.constant 114 : index
    %183 = memref.load %arg1[%c114] : memref<144xf32, #tpu.memory_space<smem>>
    %184 = vector.broadcast %183 : f32 to vector<1x16x16xf32>
    %185 = arith.mulf %110, %184 : vector<1x16x16xf32>
    %186 = arith.addf %182, %185 : vector<1x16x16xf32>
    %c115 = arith.constant 115 : index
    %187 = memref.load %arg1[%c115] : memref<144xf32, #tpu.memory_space<smem>>
    %188 = vector.broadcast %187 : f32 to vector<1x16x16xf32>
    %189 = arith.mulf %111, %188 : vector<1x16x16xf32>
    %190 = arith.addf %186, %189 : vector<1x16x16xf32>
    %c116 = arith.constant 116 : index
    %191 = memref.load %arg1[%c116] : memref<144xf32, #tpu.memory_space<smem>>
    %192 = vector.broadcast %191 : f32 to vector<1x16x16xf32>
    %193 = arith.mulf %112, %192 : vector<1x16x16xf32>
    %194 = arith.addf %190, %193 : vector<1x16x16xf32>
    %c12_76 = arith.constant 12 : index
    %195 = memref.load %arg3[%c12_76] : memref<16xf32, #tpu.memory_space<smem>>
    %cst_77 = arith.constant 0.000000e+00 : f32
    %196 = vector.broadcast %cst_77 : f32 to vector<1x16x16xf32>
    %197 = arith.cmpf oge, %194, %196 : vector<1x16x16xf32>
    %198 = vector.broadcast %195 : f32 to vector<1x16x16xf32>
    %199 = arith.mulf %198, %194 : vector<1x16x16xf32>
    %200 = arith.select %197, %194, %199 : vector<1x16x16xi1>, vector<1x16x16xf32>
    %201 = arith.addf %156, %200 : vector<1x16x16xf32>
    %202 = arith.addf %201, %3 : vector<1x16x16xf32>
    %c0_78 = arith.constant 0 : index
    %c0_79 = arith.constant 0 : index
    %c0_80 = arith.constant 0 : index
    %c0_81 = arith.constant 0 : index
    %203 = vector.load %arg5[%c0_78, %c0_79, %c0_80, %c0_81] : memref<1x4x16x16xf32, #tpu.memory_space<vmem>>, vector<1x1x16x16xf32>
    %204 = vector.shape_cast %203 : vector<1x1x16x16xf32> to vector<1x16x16xf32>
    %205 = vector.shape_cast %202 : vector<1x16x16xf32> to vector<1x1x16x16xf32>
    tpu.vector_store %arg5[%c0_78, %c0_79, %c0_80, %c0_81], %205 {strides = array<i32>} : memref<1x4x16x16xf32, #tpu.memory_space<vmem>>, vector<1x1x16x16xf32>,
    %c0_82 = arith.constant 0 : index
    %c1_83 = arith.constant 1 : index
    %c0_84 = arith.constant 0 : index
    %c0_85 = arith.constant 0 : index
    %206 = vector.load %arg4[%c0_82, %c1_83, %c0_84, %c0_85] : memref<1x4x16x16xf32, #tpu.memory_space<vmem>>, vector<1x1x16x16xf32>
    %207 = vector.shape_cast %206 : vector<1x1x16x16xf32> to vector<1x16x16xf32>
    %c0_86 = arith.constant 0 : index
    %c1_87 = arith.constant 1 : index
    %c1_88 = arith.constant 1 : index
    %208 = vector.load %arg6[%c0_86, %c1_87, %c1_88] : memref<1x18x18xf32, #tpu.memory_space<vmem>>, vector<1x16x16xf32>
    tpu.vector_store %arg6[%c0_86, %c1_87, %c1_88], %207 {strides = array<i32>} : memref<1x18x18xf32, #tpu.memory_space<vmem>>, vector<1x16x16xf32>,
    %c0_89 = arith.constant 0 : index
    %c0_90 = arith.constant 0 : index
    %c0_91 = arith.constant 0 : index
    %209 = vector.load %arg6[%c0_89, %c0_90, %c0_91] : memref<1x18x18xf32, #tpu.memory_space<vmem>>, vector<1x16x16xf32>
    %c0_92 = arith.constant 0 : index
    %c0_93 = arith.constant 0 : index
    %c1_94 = arith.constant 1 : index
    %210 = vector.load %arg6[%c0_92, %c0_93, %c1_94] : memref<1x18x18xf32, #tpu.memory_space<vmem>>, vector<1x16x16xf32>
    %c0_95 = arith.constant 0 : index
    %c0_96 = arith.constant 0 : index
    %c2_97 = arith.constant 2 : index
    %211 = vector.load %arg6[%c0_95, %c0_96, %c2_97] : memref<1x18x18xf32, #tpu.memory_space<vmem>>, vector<1x16x16xf32>
    %c0_98 = arith.constant 0 : index
    %c1_99 = arith.constant 1 : index
    %c0_100 = arith.constant 0 : index
    %212 = vector.load %arg6[%c0_98, %c1_99, %c0_100] : memref<1x18x18xf32, #tpu.memory_space<vmem>>, vector<1x16x16xf32>
    %c0_101 = arith.constant 0 : index
    %c1_102 = arith.constant 1 : index
    %c1_103 = arith.constant 1 : index
    %213 = vector.load %arg6[%c0_101, %c1_102, %c1_103] : memref<1x18x18xf32, #tpu.memory_space<vmem>>, vector<1x16x16xf32>
    %c0_104 = arith.constant 0 : index
    %c1_105 = arith.constant 1 : index
    %c2_106 = arith.constant 2 : index
    %214 = vector.load %arg6[%c0_104, %c1_105, %c2_106] : memref<1x18x18xf32, #tpu.memory_space<vmem>>, vector<1x16x16xf32>
    %c0_107 = arith.constant 0 : index
    %c2_108 = arith.constant 2 : index
    %c0_109 = arith.constant 0 : index
    %215 = vector.load %arg6[%c0_107, %c2_108, %c0_109] : memref<1x18x18xf32, #tpu.memory_space<vmem>>, vector<1x16x16xf32>
    %c0_110 = arith.constant 0 : index
    %c2_111 = arith.constant 2 : index
    %c1_112 = arith.constant 1 : index
    %216 = vector.load %arg6[%c0_110, %c2_111, %c1_112] : memref<1x18x18xf32, #tpu.memory_space<vmem>>, vector<1x16x16xf32>
    %c0_113 = arith.constant 0 : index
    %c2_114 = arith.constant 2 : index
    %c2_115 = arith.constant 2 : index
    %217 = vector.load %arg6[%c0_113, %c2_114, %c2_115] : memref<1x18x18xf32, #tpu.memory_space<vmem>>, vector<1x16x16xf32>
    %c1_116 = arith.constant 1 : index
    %218 = memref.load %arg2[%c1_116] : memref<16xf32, #tpu.memory_space<smem>>
    %219 = vector.broadcast %218 : f32 to vector<1x16x16xf32>
    %c9 = arith.constant 9 : index
    %220 = memref.load %arg1[%c9] : memref<144xf32, #tpu.memory_space<smem>>
    %221 = vector.broadcast %220 : f32 to vector<1x16x16xf32>
    %222 = arith.mulf %209, %221 : vector<1x16x16xf32>
    %223 = arith.addf %219, %222 : vector<1x16x16xf32>
    %c10 = arith.constant 10 : index
    %224 = memref.load %arg1[%c10] : memref<144xf32, #tpu.memory_space<smem>>
    %225 = vector.broadcast %224 : f32 to vector<1x16x16xf32>
    %226 = arith.mulf %210, %225 : vector<1x16x16xf32>
    %227 = arith.addf %223, %226 : vector<1x16x16xf32>
    %c11 = arith.constant 11 : index
    %228 = memref.load %arg1[%c11] : memref<144xf32, #tpu.memory_space<smem>>
    %229 = vector.broadcast %228 : f32 to vector<1x16x16xf32>
    %230 = arith.mulf %211, %229 : vector<1x16x16xf32>
    %231 = arith.addf %227, %230 : vector<1x16x16xf32>
    %c12_117 = arith.constant 12 : index
    %232 = memref.load %arg1[%c12_117] : memref<144xf32, #tpu.memory_space<smem>>
    %233 = vector.broadcast %232 : f32 to vector<1x16x16xf32>
    %234 = arith.mulf %212, %233 : vector<1x16x16xf32>
    %235 = arith.addf %231, %234 : vector<1x16x16xf32>
    %c13 = arith.constant 13 : index
    %236 = memref.load %arg1[%c13] : memref<144xf32, #tpu.memory_space<smem>>
    %237 = vector.broadcast %236 : f32 to vector<1x16x16xf32>
    %238 = arith.mulf %213, %237 : vector<1x16x16xf32>
    %239 = arith.addf %235, %238 : vector<1x16x16xf32>
    %c14 = arith.constant 14 : index
    %240 = memref.load %arg1[%c14] : memref<144xf32, #tpu.memory_space<smem>>
    %241 = vector.broadcast %240 : f32 to vector<1x16x16xf32>
    %242 = arith.mulf %214, %241 : vector<1x16x16xf32>
    %243 = arith.addf %239, %242 : vector<1x16x16xf32>
    %c15 = arith.constant 15 : index
    %244 = memref.load %arg1[%c15] : memref<144xf32, #tpu.memory_space<smem>>
    %245 = vector.broadcast %244 : f32 to vector<1x16x16xf32>
    %246 = arith.mulf %215, %245 : vector<1x16x16xf32>
    %247 = arith.addf %243, %246 : vector<1x16x16xf32>
    %c16 = arith.constant 16 : index
    %248 = memref.load %arg1[%c16] : memref<144xf32, #tpu.memory_space<smem>>
    %249 = vector.broadcast %248 : f32 to vector<1x16x16xf32>
    %250 = arith.mulf %216, %249 : vector<1x16x16xf32>
    %251 = arith.addf %247, %250 : vector<1x16x16xf32>
    %c17 = arith.constant 17 : index
    %252 = memref.load %arg1[%c17] : memref<144xf32, #tpu.memory_space<smem>>
    %253 = vector.broadcast %252 : f32 to vector<1x16x16xf32>
    %254 = arith.mulf %217, %253 : vector<1x16x16xf32>
    %255 = arith.addf %251, %254 : vector<1x16x16xf32>
    %c1_118 = arith.constant 1 : index
    %256 = memref.load %arg3[%c1_118] : memref<16xf32, #tpu.memory_space<smem>>
    %cst_119 = arith.constant 0.000000e+00 : f32
    %257 = vector.broadcast %cst_119 : f32 to vector<1x16x16xf32>
    %258 = arith.cmpf oge, %255, %257 : vector<1x16x16xf32>
    %259 = vector.broadcast %256 : f32 to vector<1x16x16xf32>
    %260 = arith.mulf %259, %255 : vector<1x16x16xf32>
    %261 = arith.select %258, %255, %260 : vector<1x16x16xi1>, vector<1x16x16xf32>
    %c5_120 = arith.constant 5 : index
    %262 = memref.load %arg2[%c5_120] : memref<16xf32, #tpu.memory_space<smem>>
    %263 = vector.broadcast %262 : f32 to vector<1x16x16xf32>
    %c45 = arith.constant 45 : index
    %264 = memref.load %arg1[%c45] : memref<144xf32, #tpu.memory_space<smem>>
    %265 = vector.broadcast %264 : f32 to vector<1x16x16xf32>
    %266 = arith.mulf %209, %265 : vector<1x16x16xf32>
    %267 = arith.addf %263, %266 : vector<1x16x16xf32>
    %c46 = arith.constant 46 : index
    %268 = memref.load %arg1[%c46] : memref<144xf32, #tpu.memory_space<smem>>
    %269 = vector.broadcast %268 : f32 to vector<1x16x16xf32>
    %270 = arith.mulf %210, %269 : vector<1x16x16xf32>
    %271 = arith.addf %267, %270 : vector<1x16x16xf32>
    %c47 = arith.constant 47 : index
    %272 = memref.load %arg1[%c47] : memref<144xf32, #tpu.memory_space<smem>>
    %273 = vector.broadcast %272 : f32 to vector<1x16x16xf32>
    %274 = arith.mulf %211, %273 : vector<1x16x16xf32>
    %275 = arith.addf %271, %274 : vector<1x16x16xf32>
    %c48 = arith.constant 48 : index
    %276 = memref.load %arg1[%c48] : memref<144xf32, #tpu.memory_space<smem>>
    %277 = vector.broadcast %276 : f32 to vector<1x16x16xf32>
    %278 = arith.mulf %212, %277 : vector<1x16x16xf32>
    %279 = arith.addf %275, %278 : vector<1x16x16xf32>
    %c49 = arith.constant 49 : index
    %280 = memref.load %arg1[%c49] : memref<144xf32, #tpu.memory_space<smem>>
    %281 = vector.broadcast %280 : f32 to vector<1x16x16xf32>
    %282 = arith.mulf %213, %281 : vector<1x16x16xf32>
    %283 = arith.addf %279, %282 : vector<1x16x16xf32>
    %c50 = arith.constant 50 : index
    %284 = memref.load %arg1[%c50] : memref<144xf32, #tpu.memory_space<smem>>
    %285 = vector.broadcast %284 : f32 to vector<1x16x16xf32>
    %286 = arith.mulf %214, %285 : vector<1x16x16xf32>
    %287 = arith.addf %283, %286 : vector<1x16x16xf32>
    %c51 = arith.constant 51 : index
    %288 = memref.load %arg1[%c51] : memref<144xf32, #tpu.memory_space<smem>>
    %289 = vector.broadcast %288 : f32 to vector<1x16x16xf32>
    %290 = arith.mulf %215, %289 : vector<1x16x16xf32>
    %291 = arith.addf %287, %290 : vector<1x16x16xf32>
    %c52 = arith.constant 52 : index
    %292 = memref.load %arg1[%c52] : memref<144xf32, #tpu.memory_space<smem>>
    %293 = vector.broadcast %292 : f32 to vector<1x16x16xf32>
    %294 = arith.mulf %216, %293 : vector<1x16x16xf32>
    %295 = arith.addf %291, %294 : vector<1x16x16xf32>
    %c53 = arith.constant 53 : index
    %296 = memref.load %arg1[%c53] : memref<144xf32, #tpu.memory_space<smem>>
    %297 = vector.broadcast %296 : f32 to vector<1x16x16xf32>
    %298 = arith.mulf %217, %297 : vector<1x16x16xf32>
    %299 = arith.addf %295, %298 : vector<1x16x16xf32>
    %c5_121 = arith.constant 5 : index
    %300 = memref.load %arg3[%c5_121] : memref<16xf32, #tpu.memory_space<smem>>
    %cst_122 = arith.constant 0.000000e+00 : f32
    %301 = vector.broadcast %cst_122 : f32 to vector<1x16x16xf32>
    %302 = arith.cmpf oge, %299, %301 : vector<1x16x16xf32>
    %303 = vector.broadcast %300 : f32 to vector<1x16x16xf32>
    %304 = arith.mulf %303, %299 : vector<1x16x16xf32>
    %305 = arith.select %302, %299, %304 : vector<1x16x16xi1>, vector<1x16x16xf32>
    %306 = arith.addf %261, %305 : vector<1x16x16xf32>
    %c0_123 = arith.constant 0 : index
    %c1_124 = arith.constant 1 : index
    %c1_125 = arith.constant 1 : index
    %307 = vector.load %arg6[%c0_123, %c1_124, %c1_125] : memref<1x18x18xf32, #tpu.memory_space<vmem>>, vector<1x16x16xf32>
    tpu.vector_store %arg6[%c0_123, %c1_124, %c1_125], %306 {strides = array<i32>} : memref<1x18x18xf32, #tpu.memory_space<vmem>>, vector<1x16x16xf32>,
    %c0_126 = arith.constant 0 : index
    %c0_127 = arith.constant 0 : index
    %c0_128 = arith.constant 0 : index
    %308 = vector.load %arg6[%c0_126, %c0_127, %c0_128] : memref<1x18x18xf32, #tpu.memory_space<vmem>>, vector<1x16x16xf32>
    %c0_129 = arith.constant 0 : index
    %c0_130 = arith.constant 0 : index
    %c1_131 = arith.constant 1 : index
    %309 = vector.load %arg6[%c0_129, %c0_130, %c1_131] : memref<1x18x18xf32, #tpu.memory_space<vmem>>, vector<1x16x16xf32>
    %c0_132 = arith.constant 0 : index
    %c0_133 = arith.constant 0 : index
    %c2_134 = arith.constant 2 : index
    %310 = vector.load %arg6[%c0_132, %c0_133, %c2_134] : memref<1x18x18xf32, #tpu.memory_space<vmem>>, vector<1x16x16xf32>
    %c0_135 = arith.constant 0 : index
    %c1_136 = arith.constant 1 : index
    %c0_137 = arith.constant 0 : index
    %311 = vector.load %arg6[%c0_135, %c1_136, %c0_137] : memref<1x18x18xf32, #tpu.memory_space<vmem>>, vector<1x16x16xf32>
    %c0_138 = arith.constant 0 : index
    %c1_139 = arith.constant 1 : index
    %c1_140 = arith.constant 1 : index
    %312 = vector.load %arg6[%c0_138, %c1_139, %c1_140] : memref<1x18x18xf32, #tpu.memory_space<vmem>>, vector<1x16x16xf32>
    %c0_141 = arith.constant 0 : index
    %c1_142 = arith.constant 1 : index
    %c2_143 = arith.constant 2 : index
    %313 = vector.load %arg6[%c0_141, %c1_142, %c2_143] : memref<1x18x18xf32, #tpu.memory_space<vmem>>, vector<1x16x16xf32>
    %c0_144 = arith.constant 0 : index
    %c2_145 = arith.constant 2 : index
    %c0_146 = arith.constant 0 : index
    %314 = vector.load %arg6[%c0_144, %c2_145, %c0_146] : memref<1x18x18xf32, #tpu.memory_space<vmem>>, vector<1x16x16xf32>
    %c0_147 = arith.constant 0 : index
    %c2_148 = arith.constant 2 : index
    %c1_149 = arith.constant 1 : index
    %315 = vector.load %arg6[%c0_147, %c2_148, %c1_149] : memref<1x18x18xf32, #tpu.memory_space<vmem>>, vector<1x16x16xf32>
    %c0_150 = arith.constant 0 : index
    %c2_151 = arith.constant 2 : index
    %c2_152 = arith.constant 2 : index
    %316 = vector.load %arg6[%c0_150, %c2_151, %c2_152] : memref<1x18x18xf32, #tpu.memory_space<vmem>>, vector<1x16x16xf32>
    %c9_153 = arith.constant 9 : index
    %317 = memref.load %arg2[%c9_153] : memref<16xf32, #tpu.memory_space<smem>>
    %318 = vector.broadcast %317 : f32 to vector<1x16x16xf32>
    %c81 = arith.constant 81 : index
    %319 = memref.load %arg1[%c81] : memref<144xf32, #tpu.memory_space<smem>>
    %320 = vector.broadcast %319 : f32 to vector<1x16x16xf32>
    %321 = arith.mulf %308, %320 : vector<1x16x16xf32>
    %322 = arith.addf %318, %321 : vector<1x16x16xf32>
    %c82 = arith.constant 82 : index
    %323 = memref.load %arg1[%c82] : memref<144xf32, #tpu.memory_space<smem>>
    %324 = vector.broadcast %323 : f32 to vector<1x16x16xf32>
    %325 = arith.mulf %309, %324 : vector<1x16x16xf32>
    %326 = arith.addf %322, %325 : vector<1x16x16xf32>
    %c83 = arith.constant 83 : index
    %327 = memref.load %arg1[%c83] : memref<144xf32, #tpu.memory_space<smem>>
    %328 = vector.broadcast %327 : f32 to vector<1x16x16xf32>
    %329 = arith.mulf %310, %328 : vector<1x16x16xf32>
    %330 = arith.addf %326, %329 : vector<1x16x16xf32>
    %c84 = arith.constant 84 : index
    %331 = memref.load %arg1[%c84] : memref<144xf32, #tpu.memory_space<smem>>
    %332 = vector.broadcast %331 : f32 to vector<1x16x16xf32>
    %333 = arith.mulf %311, %332 : vector<1x16x16xf32>
    %334 = arith.addf %330, %333 : vector<1x16x16xf32>
    %c85 = arith.constant 85 : index
    %335 = memref.load %arg1[%c85] : memref<144xf32, #tpu.memory_space<smem>>
    %336 = vector.broadcast %335 : f32 to vector<1x16x16xf32>
    %337 = arith.mulf %312, %336 : vector<1x16x16xf32>
    %338 = arith.addf %334, %337 : vector<1x16x16xf32>
    %c86 = arith.constant 86 : index
    %339 = memref.load %arg1[%c86] : memref<144xf32, #tpu.memory_space<smem>>
    %340 = vector.broadcast %339 : f32 to vector<1x16x16xf32>
    %341 = arith.mulf %313, %340 : vector<1x16x16xf32>
    %342 = arith.addf %338, %341 : vector<1x16x16xf32>
    %c87 = arith.constant 87 : index
    %343 = memref.load %arg1[%c87] : memref<144xf32, #tpu.memory_space<smem>>
    %344 = vector.broadcast %343 : f32 to vector<1x16x16xf32>
    %345 = arith.mulf %314, %344 : vector<1x16x16xf32>
    %346 = arith.addf %342, %345 : vector<1x16x16xf32>
    %c88 = arith.constant 88 : index
    %347 = memref.load %arg1[%c88] : memref<144xf32, #tpu.memory_space<smem>>
    %348 = vector.broadcast %347 : f32 to vector<1x16x16xf32>
    %349 = arith.mulf %315, %348 : vector<1x16x16xf32>
    %350 = arith.addf %346, %349 : vector<1x16x16xf32>
    %c89 = arith.constant 89 : index
    %351 = memref.load %arg1[%c89] : memref<144xf32, #tpu.memory_space<smem>>
    %352 = vector.broadcast %351 : f32 to vector<1x16x16xf32>
    %353 = arith.mulf %316, %352 : vector<1x16x16xf32>
    %354 = arith.addf %350, %353 : vector<1x16x16xf32>
    %c9_154 = arith.constant 9 : index
    %355 = memref.load %arg3[%c9_154] : memref<16xf32, #tpu.memory_space<smem>>
    %cst_155 = arith.constant 0.000000e+00 : f32
    %356 = vector.broadcast %cst_155 : f32 to vector<1x16x16xf32>
    %357 = arith.cmpf oge, %354, %356 : vector<1x16x16xf32>
    %358 = vector.broadcast %355 : f32 to vector<1x16x16xf32>
    %359 = arith.mulf %358, %354 : vector<1x16x16xf32>
    %360 = arith.select %357, %354, %359 : vector<1x16x16xi1>, vector<1x16x16xf32>
    %c13_156 = arith.constant 13 : index
    %361 = memref.load %arg2[%c13_156] : memref<16xf32, #tpu.memory_space<smem>>
    %362 = vector.broadcast %361 : f32 to vector<1x16x16xf32>
    %c117 = arith.constant 117 : index
    %363 = memref.load %arg1[%c117] : memref<144xf32, #tpu.memory_space<smem>>
    %364 = vector.broadcast %363 : f32 to vector<1x16x16xf32>
    %365 = arith.mulf %308, %364 : vector<1x16x16xf32>
    %366 = arith.addf %362, %365 : vector<1x16x16xf32>
    %c118 = arith.constant 118 : index
    %367 = memref.load %arg1[%c118] : memref<144xf32, #tpu.memory_space<smem>>
    %368 = vector.broadcast %367 : f32 to vector<1x16x16xf32>
    %369 = arith.mulf %309, %368 : vector<1x16x16xf32>
    %370 = arith.addf %366, %369 : vector<1x16x16xf32>
    %c119 = arith.constant 119 : index
    %371 = memref.load %arg1[%c119] : memref<144xf32, #tpu.memory_space<smem>>
    %372 = vector.broadcast %371 : f32 to vector<1x16x16xf32>
    %373 = arith.mulf %310, %372 : vector<1x16x16xf32>
    %374 = arith.addf %370, %373 : vector<1x16x16xf32>
    %c120 = arith.constant 120 : index
    %375 = memref.load %arg1[%c120] : memref<144xf32, #tpu.memory_space<smem>>
    %376 = vector.broadcast %375 : f32 to vector<1x16x16xf32>
    %377 = arith.mulf %311, %376 : vector<1x16x16xf32>
    %378 = arith.addf %374, %377 : vector<1x16x16xf32>
    %c121 = arith.constant 121 : index
    %379 = memref.load %arg1[%c121] : memref<144xf32, #tpu.memory_space<smem>>
    %380 = vector.broadcast %379 : f32 to vector<1x16x16xf32>
    %381 = arith.mulf %312, %380 : vector<1x16x16xf32>
    %382 = arith.addf %378, %381 : vector<1x16x16xf32>
    %c122 = arith.constant 122 : index
    %383 = memref.load %arg1[%c122] : memref<144xf32, #tpu.memory_space<smem>>
    %384 = vector.broadcast %383 : f32 to vector<1x16x16xf32>
    %385 = arith.mulf %313, %384 : vector<1x16x16xf32>
    %386 = arith.addf %382, %385 : vector<1x16x16xf32>
    %c123 = arith.constant 123 : index
    %387 = memref.load %arg1[%c123] : memref<144xf32, #tpu.memory_space<smem>>
    %388 = vector.broadcast %387 : f32 to vector<1x16x16xf32>
    %389 = arith.mulf %314, %388 : vector<1x16x16xf32>
    %390 = arith.addf %386, %389 : vector<1x16x16xf32>
    %c124 = arith.constant 124 : index
    %391 = memref.load %arg1[%c124] : memref<144xf32, #tpu.memory_space<smem>>
    %392 = vector.broadcast %391 : f32 to vector<1x16x16xf32>
    %393 = arith.mulf %315, %392 : vector<1x16x16xf32>
    %394 = arith.addf %390, %393 : vector<1x16x16xf32>
    %c125 = arith.constant 125 : index
    %395 = memref.load %arg1[%c125] : memref<144xf32, #tpu.memory_space<smem>>
    %396 = vector.broadcast %395 : f32 to vector<1x16x16xf32>
    %397 = arith.mulf %316, %396 : vector<1x16x16xf32>
    %398 = arith.addf %394, %397 : vector<1x16x16xf32>
    %c13_157 = arith.constant 13 : index
    %399 = memref.load %arg3[%c13_157] : memref<16xf32, #tpu.memory_space<smem>>
    %cst_158 = arith.constant 0.000000e+00 : f32
    %400 = vector.broadcast %cst_158 : f32 to vector<1x16x16xf32>
    %401 = arith.cmpf oge, %398, %400 : vector<1x16x16xf32>
    %402 = vector.broadcast %399 : f32 to vector<1x16x16xf32>
    %403 = arith.mulf %402, %398 : vector<1x16x16xf32>
    %404 = arith.select %401, %398, %403 : vector<1x16x16xi1>, vector<1x16x16xf32>
    %405 = arith.addf %360, %404 : vector<1x16x16xf32>
    %406 = arith.addf %405, %207 : vector<1x16x16xf32>
    %c0_159 = arith.constant 0 : index
    %c1_160 = arith.constant 1 : index
    %c0_161 = arith.constant 0 : index
    %c0_162 = arith.constant 0 : index
    %407 = vector.load %arg5[%c0_159, %c1_160, %c0_161, %c0_162] : memref<1x4x16x16xf32, #tpu.memory_space<vmem>>, vector<1x1x16x16xf32>
    %408 = vector.shape_cast %407 : vector<1x1x16x16xf32> to vector<1x16x16xf32>
    %409 = vector.shape_cast %406 : vector<1x16x16xf32> to vector<1x1x16x16xf32>
    tpu.vector_store %arg5[%c0_159, %c1_160, %c0_161, %c0_162], %409 {strides = array<i32>} : memref<1x4x16x16xf32, #tpu.memory_space<vmem>>, vector<1x1x16x16xf32>,
    %c0_163 = arith.constant 0 : index
    %c2_164 = arith.constant 2 : index
    %c0_165 = arith.constant 0 : index
    %c0_166 = arith.constant 0 : index
    %410 = vector.load %arg4[%c0_163, %c2_164, %c0_165, %c0_166] : memref<1x4x16x16xf32, #tpu.memory_space<vmem>>, vector<1x1x16x16xf32>
    %411 = vector.shape_cast %410 : vector<1x1x16x16xf32> to vector<1x16x16xf32>
    %c0_167 = arith.constant 0 : index
    %c1_168 = arith.constant 1 : index
    %c1_169 = arith.constant 1 : index
    %412 = vector.load %arg6[%c0_167, %c1_168, %c1_169] : memref<1x18x18xf32, #tpu.memory_space<vmem>>, vector<1x16x16xf32>
    tpu.vector_store %arg6[%c0_167, %c1_168, %c1_169], %411 {strides = array<i32>} : memref<1x18x18xf32, #tpu.memory_space<vmem>>, vector<1x16x16xf32>,
    %c0_170 = arith.constant 0 : index
    %c0_171 = arith.constant 0 : index
    %c0_172 = arith.constant 0 : index
    %413 = vector.load %arg6[%c0_170, %c0_171, %c0_172] : memref<1x18x18xf32, #tpu.memory_space<vmem>>, vector<1x16x16xf32>
    %c0_173 = arith.constant 0 : index
    %c0_174 = arith.constant 0 : index
    %c1_175 = arith.constant 1 : index
    %414 = vector.load %arg6[%c0_173, %c0_174, %c1_175] : memref<1x18x18xf32, #tpu.memory_space<vmem>>, vector<1x16x16xf32>
    %c0_176 = arith.constant 0 : index
    %c0_177 = arith.constant 0 : index
    %c2_178 = arith.constant 2 : index
    %415 = vector.load %arg6[%c0_176, %c0_177, %c2_178] : memref<1x18x18xf32, #tpu.memory_space<vmem>>, vector<1x16x16xf32>
    %c0_179 = arith.constant 0 : index
    %c1_180 = arith.constant 1 : index
    %c0_181 = arith.constant 0 : index
    %416 = vector.load %arg6[%c0_179, %c1_180, %c0_181] : memref<1x18x18xf32, #tpu.memory_space<vmem>>, vector<1x16x16xf32>
    %c0_182 = arith.constant 0 : index
    %c1_183 = arith.constant 1 : index
    %c1_184 = arith.constant 1 : index
    %417 = vector.load %arg6[%c0_182, %c1_183, %c1_184] : memref<1x18x18xf32, #tpu.memory_space<vmem>>, vector<1x16x16xf32>
    %c0_185 = arith.constant 0 : index
    %c1_186 = arith.constant 1 : index
    %c2_187 = arith.constant 2 : index
    %418 = vector.load %arg6[%c0_185, %c1_186, %c2_187] : memref<1x18x18xf32, #tpu.memory_space<vmem>>, vector<1x16x16xf32>
    %c0_188 = arith.constant 0 : index
    %c2_189 = arith.constant 2 : index
    %c0_190 = arith.constant 0 : index
    %419 = vector.load %arg6[%c0_188, %c2_189, %c0_190] : memref<1x18x18xf32, #tpu.memory_space<vmem>>, vector<1x16x16xf32>
    %c0_191 = arith.constant 0 : index
    %c2_192 = arith.constant 2 : index
    %c1_193 = arith.constant 1 : index
    %420 = vector.load %arg6[%c0_191, %c2_192, %c1_193] : memref<1x18x18xf32, #tpu.memory_space<vmem>>, vector<1x16x16xf32>
    %c0_194 = arith.constant 0 : index
    %c2_195 = arith.constant 2 : index
    %c2_196 = arith.constant 2 : index
    %421 = vector.load %arg6[%c0_194, %c2_195, %c2_196] : memref<1x18x18xf32, #tpu.memory_space<vmem>>, vector<1x16x16xf32>
    %c2_197 = arith.constant 2 : index
    %422 = memref.load %arg2[%c2_197] : memref<16xf32, #tpu.memory_space<smem>>
    %423 = vector.broadcast %422 : f32 to vector<1x16x16xf32>
    %c18 = arith.constant 18 : index
    %424 = memref.load %arg1[%c18] : memref<144xf32, #tpu.memory_space<smem>>
    %425 = vector.broadcast %424 : f32 to vector<1x16x16xf32>
    %426 = arith.mulf %413, %425 : vector<1x16x16xf32>
    %427 = arith.addf %423, %426 : vector<1x16x16xf32>
    %c19 = arith.constant 19 : index
    %428 = memref.load %arg1[%c19] : memref<144xf32, #tpu.memory_space<smem>>
    %429 = vector.broadcast %428 : f32 to vector<1x16x16xf32>
    %430 = arith.mulf %414, %429 : vector<1x16x16xf32>
    %431 = arith.addf %427, %430 : vector<1x16x16xf32>
    %c20 = arith.constant 20 : index
    %432 = memref.load %arg1[%c20] : memref<144xf32, #tpu.memory_space<smem>>
    %433 = vector.broadcast %432 : f32 to vector<1x16x16xf32>
    %434 = arith.mulf %415, %433 : vector<1x16x16xf32>
    %435 = arith.addf %431, %434 : vector<1x16x16xf32>
    %c21 = arith.constant 21 : index
    %436 = memref.load %arg1[%c21] : memref<144xf32, #tpu.memory_space<smem>>
    %437 = vector.broadcast %436 : f32 to vector<1x16x16xf32>
    %438 = arith.mulf %416, %437 : vector<1x16x16xf32>
    %439 = arith.addf %435, %438 : vector<1x16x16xf32>
    %c22 = arith.constant 22 : index
    %440 = memref.load %arg1[%c22] : memref<144xf32, #tpu.memory_space<smem>>
    %441 = vector.broadcast %440 : f32 to vector<1x16x16xf32>
    %442 = arith.mulf %417, %441 : vector<1x16x16xf32>
    %443 = arith.addf %439, %442 : vector<1x16x16xf32>
    %c23 = arith.constant 23 : index
    %444 = memref.load %arg1[%c23] : memref<144xf32, #tpu.memory_space<smem>>
    %445 = vector.broadcast %444 : f32 to vector<1x16x16xf32>
    %446 = arith.mulf %418, %445 : vector<1x16x16xf32>
    %447 = arith.addf %443, %446 : vector<1x16x16xf32>
    %c24 = arith.constant 24 : index
    %448 = memref.load %arg1[%c24] : memref<144xf32, #tpu.memory_space<smem>>
    %449 = vector.broadcast %448 : f32 to vector<1x16x16xf32>
    %450 = arith.mulf %419, %449 : vector<1x16x16xf32>
    %451 = arith.addf %447, %450 : vector<1x16x16xf32>
    %c25 = arith.constant 25 : index
    %452 = memref.load %arg1[%c25] : memref<144xf32, #tpu.memory_space<smem>>
    %453 = vector.broadcast %452 : f32 to vector<1x16x16xf32>
    %454 = arith.mulf %420, %453 : vector<1x16x16xf32>
    %455 = arith.addf %451, %454 : vector<1x16x16xf32>
    %c26 = arith.constant 26 : index
    %456 = memref.load %arg1[%c26] : memref<144xf32, #tpu.memory_space<smem>>
    %457 = vector.broadcast %456 : f32 to vector<1x16x16xf32>
    %458 = arith.mulf %421, %457 : vector<1x16x16xf32>
    %459 = arith.addf %455, %458 : vector<1x16x16xf32>
    %c2_198 = arith.constant 2 : index
    %460 = memref.load %arg3[%c2_198] : memref<16xf32, #tpu.memory_space<smem>>
    %cst_199 = arith.constant 0.000000e+00 : f32
    %461 = vector.broadcast %cst_199 : f32 to vector<1x16x16xf32>
    %462 = arith.cmpf oge, %459, %461 : vector<1x16x16xf32>
    %463 = vector.broadcast %460 : f32 to vector<1x16x16xf32>
    %464 = arith.mulf %463, %459 : vector<1x16x16xf32>
    %465 = arith.select %462, %459, %464 : vector<1x16x16xi1>, vector<1x16x16xf32>
    %c6_200 = arith.constant 6 : index
    %466 = memref.load %arg2[%c6_200] : memref<16xf32, #tpu.memory_space<smem>>
    %467 = vector.broadcast %466 : f32 to vector<1x16x16xf32>
    %c54 = arith.constant 54 : index
    %468 = memref.load %arg1[%c54] : memref<144xf32, #tpu.memory_space<smem>>
    %469 = vector.broadcast %468 : f32 to vector<1x16x16xf32>
    %470 = arith.mulf %413, %469 : vector<1x16x16xf32>
    %471 = arith.addf %467, %470 : vector<1x16x16xf32>
    %c55 = arith.constant 55 : index
    %472 = memref.load %arg1[%c55] : memref<144xf32, #tpu.memory_space<smem>>
    %473 = vector.broadcast %472 : f32 to vector<1x16x16xf32>
    %474 = arith.mulf %414, %473 : vector<1x16x16xf32>
    %475 = arith.addf %471, %474 : vector<1x16x16xf32>
    %c56 = arith.constant 56 : index
    %476 = memref.load %arg1[%c56] : memref<144xf32, #tpu.memory_space<smem>>
    %477 = vector.broadcast %476 : f32 to vector<1x16x16xf32>
    %478 = arith.mulf %415, %477 : vector<1x16x16xf32>
    %479 = arith.addf %475, %478 : vector<1x16x16xf32>
    %c57 = arith.constant 57 : index
    %480 = memref.load %arg1[%c57] : memref<144xf32, #tpu.memory_space<smem>>
    %481 = vector.broadcast %480 : f32 to vector<1x16x16xf32>
    %482 = arith.mulf %416, %481 : vector<1x16x16xf32>
    %483 = arith.addf %479, %482 : vector<1x16x16xf32>
    %c58 = arith.constant 58 : index
    %484 = memref.load %arg1[%c58] : memref<144xf32, #tpu.memory_space<smem>>
    %485 = vector.broadcast %484 : f32 to vector<1x16x16xf32>
    %486 = arith.mulf %417, %485 : vector<1x16x16xf32>
    %487 = arith.addf %483, %486 : vector<1x16x16xf32>
    %c59 = arith.constant 59 : index
    %488 = memref.load %arg1[%c59] : memref<144xf32, #tpu.memory_space<smem>>
    %489 = vector.broadcast %488 : f32 to vector<1x16x16xf32>
    %490 = arith.mulf %418, %489 : vector<1x16x16xf32>
    %491 = arith.addf %487, %490 : vector<1x16x16xf32>
    %c60 = arith.constant 60 : index
    %492 = memref.load %arg1[%c60] : memref<144xf32, #tpu.memory_space<smem>>
    %493 = vector.broadcast %492 : f32 to vector<1x16x16xf32>
    %494 = arith.mulf %419, %493 : vector<1x16x16xf32>
    %495 = arith.addf %491, %494 : vector<1x16x16xf32>
    %c61 = arith.constant 61 : index
    %496 = memref.load %arg1[%c61] : memref<144xf32, #tpu.memory_space<smem>>
    %497 = vector.broadcast %496 : f32 to vector<1x16x16xf32>
    %498 = arith.mulf %420, %497 : vector<1x16x16xf32>
    %499 = arith.addf %495, %498 : vector<1x16x16xf32>
    %c62 = arith.constant 62 : index
    %500 = memref.load %arg1[%c62] : memref<144xf32, #tpu.memory_space<smem>>
    %501 = vector.broadcast %500 : f32 to vector<1x16x16xf32>
    %502 = arith.mulf %421, %501 : vector<1x16x16xf32>
    %503 = arith.addf %499, %502 : vector<1x16x16xf32>
    %c6_201 = arith.constant 6 : index
    %504 = memref.load %arg3[%c6_201] : memref<16xf32, #tpu.memory_space<smem>>
    %cst_202 = arith.constant 0.000000e+00 : f32
    %505 = vector.broadcast %cst_202 : f32 to vector<1x16x16xf32>
    %506 = arith.cmpf oge, %503, %505 : vector<1x16x16xf32>
    %507 = vector.broadcast %504 : f32 to vector<1x16x16xf32>
    %508 = arith.mulf %507, %503 : vector<1x16x16xf32>
    %509 = arith.select %506, %503, %508 : vector<1x16x16xi1>, vector<1x16x16xf32>
    %510 = arith.addf %465, %509 : vector<1x16x16xf32>
    %c0_203 = arith.constant 0 : index
    %c1_204 = arith.constant 1 : index
    %c1_205 = arith.constant 1 : index
    %511 = vector.load %arg6[%c0_203, %c1_204, %c1_205] : memref<1x18x18xf32, #tpu.memory_space<vmem>>, vector<1x16x16xf32>
    tpu.vector_store %arg6[%c0_203, %c1_204, %c1_205], %510 {strides = array<i32>} : memref<1x18x18xf32, #tpu.memory_space<vmem>>, vector<1x16x16xf32>,
    %c0_206 = arith.constant 0 : index
    %c0_207 = arith.constant 0 : index
    %c0_208 = arith.constant 0 : index
    %512 = vector.load %arg6[%c0_206, %c0_207, %c0_208] : memref<1x18x18xf32, #tpu.memory_space<vmem>>, vector<1x16x16xf32>
    %c0_209 = arith.constant 0 : index
    %c0_210 = arith.constant 0 : index
    %c1_211 = arith.constant 1 : index
    %513 = vector.load %arg6[%c0_209, %c0_210, %c1_211] : memref<1x18x18xf32, #tpu.memory_space<vmem>>, vector<1x16x16xf32>
    %c0_212 = arith.constant 0 : index
    %c0_213 = arith.constant 0 : index
    %c2_214 = arith.constant 2 : index
    %514 = vector.load %arg6[%c0_212, %c0_213, %c2_214] : memref<1x18x18xf32, #tpu.memory_space<vmem>>, vector<1x16x16xf32>
    %c0_215 = arith.constant 0 : index
    %c1_216 = arith.constant 1 : index
    %c0_217 = arith.constant 0 : index
    %515 = vector.load %arg6[%c0_215, %c1_216, %c0_217] : memref<1x18x18xf32, #tpu.memory_space<vmem>>, vector<1x16x16xf32>
    %c0_218 = arith.constant 0 : index
    %c1_219 = arith.constant 1 : index
    %c1_220 = arith.constant 1 : index
    %516 = vector.load %arg6[%c0_218, %c1_219, %c1_220] : memref<1x18x18xf32, #tpu.memory_space<vmem>>, vector<1x16x16xf32>
    %c0_221 = arith.constant 0 : index
    %c1_222 = arith.constant 1 : index
    %c2_223 = arith.constant 2 : index
    %517 = vector.load %arg6[%c0_221, %c1_222, %c2_223] : memref<1x18x18xf32, #tpu.memory_space<vmem>>, vector<1x16x16xf32>
    %c0_224 = arith.constant 0 : index
    %c2_225 = arith.constant 2 : index
    %c0_226 = arith.constant 0 : index
    %518 = vector.load %arg6[%c0_224, %c2_225, %c0_226] : memref<1x18x18xf32, #tpu.memory_space<vmem>>, vector<1x16x16xf32>
    %c0_227 = arith.constant 0 : index
    %c2_228 = arith.constant 2 : index
    %c1_229 = arith.constant 1 : index
    %519 = vector.load %arg6[%c0_227, %c2_228, %c1_229] : memref<1x18x18xf32, #tpu.memory_space<vmem>>, vector<1x16x16xf32>
    %c0_230 = arith.constant 0 : index
    %c2_231 = arith.constant 2 : index
    %c2_232 = arith.constant 2 : index
    %520 = vector.load %arg6[%c0_230, %c2_231, %c2_232] : memref<1x18x18xf32, #tpu.memory_space<vmem>>, vector<1x16x16xf32>
    %c10_233 = arith.constant 10 : index
    %521 = memref.load %arg2[%c10_233] : memref<16xf32, #tpu.memory_space<smem>>
    %522 = vector.broadcast %521 : f32 to vector<1x16x16xf32>
    %c90 = arith.constant 90 : index
    %523 = memref.load %arg1[%c90] : memref<144xf32, #tpu.memory_space<smem>>
    %524 = vector.broadcast %523 : f32 to vector<1x16x16xf32>
    %525 = arith.mulf %512, %524 : vector<1x16x16xf32>
    %526 = arith.addf %522, %525 : vector<1x16x16xf32>
    %c91 = arith.constant 91 : index
    %527 = memref.load %arg1[%c91] : memref<144xf32, #tpu.memory_space<smem>>
    %528 = vector.broadcast %527 : f32 to vector<1x16x16xf32>
    %529 = arith.mulf %513, %528 : vector<1x16x16xf32>
    %530 = arith.addf %526, %529 : vector<1x16x16xf32>
    %c92 = arith.constant 92 : index
    %531 = memref.load %arg1[%c92] : memref<144xf32, #tpu.memory_space<smem>>
    %532 = vector.broadcast %531 : f32 to vector<1x16x16xf32>
    %533 = arith.mulf %514, %532 : vector<1x16x16xf32>
    %534 = arith.addf %530, %533 : vector<1x16x16xf32>
    %c93 = arith.constant 93 : index
    %535 = memref.load %arg1[%c93] : memref<144xf32, #tpu.memory_space<smem>>
    %536 = vector.broadcast %535 : f32 to vector<1x16x16xf32>
    %537 = arith.mulf %515, %536 : vector<1x16x16xf32>
    %538 = arith.addf %534, %537 : vector<1x16x16xf32>
    %c94 = arith.constant 94 : index
    %539 = memref.load %arg1[%c94] : memref<144xf32, #tpu.memory_space<smem>>
    %540 = vector.broadcast %539 : f32 to vector<1x16x16xf32>
    %541 = arith.mulf %516, %540 : vector<1x16x16xf32>
    %542 = arith.addf %538, %541 : vector<1x16x16xf32>
    %c95 = arith.constant 95 : index
    %543 = memref.load %arg1[%c95] : memref<144xf32, #tpu.memory_space<smem>>
    %544 = vector.broadcast %543 : f32 to vector<1x16x16xf32>
    %545 = arith.mulf %517, %544 : vector<1x16x16xf32>
    %546 = arith.addf %542, %545 : vector<1x16x16xf32>
    %c96 = arith.constant 96 : index
    %547 = memref.load %arg1[%c96] : memref<144xf32, #tpu.memory_space<smem>>
    %548 = vector.broadcast %547 : f32 to vector<1x16x16xf32>
    %549 = arith.mulf %518, %548 : vector<1x16x16xf32>
    %550 = arith.addf %546, %549 : vector<1x16x16xf32>
    %c97 = arith.constant 97 : index
    %551 = memref.load %arg1[%c97] : memref<144xf32, #tpu.memory_space<smem>>
    %552 = vector.broadcast %551 : f32 to vector<1x16x16xf32>
    %553 = arith.mulf %519, %552 : vector<1x16x16xf32>
    %554 = arith.addf %550, %553 : vector<1x16x16xf32>
    %c98 = arith.constant 98 : index
    %555 = memref.load %arg1[%c98] : memref<144xf32, #tpu.memory_space<smem>>
    %556 = vector.broadcast %555 : f32 to vector<1x16x16xf32>
    %557 = arith.mulf %520, %556 : vector<1x16x16xf32>
    %558 = arith.addf %554, %557 : vector<1x16x16xf32>
    %c10_234 = arith.constant 10 : index
    %559 = memref.load %arg3[%c10_234] : memref<16xf32, #tpu.memory_space<smem>>
    %cst_235 = arith.constant 0.000000e+00 : f32
    %560 = vector.broadcast %cst_235 : f32 to vector<1x16x16xf32>
    %561 = arith.cmpf oge, %558, %560 : vector<1x16x16xf32>
    %562 = vector.broadcast %559 : f32 to vector<1x16x16xf32>
    %563 = arith.mulf %562, %558 : vector<1x16x16xf32>
    %564 = arith.select %561, %558, %563 : vector<1x16x16xi1>, vector<1x16x16xf32>
    %c14_236 = arith.constant 14 : index
    %565 = memref.load %arg2[%c14_236] : memref<16xf32, #tpu.memory_space<smem>>
    %566 = vector.broadcast %565 : f32 to vector<1x16x16xf32>
    %c126 = arith.constant 126 : index
    %567 = memref.load %arg1[%c126] : memref<144xf32, #tpu.memory_space<smem>>
    %568 = vector.broadcast %567 : f32 to vector<1x16x16xf32>
    %569 = arith.mulf %512, %568 : vector<1x16x16xf32>
    %570 = arith.addf %566, %569 : vector<1x16x16xf32>
    %c127 = arith.constant 127 : index
    %571 = memref.load %arg1[%c127] : memref<144xf32, #tpu.memory_space<smem>>
    %572 = vector.broadcast %571 : f32 to vector<1x16x16xf32>
    %573 = arith.mulf %513, %572 : vector<1x16x16xf32>
    %574 = arith.addf %570, %573 : vector<1x16x16xf32>
    %c128 = arith.constant 128 : index
    %575 = memref.load %arg1[%c128] : memref<144xf32, #tpu.memory_space<smem>>
    %576 = vector.broadcast %575 : f32 to vector<1x16x16xf32>
    %577 = arith.mulf %514, %576 : vector<1x16x16xf32>
    %578 = arith.addf %574, %577 : vector<1x16x16xf32>
    %c129 = arith.constant 129 : index
    %579 = memref.load %arg1[%c129] : memref<144xf32, #tpu.memory_space<smem>>
    %580 = vector.broadcast %579 : f32 to vector<1x16x16xf32>
    %581 = arith.mulf %515, %580 : vector<1x16x16xf32>
    %582 = arith.addf %578, %581 : vector<1x16x16xf32>
    %c130 = arith.constant 130 : index
    %583 = memref.load %arg1[%c130] : memref<144xf32, #tpu.memory_space<smem>>
    %584 = vector.broadcast %583 : f32 to vector<1x16x16xf32>
    %585 = arith.mulf %516, %584 : vector<1x16x16xf32>
    %586 = arith.addf %582, %585 : vector<1x16x16xf32>
    %c131 = arith.constant 131 : index
    %587 = memref.load %arg1[%c131] : memref<144xf32, #tpu.memory_space<smem>>
    %588 = vector.broadcast %587 : f32 to vector<1x16x16xf32>
    %589 = arith.mulf %517, %588 : vector<1x16x16xf32>
    %590 = arith.addf %586, %589 : vector<1x16x16xf32>
    %c132 = arith.constant 132 : index
    %591 = memref.load %arg1[%c132] : memref<144xf32, #tpu.memory_space<smem>>
    %592 = vector.broadcast %591 : f32 to vector<1x16x16xf32>
    %593 = arith.mulf %518, %592 : vector<1x16x16xf32>
    %594 = arith.addf %590, %593 : vector<1x16x16xf32>
    %c133 = arith.constant 133 : index
    %595 = memref.load %arg1[%c133] : memref<144xf32, #tpu.memory_space<smem>>
    %596 = vector.broadcast %595 : f32 to vector<1x16x16xf32>
    %597 = arith.mulf %519, %596 : vector<1x16x16xf32>
    %598 = arith.addf %594, %597 : vector<1x16x16xf32>
    %c134 = arith.constant 134 : index
    %599 = memref.load %arg1[%c134] : memref<144xf32, #tpu.memory_space<smem>>
    %600 = vector.broadcast %599 : f32 to vector<1x16x16xf32>
    %601 = arith.mulf %520, %600 : vector<1x16x16xf32>
    %602 = arith.addf %598, %601 : vector<1x16x16xf32>
    %c14_237 = arith.constant 14 : index
    %603 = memref.load %arg3[%c14_237] : memref<16xf32, #tpu.memory_space<smem>>
    %cst_238 = arith.constant 0.000000e+00 : f32
    %604 = vector.broadcast %cst_238 : f32 to vector<1x16x16xf32>
    %605 = arith.cmpf oge, %602, %604 : vector<1x16x16xf32>
    %606 = vector.broadcast %603 : f32 to vector<1x16x16xf32>
    %607 = arith.mulf %606, %602 : vector<1x16x16xf32>
    %608 = arith.select %605, %602, %607 : vector<1x16x16xi1>, vector<1x16x16xf32>
    %609 = arith.addf %564, %608 : vector<1x16x16xf32>
    %610 = arith.addf %609, %411 : vector<1x16x16xf32>
    %c0_239 = arith.constant 0 : index
    %c2_240 = arith.constant 2 : index
    %c0_241 = arith.constant 0 : index
    %c0_242 = arith.constant 0 : index
    %611 = vector.load %arg5[%c0_239, %c2_240, %c0_241, %c0_242] : memref<1x4x16x16xf32, #tpu.memory_space<vmem>>, vector<1x1x16x16xf32>
    %612 = vector.shape_cast %611 : vector<1x1x16x16xf32> to vector<1x16x16xf32>
    %613 = vector.shape_cast %610 : vector<1x16x16xf32> to vector<1x1x16x16xf32>
    tpu.vector_store %arg5[%c0_239, %c2_240, %c0_241, %c0_242], %613 {strides = array<i32>} : memref<1x4x16x16xf32, #tpu.memory_space<vmem>>, vector<1x1x16x16xf32>,
    %c0_243 = arith.constant 0 : index
    %c3_244 = arith.constant 3 : index
    %c0_245 = arith.constant 0 : index
    %c0_246 = arith.constant 0 : index
    %614 = vector.load %arg4[%c0_243, %c3_244, %c0_245, %c0_246] : memref<1x4x16x16xf32, #tpu.memory_space<vmem>>, vector<1x1x16x16xf32>
    %615 = vector.shape_cast %614 : vector<1x1x16x16xf32> to vector<1x16x16xf32>
    %c0_247 = arith.constant 0 : index
    %c1_248 = arith.constant 1 : index
    %c1_249 = arith.constant 1 : index
    %616 = vector.load %arg6[%c0_247, %c1_248, %c1_249] : memref<1x18x18xf32, #tpu.memory_space<vmem>>, vector<1x16x16xf32>
    tpu.vector_store %arg6[%c0_247, %c1_248, %c1_249], %615 {strides = array<i32>} : memref<1x18x18xf32, #tpu.memory_space<vmem>>, vector<1x16x16xf32>,
    %c0_250 = arith.constant 0 : index
    %c0_251 = arith.constant 0 : index
    %c0_252 = arith.constant 0 : index
    %617 = vector.load %arg6[%c0_250, %c0_251, %c0_252] : memref<1x18x18xf32, #tpu.memory_space<vmem>>, vector<1x16x16xf32>
    %c0_253 = arith.constant 0 : index
    %c0_254 = arith.constant 0 : index
    %c1_255 = arith.constant 1 : index
    %618 = vector.load %arg6[%c0_253, %c0_254, %c1_255] : memref<1x18x18xf32, #tpu.memory_space<vmem>>, vector<1x16x16xf32>
    %c0_256 = arith.constant 0 : index
    %c0_257 = arith.constant 0 : index
    %c2_258 = arith.constant 2 : index
    %619 = vector.load %arg6[%c0_256, %c0_257, %c2_258] : memref<1x18x18xf32, #tpu.memory_space<vmem>>, vector<1x16x16xf32>
    %c0_259 = arith.constant 0 : index
    %c1_260 = arith.constant 1 : index
    %c0_261 = arith.constant 0 : index
    %620 = vector.load %arg6[%c0_259, %c1_260, %c0_261] : memref<1x18x18xf32, #tpu.memory_space<vmem>>, vector<1x16x16xf32>
    %c0_262 = arith.constant 0 : index
    %c1_263 = arith.constant 1 : index
    %c1_264 = arith.constant 1 : index
    %621 = vector.load %arg6[%c0_262, %c1_263, %c1_264] : memref<1x18x18xf32, #tpu.memory_space<vmem>>, vector<1x16x16xf32>
    %c0_265 = arith.constant 0 : index
    %c1_266 = arith.constant 1 : index
    %c2_267 = arith.constant 2 : index
    %622 = vector.load %arg6[%c0_265, %c1_266, %c2_267] : memref<1x18x18xf32, #tpu.memory_space<vmem>>, vector<1x16x16xf32>
    %c0_268 = arith.constant 0 : index
    %c2_269 = arith.constant 2 : index
    %c0_270 = arith.constant 0 : index
    %623 = vector.load %arg6[%c0_268, %c2_269, %c0_270] : memref<1x18x18xf32, #tpu.memory_space<vmem>>, vector<1x16x16xf32>
    %c0_271 = arith.constant 0 : index
    %c2_272 = arith.constant 2 : index
    %c1_273 = arith.constant 1 : index
    %624 = vector.load %arg6[%c0_271, %c2_272, %c1_273] : memref<1x18x18xf32, #tpu.memory_space<vmem>>, vector<1x16x16xf32>
    %c0_274 = arith.constant 0 : index
    %c2_275 = arith.constant 2 : index
    %c2_276 = arith.constant 2 : index
    %625 = vector.load %arg6[%c0_274, %c2_275, %c2_276] : memref<1x18x18xf32, #tpu.memory_space<vmem>>, vector<1x16x16xf32>
    %c3_277 = arith.constant 3 : index
    %626 = memref.load %arg2[%c3_277] : memref<16xf32, #tpu.memory_space<smem>>
    %627 = vector.broadcast %626 : f32 to vector<1x16x16xf32>
    %c27 = arith.constant 27 : index
    %628 = memref.load %arg1[%c27] : memref<144xf32, #tpu.memory_space<smem>>
    %629 = vector.broadcast %628 : f32 to vector<1x16x16xf32>
    %630 = arith.mulf %617, %629 : vector<1x16x16xf32>
    %631 = arith.addf %627, %630 : vector<1x16x16xf32>
    %c28 = arith.constant 28 : index
    %632 = memref.load %arg1[%c28] : memref<144xf32, #tpu.memory_space<smem>>
    %633 = vector.broadcast %632 : f32 to vector<1x16x16xf32>
    %634 = arith.mulf %618, %633 : vector<1x16x16xf32>
    %635 = arith.addf %631, %634 : vector<1x16x16xf32>
    %c29 = arith.constant 29 : index
    %636 = memref.load %arg1[%c29] : memref<144xf32, #tpu.memory_space<smem>>
    %637 = vector.broadcast %636 : f32 to vector<1x16x16xf32>
    %638 = arith.mulf %619, %637 : vector<1x16x16xf32>
    %639 = arith.addf %635, %638 : vector<1x16x16xf32>
    %c30 = arith.constant 30 : index
    %640 = memref.load %arg1[%c30] : memref<144xf32, #tpu.memory_space<smem>>
    %641 = vector.broadcast %640 : f32 to vector<1x16x16xf32>
    %642 = arith.mulf %620, %641 : vector<1x16x16xf32>
    %643 = arith.addf %639, %642 : vector<1x16x16xf32>
    %c31 = arith.constant 31 : index
    %644 = memref.load %arg1[%c31] : memref<144xf32, #tpu.memory_space<smem>>
    %645 = vector.broadcast %644 : f32 to vector<1x16x16xf32>
    %646 = arith.mulf %621, %645 : vector<1x16x16xf32>
    %647 = arith.addf %643, %646 : vector<1x16x16xf32>
    %c32 = arith.constant 32 : index
    %648 = memref.load %arg1[%c32] : memref<144xf32, #tpu.memory_space<smem>>
    %649 = vector.broadcast %648 : f32 to vector<1x16x16xf32>
    %650 = arith.mulf %622, %649 : vector<1x16x16xf32>
    %651 = arith.addf %647, %650 : vector<1x16x16xf32>
    %c33 = arith.constant 33 : index
    %652 = memref.load %arg1[%c33] : memref<144xf32, #tpu.memory_space<smem>>
    %653 = vector.broadcast %652 : f32 to vector<1x16x16xf32>
    %654 = arith.mulf %623, %653 : vector<1x16x16xf32>
    %655 = arith.addf %651, %654 : vector<1x16x16xf32>
    %c34 = arith.constant 34 : index
    %656 = memref.load %arg1[%c34] : memref<144xf32, #tpu.memory_space<smem>>
    %657 = vector.broadcast %656 : f32 to vector<1x16x16xf32>
    %658 = arith.mulf %624, %657 : vector<1x16x16xf32>
    %659 = arith.addf %655, %658 : vector<1x16x16xf32>
    %c35 = arith.constant 35 : index
    %660 = memref.load %arg1[%c35] : memref<144xf32, #tpu.memory_space<smem>>
    %661 = vector.broadcast %660 : f32 to vector<1x16x16xf32>
    %662 = arith.mulf %625, %661 : vector<1x16x16xf32>
    %663 = arith.addf %659, %662 : vector<1x16x16xf32>
    %c3_278 = arith.constant 3 : index
    %664 = memref.load %arg3[%c3_278] : memref<16xf32, #tpu.memory_space<smem>>
    %cst_279 = arith.constant 0.000000e+00 : f32
    %665 = vector.broadcast %cst_279 : f32 to vector<1x16x16xf32>
    %666 = arith.cmpf oge, %663, %665 : vector<1x16x16xf32>
    %667 = vector.broadcast %664 : f32 to vector<1x16x16xf32>
    %668 = arith.mulf %667, %663 : vector<1x16x16xf32>
    %669 = arith.select %666, %663, %668 : vector<1x16x16xi1>, vector<1x16x16xf32>
    %c7_280 = arith.constant 7 : index
    %670 = memref.load %arg2[%c7_280] : memref<16xf32, #tpu.memory_space<smem>>
    %671 = vector.broadcast %670 : f32 to vector<1x16x16xf32>
    %c63 = arith.constant 63 : index
    %672 = memref.load %arg1[%c63] : memref<144xf32, #tpu.memory_space<smem>>
    %673 = vector.broadcast %672 : f32 to vector<1x16x16xf32>
    %674 = arith.mulf %617, %673 : vector<1x16x16xf32>
    %675 = arith.addf %671, %674 : vector<1x16x16xf32>
    %c64 = arith.constant 64 : index
    %676 = memref.load %arg1[%c64] : memref<144xf32, #tpu.memory_space<smem>>
    %677 = vector.broadcast %676 : f32 to vector<1x16x16xf32>
    %678 = arith.mulf %618, %677 : vector<1x16x16xf32>
    %679 = arith.addf %675, %678 : vector<1x16x16xf32>
    %c65 = arith.constant 65 : index
    %680 = memref.load %arg1[%c65] : memref<144xf32, #tpu.memory_space<smem>>
    %681 = vector.broadcast %680 : f32 to vector<1x16x16xf32>
    %682 = arith.mulf %619, %681 : vector<1x16x16xf32>
    %683 = arith.addf %679, %682 : vector<1x16x16xf32>
    %c66 = arith.constant 66 : index
    %684 = memref.load %arg1[%c66] : memref<144xf32, #tpu.memory_space<smem>>
    %685 = vector.broadcast %684 : f32 to vector<1x16x16xf32>
    %686 = arith.mulf %620, %685 : vector<1x16x16xf32>
    %687 = arith.addf %683, %686 : vector<1x16x16xf32>
    %c67 = arith.constant 67 : index
    %688 = memref.load %arg1[%c67] : memref<144xf32, #tpu.memory_space<smem>>
    %689 = vector.broadcast %688 : f32 to vector<1x16x16xf32>
    %690 = arith.mulf %621, %689 : vector<1x16x16xf32>
    %691 = arith.addf %687, %690 : vector<1x16x16xf32>
    %c68 = arith.constant 68 : index
    %692 = memref.load %arg1[%c68] : memref<144xf32, #tpu.memory_space<smem>>
    %693 = vector.broadcast %692 : f32 to vector<1x16x16xf32>
    %694 = arith.mulf %622, %693 : vector<1x16x16xf32>
    %695 = arith.addf %691, %694 : vector<1x16x16xf32>
    %c69 = arith.constant 69 : index
    %696 = memref.load %arg1[%c69] : memref<144xf32, #tpu.memory_space<smem>>
    %697 = vector.broadcast %696 : f32 to vector<1x16x16xf32>
    %698 = arith.mulf %623, %697 : vector<1x16x16xf32>
    %699 = arith.addf %695, %698 : vector<1x16x16xf32>
    %c70 = arith.constant 70 : index
    %700 = memref.load %arg1[%c70] : memref<144xf32, #tpu.memory_space<smem>>
    %701 = vector.broadcast %700 : f32 to vector<1x16x16xf32>
    %702 = arith.mulf %624, %701 : vector<1x16x16xf32>
    %703 = arith.addf %699, %702 : vector<1x16x16xf32>
    %c71 = arith.constant 71 : index
    %704 = memref.load %arg1[%c71] : memref<144xf32, #tpu.memory_space<smem>>
    %705 = vector.broadcast %704 : f32 to vector<1x16x16xf32>
    %706 = arith.mulf %625, %705 : vector<1x16x16xf32>
    %707 = arith.addf %703, %706 : vector<1x16x16xf32>
    %c7_281 = arith.constant 7 : index
    %708 = memref.load %arg3[%c7_281] : memref<16xf32, #tpu.memory_space<smem>>
    %cst_282 = arith.constant 0.000000e+00 : f32
    %709 = vector.broadcast %cst_282 : f32 to vector<1x16x16xf32>
    %710 = arith.cmpf oge, %707, %709 : vector<1x16x16xf32>
    %711 = vector.broadcast %708 : f32 to vector<1x16x16xf32>
    %712 = arith.mulf %711, %707 : vector<1x16x16xf32>
    %713 = arith.select %710, %707, %712 : vector<1x16x16xi1>, vector<1x16x16xf32>
    %714 = arith.addf %669, %713 : vector<1x16x16xf32>
    %c0_283 = arith.constant 0 : index
    %c1_284 = arith.constant 1 : index
    %c1_285 = arith.constant 1 : index
    %715 = vector.load %arg6[%c0_283, %c1_284, %c1_285] : memref<1x18x18xf32, #tpu.memory_space<vmem>>, vector<1x16x16xf32>
    tpu.vector_store %arg6[%c0_283, %c1_284, %c1_285], %714 {strides = array<i32>} : memref<1x18x18xf32, #tpu.memory_space<vmem>>, vector<1x16x16xf32>,
    %c0_286 = arith.constant 0 : index
    %c0_287 = arith.constant 0 : index
    %c0_288 = arith.constant 0 : index
    %716 = vector.load %arg6[%c0_286, %c0_287, %c0_288] : memref<1x18x18xf32, #tpu.memory_space<vmem>>, vector<1x16x16xf32>
    %c0_289 = arith.constant 0 : index
    %c0_290 = arith.constant 0 : index
    %c1_291 = arith.constant 1 : index
    %717 = vector.load %arg6[%c0_289, %c0_290, %c1_291] : memref<1x18x18xf32, #tpu.memory_space<vmem>>, vector<1x16x16xf32>
    %c0_292 = arith.constant 0 : index
    %c0_293 = arith.constant 0 : index
    %c2_294 = arith.constant 2 : index
    %718 = vector.load %arg6[%c0_292, %c0_293, %c2_294] : memref<1x18x18xf32, #tpu.memory_space<vmem>>, vector<1x16x16xf32>
    %c0_295 = arith.constant 0 : index
    %c1_296 = arith.constant 1 : index
    %c0_297 = arith.constant 0 : index
    %719 = vector.load %arg6[%c0_295, %c1_296, %c0_297] : memref<1x18x18xf32, #tpu.memory_space<vmem>>, vector<1x16x16xf32>
    %c0_298 = arith.constant 0 : index
    %c1_299 = arith.constant 1 : index
    %c1_300 = arith.constant 1 : index
    %720 = vector.load %arg6[%c0_298, %c1_299, %c1_300] : memref<1x18x18xf32, #tpu.memory_space<vmem>>, vector<1x16x16xf32>
    %c0_301 = arith.constant 0 : index
    %c1_302 = arith.constant 1 : index
    %c2_303 = arith.constant 2 : index
    %721 = vector.load %arg6[%c0_301, %c1_302, %c2_303] : memref<1x18x18xf32, #tpu.memory_space<vmem>>, vector<1x16x16xf32>
    %c0_304 = arith.constant 0 : index
    %c2_305 = arith.constant 2 : index
    %c0_306 = arith.constant 0 : index
    %722 = vector.load %arg6[%c0_304, %c2_305, %c0_306] : memref<1x18x18xf32, #tpu.memory_space<vmem>>, vector<1x16x16xf32>
    %c0_307 = arith.constant 0 : index
    %c2_308 = arith.constant 2 : index
    %c1_309 = arith.constant 1 : index
    %723 = vector.load %arg6[%c0_307, %c2_308, %c1_309] : memref<1x18x18xf32, #tpu.memory_space<vmem>>, vector<1x16x16xf32>
    %c0_310 = arith.constant 0 : index
    %c2_311 = arith.constant 2 : index
    %c2_312 = arith.constant 2 : index
    %724 = vector.load %arg6[%c0_310, %c2_311, %c2_312] : memref<1x18x18xf32, #tpu.memory_space<vmem>>, vector<1x16x16xf32>
    %c11_313 = arith.constant 11 : index
    %725 = memref.load %arg2[%c11_313] : memref<16xf32, #tpu.memory_space<smem>>
    %726 = vector.broadcast %725 : f32 to vector<1x16x16xf32>
    %c99 = arith.constant 99 : index
    %727 = memref.load %arg1[%c99] : memref<144xf32, #tpu.memory_space<smem>>
    %728 = vector.broadcast %727 : f32 to vector<1x16x16xf32>
    %729 = arith.mulf %716, %728 : vector<1x16x16xf32>
    %730 = arith.addf %726, %729 : vector<1x16x16xf32>
    %c100 = arith.constant 100 : index
    %731 = memref.load %arg1[%c100] : memref<144xf32, #tpu.memory_space<smem>>
    %732 = vector.broadcast %731 : f32 to vector<1x16x16xf32>
    %733 = arith.mulf %717, %732 : vector<1x16x16xf32>
    %734 = arith.addf %730, %733 : vector<1x16x16xf32>
    %c101 = arith.constant 101 : index
    %735 = memref.load %arg1[%c101] : memref<144xf32, #tpu.memory_space<smem>>
    %736 = vector.broadcast %735 : f32 to vector<1x16x16xf32>
    %737 = arith.mulf %718, %736 : vector<1x16x16xf32>
    %738 = arith.addf %734, %737 : vector<1x16x16xf32>
    %c102 = arith.constant 102 : index
    %739 = memref.load %arg1[%c102] : memref<144xf32, #tpu.memory_space<smem>>
    %740 = vector.broadcast %739 : f32 to vector<1x16x16xf32>
    %741 = arith.mulf %719, %740 : vector<1x16x16xf32>
    %742 = arith.addf %738, %741 : vector<1x16x16xf32>
    %c103 = arith.constant 103 : index
    %743 = memref.load %arg1[%c103] : memref<144xf32, #tpu.memory_space<smem>>
    %744 = vector.broadcast %743 : f32 to vector<1x16x16xf32>
    %745 = arith.mulf %720, %744 : vector<1x16x16xf32>
    %746 = arith.addf %742, %745 : vector<1x16x16xf32>
    %c104 = arith.constant 104 : index
    %747 = memref.load %arg1[%c104] : memref<144xf32, #tpu.memory_space<smem>>
    %748 = vector.broadcast %747 : f32 to vector<1x16x16xf32>
    %749 = arith.mulf %721, %748 : vector<1x16x16xf32>
    %750 = arith.addf %746, %749 : vector<1x16x16xf32>
    %c105 = arith.constant 105 : index
    %751 = memref.load %arg1[%c105] : memref<144xf32, #tpu.memory_space<smem>>
    %752 = vector.broadcast %751 : f32 to vector<1x16x16xf32>
    %753 = arith.mulf %722, %752 : vector<1x16x16xf32>
    %754 = arith.addf %750, %753 : vector<1x16x16xf32>
    %c106 = arith.constant 106 : index
    %755 = memref.load %arg1[%c106] : memref<144xf32, #tpu.memory_space<smem>>
    %756 = vector.broadcast %755 : f32 to vector<1x16x16xf32>
    %757 = arith.mulf %723, %756 : vector<1x16x16xf32>
    %758 = arith.addf %754, %757 : vector<1x16x16xf32>
    %c107 = arith.constant 107 : index
    %759 = memref.load %arg1[%c107] : memref<144xf32, #tpu.memory_space<smem>>
    %760 = vector.broadcast %759 : f32 to vector<1x16x16xf32>
    %761 = arith.mulf %724, %760 : vector<1x16x16xf32>
    %762 = arith.addf %758, %761 : vector<1x16x16xf32>
    %c11_314 = arith.constant 11 : index
    %763 = memref.load %arg3[%c11_314] : memref<16xf32, #tpu.memory_space<smem>>
    %cst_315 = arith.constant 0.000000e+00 : f32
    %764 = vector.broadcast %cst_315 : f32 to vector<1x16x16xf32>
    %765 = arith.cmpf oge, %762, %764 : vector<1x16x16xf32>
    %766 = vector.broadcast %763 : f32 to vector<1x16x16xf32>
    %767 = arith.mulf %766, %762 : vector<1x16x16xf32>
    %768 = arith.select %765, %762, %767 : vector<1x16x16xi1>, vector<1x16x16xf32>
    %c15_316 = arith.constant 15 : index
    %769 = memref.load %arg2[%c15_316] : memref<16xf32, #tpu.memory_space<smem>>
    %770 = vector.broadcast %769 : f32 to vector<1x16x16xf32>
    %c135 = arith.constant 135 : index
    %771 = memref.load %arg1[%c135] : memref<144xf32, #tpu.memory_space<smem>>
    %772 = vector.broadcast %771 : f32 to vector<1x16x16xf32>
    %773 = arith.mulf %716, %772 : vector<1x16x16xf32>
    %774 = arith.addf %770, %773 : vector<1x16x16xf32>
    %c136 = arith.constant 136 : index
    %775 = memref.load %arg1[%c136] : memref<144xf32, #tpu.memory_space<smem>>
    %776 = vector.broadcast %775 : f32 to vector<1x16x16xf32>
    %777 = arith.mulf %717, %776 : vector<1x16x16xf32>
    %778 = arith.addf %774, %777 : vector<1x16x16xf32>
    %c137 = arith.constant 137 : index
    %779 = memref.load %arg1[%c137] : memref<144xf32, #tpu.memory_space<smem>>
    %780 = vector.broadcast %779 : f32 to vector<1x16x16xf32>
    %781 = arith.mulf %718, %780 : vector<1x16x16xf32>
    %782 = arith.addf %778, %781 : vector<1x16x16xf32>
    %c138 = arith.constant 138 : index
    %783 = memref.load %arg1[%c138] : memref<144xf32, #tpu.memory_space<smem>>
    %784 = vector.broadcast %783 : f32 to vector<1x16x16xf32>
    %785 = arith.mulf %719, %784 : vector<1x16x16xf32>
    %786 = arith.addf %782, %785 : vector<1x16x16xf32>
    %c139 = arith.constant 139 : index
    %787 = memref.load %arg1[%c139] : memref<144xf32, #tpu.memory_space<smem>>
    %788 = vector.broadcast %787 : f32 to vector<1x16x16xf32>
    %789 = arith.mulf %720, %788 : vector<1x16x16xf32>
    %790 = arith.addf %786, %789 : vector<1x16x16xf32>
    %c140 = arith.constant 140 : index
    %791 = memref.load %arg1[%c140] : memref<144xf32, #tpu.memory_space<smem>>
    %792 = vector.broadcast %791 : f32 to vector<1x16x16xf32>
    %793 = arith.mulf %721, %792 : vector<1x16x16xf32>
    %794 = arith.addf %790, %793 : vector<1x16x16xf32>
    %c141 = arith.constant 141 : index
    %795 = memref.load %arg1[%c141] : memref<144xf32, #tpu.memory_space<smem>>
    %796 = vector.broadcast %795 : f32 to vector<1x16x16xf32>
    %797 = arith.mulf %722, %796 : vector<1x16x16xf32>
    %798 = arith.addf %794, %797 : vector<1x16x16xf32>
    %c142 = arith.constant 142 : index
    %799 = memref.load %arg1[%c142] : memref<144xf32, #tpu.memory_space<smem>>
    %800 = vector.broadcast %799 : f32 to vector<1x16x16xf32>
    %801 = arith.mulf %723, %800 : vector<1x16x16xf32>
    %802 = arith.addf %798, %801 : vector<1x16x16xf32>
    %c143 = arith.constant 143 : index
    %803 = memref.load %arg1[%c143] : memref<144xf32, #tpu.memory_space<smem>>
    %804 = vector.broadcast %803 : f32 to vector<1x16x16xf32>
    %805 = arith.mulf %724, %804 : vector<1x16x16xf32>
    %806 = arith.addf %802, %805 : vector<1x16x16xf32>
    %c15_317 = arith.constant 15 : index
    %807 = memref.load %arg3[%c15_317] : memref<16xf32, #tpu.memory_space<smem>>
    %cst_318 = arith.constant 0.000000e+00 : f32
    %808 = vector.broadcast %cst_318 : f32 to vector<1x16x16xf32>
    %809 = arith.cmpf oge, %806, %808 : vector<1x16x16xf32>
    %810 = vector.broadcast %807 : f32 to vector<1x16x16xf32>
    %811 = arith.mulf %810, %806 : vector<1x16x16xf32>
    %812 = arith.select %809, %806, %811 : vector<1x16x16xi1>, vector<1x16x16xf32>
    %813 = arith.addf %768, %812 : vector<1x16x16xf32>
    %814 = arith.addf %813, %615 : vector<1x16x16xf32>
    %c0_319 = arith.constant 0 : index
    %c3_320 = arith.constant 3 : index
    %c0_321 = arith.constant 0 : index
    %c0_322 = arith.constant 0 : index
    %815 = vector.load %arg5[%c0_319, %c3_320, %c0_321, %c0_322] : memref<1x4x16x16xf32, #tpu.memory_space<vmem>>, vector<1x1x16x16xf32>
    %816 = vector.shape_cast %815 : vector<1x1x16x16xf32> to vector<1x16x16xf32>
    %817 = vector.shape_cast %814 : vector<1x16x16xf32> to vector<1x1x16x16xf32>
    tpu.vector_store %arg5[%c0_319, %c3_320, %c0_321, %c0_322], %817 {strides = array<i32>} : memref<1x4x16x16xf32, #tpu.memory_space<vmem>>, vector<1x1x16x16xf32>,
    return
  }
  func.func @transform_0(%arg0: i32) -> i32 {
    %c0_i32 = arith.constant 0 : i32
    %c0_i32_0 = arith.constant 0 : i32
    return %c0_i32 : i32
  }
  func.func @transform_1(%arg0: i32) -> i32 {
    %c0_i32 = arith.constant 0 : i32
    %c0_i32_0 = arith.constant 0 : i32
    return %c0_i32 : i32
  }
  func.func @transform_2(%arg0: i32) -> i32 {
    %c0_i32 = arith.constant 0 : i32
    %c0_i32_0 = arith.constant 0 : i32
    return %c0_i32 : i32
  }
  func.func @transform_3(%arg0: i32) -> (i32, i32, i32, i32) {
    %c0_i32 = arith.constant 0 : i32
    %c0_i32_0 = arith.constant 0 : i32
    %c0_i32_1 = arith.constant 0 : i32
    %c0_i32_2 = arith.constant 0 : i32
    return %arg0, %c0_i32, %c0_i32_0, %c0_i32_1 : i32, i32, i32, i32
  }
  func.func @transform_4(%arg0: i32) -> (i32, i32, i32, i32) {
    %c0_i32 = arith.constant 0 : i32
    %c0_i32_0 = arith.constant 0 : i32
    %c0_i32_1 = arith.constant 0 : i32
    %c0_i32_2 = arith.constant 0 : i32
    return %arg0, %c0_i32, %c0_i32_0, %c0_i32_1 : i32, i32, i32, i32
  }
}

</mosaic_0001>

<bundles_post_ra>
// kernel: tpu_custom_call.1
= control target key start
LH: loop header
LB: loop body
LE: loop exit
PB: predicated region body
PF: predicated region fallthrough
CT: control target
= control target key end

     0   :  { %9 = vsyncpa [#allocation6], 0  ;;  %s4013_s0 = inlined_call_operand.hbm [shape: f32[144], index: 0, kind: input, shape index: {}]   ;;  %s4014_s1 = inlined_call_operand.vmem [shape: f32[16], index: 1, kind: input, shape index: {}]   ;;  %s4015_s2 = inlined_call_operand.vmem [shape: f32[16], index: 2, kind: input, shape index: {}]   ;;  %s4016_s3 = inlined_call_operand.hbm [shape: f32[2,4,16,16], index: 3, kind: input, shape index: {}]   ;;  %s4017_s4 = inlined_call_operand.hbm [shape: f32[2,4,16,16], index: 4, kind: output, shape index: {}]  }
   0x1   :  { %10 = vsyncpa [#allocation7], 0 }
   0x2   :  { %11 = vsyncpa [#allocation10], 0 }
   0x3   :  { %12 = vsyncpa [#allocation4], 0 }
   0x4   :  { %14 = vsyncpa [#allocation4 + $0x1], 0 }
   0x5   :  { %15 = vsyncpa [#allocation5], 0 }
   0x6   :  { %17 = vsyncpa [#allocation5 + $0x1], 0  ;;  %s2839_s15 = smov 0   ;;  %s2841_s16 = smov 0  }
   0x7   :  { %s2843_s17 = smov 0   ;;  %s2845_s18 = smov 0  }
   0x8 LB: > { %s2860_s19 = sadd.s32 4294967295, %s2799_s18   ;;  %s2348_s20 = sadd.s32 4294967294, %s2799_s18   ;;  %s2799_s18 = sphi %s2845_s18, %s4041_s18   ;;  %s2795_s17 = sphi %s2843_s17, %s4040_s17   ;;  %s2791_s16 = sphi %s2841_s16, %s4039_s16   ;;  %s2787_s15 = sphi %s2839_s15, %s4038_s15  }
   0x9   : > { %p106_p0 = scmp.ne.s32.totalorder %s2791_s16, %s2787_s15  ;;  %p4018_p1 = scmp.eq.s32.totalorder %s2860_s19, 0 }
   0xa   : > { %p136_p3 = scmp.eq.s32.totalorder %s2348_s20, 1  ;;  %p2349_p5 = scmp.ge.s32.totalorder %s2799_s18, 1 }
   0xb   : > { %p2869_p4 = por %p4018_p1, %p106_p0  ;;  %p143_p7 = scmp.lt.s32.totalorder %s2799_s18, 3 }
   0xc   : > { %p2874_p6 = por %p136_p3, %p106_p0  ;;  %s165_s26 = sshll.u32 %s4014_s1, 4  ;;  %s166_s26 = int_to_ptr.vmem [resolvable:$true] %s165_s26 }
   0xd   : > { %s4021_s21 = scalar_select %p2869_p4, 1, 0 }
   0xe   : > { %s4022_s22 = scalar_select %p2874_p6, 1, 0 }
   0xf   : > { %p2879_p8 = pnand %p2349_p5, %p143_p7  ;;  %s176_s29 = sshll.u32 %s4015_s2, 4  ;;  %s2898_s29 = int_to_ptr.vmem [resolvable:$true] %s176_s29 }
  0x10   : > { %s2901_s5 = sadd.s32 1, %s2799_s18   ;;  %s2648_s8 = scalar_lea.hbm %s4013_s0, 32 }
  0x11   : > { %p2571_p10 = pneg %p2879_p8  ;;  %p2649_p12 = scmp.ne.s32.totalorder %s4013_s0, %s2648_s8 }
  0x12   : > { %p2655_p5 = scmp.lt.u32.totalorder %s2648_s8, %s4013_s0 }
  0x13   : > { %p2894_p11 = pnand %p2571_p10, %p4018_p1 }
  0x15   : > { %p2650_p13 = pneg %p2894_p11 }
  0x17   : > { %p2651_p0 = pnand %p2650_p13, %p2649_p12 }
  0x19   : > { %p2652_p3 = pneg %p2651_p0 }
  0x1b   : > { %p2657_p7 = pnand %p2655_p5, %p2652_p3 }
  0x1d   : > { %2660 = shalt.err (!%p2657_p7)
}
  0x1e   : > { %s2801_s13 = smov [#allocation3]   ;;  %s2661_s24 = scalar_lea.vmem %s166_s26, 16 }
  0x1f   : > { %2574 = dma.hbm_to_smem (!%p2894_p11), %s4013_s0, 32, %s2801_s13, [#allocation6]  }
  0x20   : > { %p2662_p10 = scmp.ne.s32.totalorder %s166_s26, %s2661_s24  ;;  %p2669_p9 = scmp.lt.s32.totalorder %s166_s26, %s166_s26 }
  0x21   : > { %p2670_p1 = scmp.lt.s32.totalorder %s2661_s24, %s2661_s24 }
  0x22   : > { %p2664_p12 = pnand %p2662_p10, %p2650_p13 }
  0x23   : > { %p2671_p2 = por %p2670_p1, %p2669_p9 }
  0x24   : > { %p2665_p0 = pneg %p2664_p12 }
  0x26   : > { %p2672_p6 = pnand %p2671_p2, %p2665_p0 }
  0x28   : > { %2675 = shalt.err (!%p2672_p6)
}
  0x29   : > { %s2802_s25 = smov [#allocation8]   ;;  %s2676_s27 = scalar_lea.vmem %s2898_s29, 16 }
  0x2a   : > { %2577 = dma.vmem_to_smem (!%p2894_p11), %s166_s26, 16, %s2802_s25, [#allocation7]  }
  0x2b   : > { %p2677_p3 = scmp.ne.s32.totalorder %s2898_s29, %s2676_s27  ;;  %p2684_p10 = scmp.lt.s32.totalorder %s2898_s29, %s2898_s29 }
  0x2c   : > { %p2685_p12 = scmp.lt.s32.totalorder %s2676_s27, %s2676_s27 }
  0x2d   : > { %p2679_p5 = pnand %p2677_p3, %p2650_p13 }
  0x2e   : > { %p2686_p1 = por %p2685_p12, %p2684_p10 }
  0x2f   : > { %p2680_p7 = pneg %p2679_p5 }
  0x31   : > { %p2687_p2 = pnand %p2686_p1, %p2680_p7 }
  0x33   : > { %2690 = shalt.err (!%p2687_p2)
}
  0x34   : > { %s2803_s28 = smov [#allocation9]   ;;  %s90_s26 = ssub.s32 %s2799_s18, %s2901_s5 }
  0x35   : > { %2580 = dma.vmem_to_smem (!%p2894_p11), %s2898_s29, 16, %s2803_s28, [#allocation10]  }
  0x36   : > { %s93_s6 = sadd.s32 1, %s2795_s17  ;;  %p91_p6 = scmp.eq.s32.totalorder %s90_s26, 0 }
  0x37   : > { %p100_p9 = scmp.ne.s32.totalorder %s2795_s17, %s2791_s16  ;;  %p101_p13 = scmp.eq.s32.totalorder %s2799_s18, 0 }
  0x38   : > { %p2592_p0 = scmp.lt.s32.totalorder %s2799_s18, 2  ;;  %p4025_p5 = scmp.eq.s32.totalorder %s2860_s19, 1 }
  0x39   : > { %s2945_s30 = scalar_select %p91_p6, %s2795_s17, %s93_s6  }
  0x3a   : > { %p102_p3 = por %p101_p13, %p100_p9  ;;  %p2949_p7 = por %p4025_p5, %p100_p9 }
  0x3b   : > { %s187_s8 = sand.u32 1, %s2795_s17   ;;  %s2553_s9 = sshll.u32 %s2799_s18, 10 }
  0x3c   : > { %s4026_s7 = scalar_select %p2949_p7, 1, 0 }
  0x3d   : > { %s2354_s10 = sshll.u32 %s187_s8, 6  ;;  %s2958_s29 = scalar_lea.hbm %s4016_s3, %s2553_s9 }
  0x3e   : > { %s191_s13 = scalar_lea.vmem [#allocation11], %s2354_s10  ;;  %p2960_p11 = pnand %p2592_p0, %p102_p3 }
  0x3f   : > { %s198_s14 = sshll.u32 %s191_s13, 4  ;;  %s2966_s24 = scalar_lea.sflag [#allocation4], %s187_s8  ;;  %s2964_s14 = int_to_ptr.vmem [resolvable:$true] %s198_s14 }
  0x40   : > { %s2691_s25 = scalar_lea.hbm %s2958_s29, 1024  ;;  %p2693_p12 = pneg %p2960_p11 }
  0x41   : > { %p2692_p10 = scmp.ne.s32.totalorder %s2958_s29, %s2691_s25  ;;  %s2696_s26 = scalar_lea.hbm %s4016_s3, 2048 }
  0x42   : > { %p2697_p6 = scmp.lt.u32.totalorder %s2958_s29, %s4016_s3  ;;  %p2698_p9 = scmp.lt.u32.totalorder %s2696_s26, %s2691_s25 }
  0x43   : > { %p2694_p1 = pnand %p2693_p12, %p2692_p10  ;;  %p2700_p0 = scmp.lt.u32.totalorder %s2691_s25, %s2958_s29 }
  0x44   : > { %p2699_p13 = por %p2698_p9, %p2697_p6 }
  0x45   : > { %p2695_p2 = pneg %p2694_p1 }
  0x46   : > { %p2701_p3 = por %p2700_p0, %p2699_p13 }
  0x48   : > { %p2702_p5 = pnand %p2701_p3, %p2695_p2 }
  0x4a   : > { %2705 = shalt.err (!%p2702_p5)
}
  0x4b   : > { %s2706_s8 = scalar_lea.vmem %s2964_s14, 1024  ;;  %s2804_s10 = smov [#allocation11]  }
  0x4c   : > { %p2707_p10 = scmp.ne.s32.totalorder %s2964_s14, %s2706_s8  ;;  %s2711_s11 = sshll.u32 %s2804_s10, 4  ;;  %s2712_s11 = int_to_ptr.vmem [resolvable:$false] %s2711_s11 }
  0x4d   : > { %s2713_s12 = scalar_lea.vmem %s2712_s11, 2048  ;;  %p2714_p4 = scmp.lt.s32.totalorder %s2964_s14, %s2712_s11 }
  0x4e   : > { %p2709_p1 = pnand %p2707_p10, %p2693_p12  ;;  %p2715_p6 = scmp.lt.s32.totalorder %s2713_s12, %s2706_s8 }
  0x50   : > { %p2710_p7 = pneg %p2709_p1  ;;  %p2716_p9 = por %p2715_p6, %p2714_p4 }
  0x52   : > { %p2717_p13 = pnand %p2716_p9, %p2710_p7 }
  0x54   : > { %2720 = shalt.err (!%p2717_p13)
}
  0x55   : > { %s2805_s13 = smov 128   ;;  %s2806_s25 = smov 8  }
  0x56   : > { %2584 = dma.hbm_to_vmem [thread:$0]  (!%p2960_p11), %s2958_s29, 1024, %s2964_s14, %s2966_s24, %s2805_s13, %s2805_s13, %s2806_s25  }
  0x57   : > { %210 = sbr.rel (%p2879_p8) target bundleno = 1617 (0x651), region = 36  ;;  %p4028_p12 = scmp.eq.s32.totalorder (!%p2879_p8), %s2860_s19, 0 }
  0x5e   : > { %2766 = dma.done.wait (%p4028_p12), [#allocation6], 32   ;;  %p4029_p2 = pmov %p4028_p12 }
  0x60   : > { %2768 = vsyncadd (%p4029_p2), [#allocation6], 4294967264  ;;  %p4030_p4 = pmov %p4029_p2 }
  0x61   : > { %p4031_p7 = pmov %p4029_p2 }
  0x62   : > { %2770 = dma.done.wait (%p4030_p4), [#allocation7], 16  }
  0x63   : > { %2772 = vsyncadd (%p4031_p7), [#allocation7], 4294967280  ;;  %p4032_p0 = pmov %p4029_p2 }
  0x65   : > { %2774 = dma.done.wait (%p4032_p0), [#allocation10], 16   ;;  %p4033_p11 = pmov %p4032_p0 }
  0x66   : > { %s3009_s23 = sand.u32 1, %s2791_s16   ;;  %p4034_p8 = scmp.ne.s32.totalorder %s4021_s21, 0 }
  0x67   : > { %2776 = vsyncadd (%p4033_p11), [#allocation10], 4294967280  ;;  %s2361_s29 = sshll.u32 %s3009_s23, 6  ;;  %s225_s14 = scalar_lea.sflag [#allocation4], %s3009_s23 }
  0x68   : > { %s3015_s20 = scalar_lea.vmem [#allocation11], %s2361_s29 }
  0x69   : > { %2778 = dma.done.wait (%p4034_p8), %s225_s14, 1024  }
  0x6a   : > { %2780 = vsyncadd (%p4034_p8), %s225_s14, 4294966272 }
  0x6b   : > { %233 = sfence }
  0x6c   : > { %v259_v0 = vld [vmem:[%s3015_s20] sm:$0xff]  ;;  %vm254_vm0 = vcmask 146432   ;;  %s2807_s24 = smov 1   ;;  %v2808_v1 = vmov 0.0   ;;  %vm257_vm1 = vcmask 140288   ;;  %v260_v2 = vld [vmem:[%s3015_s20 + $0x8] sm:$0xff] }
  0x6d   : > { %263 = vrot.lane.b32.xlu0 %v259_v0, %s2807_s24  ;;  %255 = vst.msk [vmem:[#allocation2] sm:$0xff] %vm254_vm0, %v2808_v1  ;;  %256 = vst.msk [vmem:[#allocation2 + $0x8] sm:$0xff] %vm254_vm0, %v2808_v1  ;;  %vm269_vm2 = vcmask 138248   ;;  %s2373_s27 = sld [smem:[#allocation3 + $0x25]]  ;;  %s2363_s21 = sld [smem:[#allocation3 + $0x1]] }
  0x6e   : > { %258 = vst.msk [vmem:[#allocation2 + $0x10] sm:$0x3] %vm257_vm1, %v2808_v1  ;;  %s2364_s28 = sld [smem:[#allocation3 + $0x2]]  ;;  %s3027_s26 = sld [smem:[#allocation3 + $0x26]] }
  0x6f   : > { %s3033_s6 = sld [smem:[#allocation3 + $0x4]]  ;;  %s2809_s9 = smov 127  }
  0x70   : > { %s3042_s8 = sld [smem:[#allocation3 + $0x28]]  ;;  %s2810_s10 = smov 126  }
  0x71   : > { %265 = vrot.lane.b32.xlu0 %v260_v2, %s2807_s24  ;;  %s2367_s11 = sld [smem:[#allocation3 + $0x5]]  ;;  %s2377_s12 = sld [smem:[#allocation3 + $0x29]] }
  0x72   : > { %s2369_s13 = sld [smem:[#allocation3 + $0x7]]  ;;  %s2379_s25 = sld [smem:[#allocation3 + $0x2b]] }
  0x73   : > { %v399_v5 = vstv %s2373_s27  ;;  %v287_v6 = vstv %s2363_s21  ;;  %s2370_s14 = sld [smem:[#allocation3 + $0x8]]  ;;  %s2380_s27 = sld [smem:[#allocation3 + $0x2c]] }
  0x74   : > { %v301_v10 = vstv %s2364_s28  ;;  %v413_v14 = vstv %s3027_s26  ;;  %s280_s21 = sld [smem:[#allocation3]]  ;;  %s3096_s28 = sld [smem:[#allocation3 + $0x24]] }
  0x75   : > { %v321_v18 = vstv %s3033_s6  ;;  %s3098_s26 = sld [smem:[#allocation8]]  ;;  %s3100_s6 = sld [smem:[#allocation8 + $0x4]] }
  0x76   : > { %v433_v21 = vstv %s3042_s8  ;;  %s3102_s8 = sld [smem:[#allocation3 + $0x3]]  ;;  %p4035_p5 = scmp.ne.s32.totalorder %s4026_s7, 0 }
  0x77   : > { %v335_v24 = vstv %s2367_s11  ;;  %v447_v28 = vstv %s2377_s12  ;;  %s3107_s11 = sld [smem:[#allocation3 + $0x27]]  ;;  %s3112_s12 = sld [smem:[#allocation3 + $0x6]] }
  0x78   : > { %v355_v32 = vstv %s2369_s13  ;;  %v467_v35 = vstv %s2379_s25  ;;  %s3117_s13 = sld [smem:[#allocation3 + $0x2a]]  ;;  %s3122_s25 = sld [smem:[#allocation9]] }
  0x79   : > { %v369_v39 = vstv %s2370_s14  ;;  %v481_v42 = vstv %s2380_s27  ;;  %s3127_s14 = sld [smem:[#allocation9 + $0x4]]  ;;  %s2408_s27 = sld [smem:[#allocation3 + $0xa]] }
  0x7a   : > { %v281_v53 = vstv %s280_s21  ;;  %v393_v57 = vstv %s3096_s28  ;;  %s2419_s21 = sld [smem:[#allocation3 + $0x2e]]  ;;  %s2409_s28 = sld [smem:[#allocation3 + $0xb]] }
  0x7b   : > { %v279_v58 = vstv %s3098_s26  ;;  %v391_v63 = vstv %s3100_s6  ;;  %s2420_s26 = sld [smem:[#allocation3 + $0x2f]]  ;;  %s2411_s6 = sld [smem:[#allocation3 + $0xd]] }
  0x7c   : > { %v315_v1 = vstv %s3102_s8  ;;  %s2422_s8 = sld [smem:[#allocation3 + $0x31]] }
  0xdf   : > { %v264_v3 = vpop.permute.xlu0 %263 }
  0xe0   : > { %270 = vst.msk [vmem:[#allocation2 + $0x1] sm:$0xff] %vm269_vm2, %v264_v3 }
  0xe3   : > { %v266_v4 = vpop.permute.xlu0 %265 }
  0xe4   : > { %271 = vst.msk [vmem:[#allocation2 + $0x9] sm:$0xff] %vm269_vm2, %v266_v4 }
  0xe7   : > { %v3029_v7 = vld [vmem:[#allocation2] sm:$0xff] }
  0xe8   : > { %v400_v8 = vmul.f32 %v399_v5, %v3029_v7  ;;  %v288_v9 = vmul.f32 %v287_v6, %v3029_v7  ;;  %v302_v13 = vmul.f32 %v301_v10, %v3029_v7  ;;  %v414_v15 = vmul.f32 %v413_v14, %v3029_v7  ;;  %v3048_v17 = vld [vmem:[#allocation2 + $0x1] sm:$0xff] }
  0xe9   : > { %v322_v19 = vmul.f32 %v321_v18, %v3048_v17  ;;  %v434_v22 = vmul.f32 %v433_v21, %v3048_v17  ;;  %v336_v26 = vmul.f32 %v335_v24, %v3048_v17  ;;  %v448_v29 = vmul.f32 %v447_v28, %v3048_v17 }
  0xea   : > { %404 = vrot.lane.b32.xlu0 %v400_v8, %s2809_s9  ;;  %292 = vrot.lane.b32.xlu1 %v288_v9, %s2809_s9  ;;  %v282_v56 = vmul.f32 %v281_v53, %v3029_v7  ;;  %v394_v61 = vmul.f32 %v393_v57, %v3029_v7  ;;  %v316_v9 = vmul.f32 %v315_v1, %v3048_v17 }
  0xeb   : > { %v3037_v11 = vld [vmem:[#allocation2 + $0x8] sm:$0xff] }
  0xec   : > { %v289_v12 = vmul.f32 %v287_v6, %v3037_v11  ;;  %v401_v16 = vmul.f32 %v399_v5, %v3037_v11  ;;  %v303_v20 = vmul.f32 %v301_v10, %v3037_v11  ;;  %v415_v23 = vmul.f32 %v413_v14, %v3037_v11  ;;  %v3060_v25 = vld [vmem:[#allocation2 + $0x9] sm:$0xff] }
  0xed   : > { %v323_v27 = vmul.f32 %v321_v18, %v3060_v25  ;;  %v435_v30 = vmul.f32 %v433_v21, %v3060_v25  ;;  %v3070_v31 = vld [vmem:[#allocation2 + $0x2] sm:$0xff]  ;;  %v337_v34 = vmul.f32 %v335_v24, %v3060_v25  ;;  %v449_v37 = vmul.f32 %v447_v28, %v3060_v25  ;;  %v3080_v38 = vld [vmem:[#allocation2 + $0xa] sm:$0xff] }
  0xee   : > { %306 = vrot.lane.b32.xlu0 %v302_v13, %s2810_s10  ;;  %294 = vrot.lane.b32.xlu1 %v289_v12, %s2809_s9  ;;  %v356_v33 = vmul.f32 %v355_v32, %v3070_v31  ;;  %v468_v36 = vmul.f32 %v467_v35, %v3070_v31  ;;  %v370_v40 = vmul.f32 %v369_v39, %v3070_v31  ;;  %v427_v10 = vstv %s3107_s11  ;;  %s2412_s11 = sld [smem:[#allocation3 + $0xe]] }
  0xef   : > { %v357_v41 = vmul.f32 %v355_v32, %v3080_v38  ;;  %v482_v43 = vmul.f32 %v481_v42, %v3070_v31  ;;  %v469_v44 = vmul.f32 %v467_v35, %v3080_v38  ;;  %v371_v45 = vmul.f32 %v369_v39, %v3080_v38 }
  0xf0   : > { %v483_v46 = vmul.f32 %v481_v42, %v3080_v38  ;;  %v284_v62 = vadd.f32 %v282_v56, %v279_v58  ;;  %v396_v4 = vadd.f32 %v394_v61, %v391_v63  ;;  %v283_v6 = vmul.f32 %v281_v53, %v3037_v11 }
  0xf1   : > { %v349_v21 = vstv %s3112_s12  ;;  %v317_v32 = vmul.f32 %v315_v1, %v3060_v25  ;;  %s2423_s12 = sld [smem:[#allocation3 + $0x32]] }
  0xf2   : > { %418 = vrot.lane.b32.xlu0 %v414_v15, %s2810_s10  ;;  %406 = vrot.lane.b32.xlu1 %v401_v16, %s2809_s9  ;;  %v285_v7 = vadd.f32 %v283_v6, %v279_v58  ;;  %v395_v15 = vmul.f32 %v393_v57, %v3037_v11  ;;  %v350_v11 = vmul.f32 %v349_v21, %v3070_v31 }
  0xf3   : > { %v351_v53 = vmul.f32 %v349_v21, %v3080_v38 }
  0xf4   : > { %v397_v24 = vadd.f32 %v395_v15, %v391_v63 }
  0xf6   : > { %326 = vrot.lane.b32.xlu0 %v322_v19, %s2809_s9  ;;  %308 = vrot.lane.b32.xlu1 %v303_v20, %s2810_s10  ;;  %v428_v20 = vmul.f32 %v427_v10, %v3048_v17 }
  0xfa   : > { %438 = vrot.lane.b32.xlu0 %v434_v22, %s2809_s9  ;;  %420 = vrot.lane.b32.xlu1 %v415_v23, %s2810_s10 }
  0xfe   : > { %340 = vrot.lane.b32.xlu0 %v336_v26, %s2810_s10  ;;  %328 = vrot.lane.b32.xlu1 %v323_v27, %s2809_s9 }
 0x102   : > { %452 = vrot.lane.b32.xlu0 %v448_v29, %s2810_s10  ;;  %440 = vrot.lane.b32.xlu1 %v435_v30, %s2809_s9 }
 0x106   : > { %360 = vrot.lane.b32.xlu0 %v356_v33, %s2809_s9  ;;  %342 = vrot.lane.b32.xlu1 %v337_v34, %s2810_s10  ;;  %v461_v33 = vstv %s3117_s13  ;;  %s2414_s13 = sld [smem:[#allocation3 + $0x10]] }
 0x107   : > { %v463_v61 = vmul.f32 %v461_v33, %v3080_v38 }
 0x10a   : > { %472 = vrot.lane.b32.xlu0 %v468_v36, %s2809_s9  ;;  %454 = vrot.lane.b32.xlu1 %v449_v37, %s2810_s10 }
 0x10e   : > { %374 = vrot.lane.b32.xlu0 %v370_v40, %s2810_s10  ;;  %362 = vrot.lane.b32.xlu1 %v357_v41, %s2809_s9  ;;  %v429_v41 = vmul.f32 %v427_v10, %v3060_v25 }
 0x112   : > { %486 = vrot.lane.b32.xlu0 %v482_v43, %s2810_s10  ;;  %474 = vrot.lane.b32.xlu1 %v469_v44, %s2809_s9  ;;  %v462_v43 = vmul.f32 %v461_v33, %v3070_v31 }
 0x116   : > { %376 = vrot.lane.b32.xlu1 %v371_v45, %s2810_s10 }
 0x11a   : > { %488 = vrot.lane.b32.xlu1 %v483_v46, %s2810_s10 }
 0x15c   : > { %v405_v47 = vpop.permute.xlu0 %404  ;;  %v293_v48 = vpop.permute.xlu1 %292 }
 0x15d   : > { %v298_v0 = vadd.f32 %v293_v48, %v284_v62  ;;  %v410_v8 = vadd.f32 %v405_v47, %v396_v4 }
 0x160   : > { %v307_v49 = vpop.permute.xlu0 %306  ;;  %v295_v50 = vpop.permute.xlu1 %294 }
 0x161   : > { %v312_v5 = vadd.f32 %v307_v49, %v298_v0  ;;  %v299_v18 = vadd.f32 %v295_v50, %v285_v7  ;;  %v385_v50 = vstv %s3122_s25  ;;  %v2405_v7 = vld [vmem:[%s3015_s20 + $0x18] sm:$0xff]  ;;  %s2425_s25 = sld [smem:[#allocation3 + $0x34]] }
 0x163   : > { %v318_v16 = vadd.f32 %v316_v9, %v312_v5  ;;  %v2404_v9 = vld [vmem:[%s3015_s20 + $0x10] sm:$0xff] }
 0x164   : > { %v419_v51 = vpop.permute.xlu0 %418  ;;  %v407_v52 = vpop.permute.xlu1 %406 }
 0x165   : > { %v424_v14 = vadd.f32 %v419_v51, %v410_v8  ;;  %v411_v29 = vadd.f32 %v407_v52, %v397_v24 }
 0x167   : > { %v430_v27 = vadd.f32 %v428_v20, %v424_v14 }
 0x168   : > { %v327_v54 = vpop.permute.xlu0 %326  ;;  %v309_v55 = vpop.permute.xlu1 %308 }
 0x169   : > { %v332_v19 = vadd.f32 %v327_v54, %v318_v16  ;;  %v313_v26 = vadd.f32 %v309_v55, %v299_v18  ;;  %v497_v54 = vstv %s3127_s14  ;;  %s2415_s14 = sld [smem:[#allocation3 + $0x11]] }
 0x16b   : > { %v319_v36 = vadd.f32 %v317_v32, %v313_v26  ;;  %v779_v26 = vstv %s2408_s27  ;;  %v891_v32 = vstv %s2419_s21  ;;  %s2426_s27 = sld [smem:[#allocation3 + $0x35]]  ;;  %s2407_s21 = sld [smem:[#allocation3 + $0x9]] }
 0x16c   : > { %v439_v59 = vpop.permute.xlu0 %438  ;;  %v421_v60 = vpop.permute.xlu1 %420 }
 0x16d   : > { %v444_v30 = vadd.f32 %v439_v59, %v430_v27  ;;  %v425_v17 = vadd.f32 %v421_v60, %v411_v29 }
 0x16f   : > { %v431_v46 = vadd.f32 %v429_v41, %v425_v17 }
 0x170   : > { %v341_v2 = vpop.permute.xlu0 %340  ;;  %v329_v3 = vpop.permute.xlu1 %328 }
 0x171   : > { %v346_v28 = vadd.f32 %v341_v2, %v332_v19  ;;  %v333_v40 = vadd.f32 %v329_v3, %v319_v36  ;;  %v905_v36 = vstv %s2420_s26  ;;  %s2418_s26 = sld [smem:[#allocation3 + $0x2d]] }
 0x173   : > { %v352_v39 = vadd.f32 %v350_v11, %v346_v28 }
 0x174   : > { %v453_v12 = vpop.permute.xlu0 %452  ;;  %v441_v13 = vpop.permute.xlu1 %440 }
 0x175   : > { %v458_v37 = vadd.f32 %v453_v12, %v444_v30  ;;  %v445_v51 = vadd.f32 %v441_v13, %v431_v46 }
 0x177   : > { %v464_v48 = vadd.f32 %v462_v43, %v458_v37 }
 0x178   : > { %v361_v22 = vpop.permute.xlu0 %360  ;;  %v343_v23 = vpop.permute.xlu1 %342 }
 0x179   : > { %v366_v42 = vadd.f32 %v361_v22, %v352_v39  ;;  %v347_v47 = vadd.f32 %v343_v23, %v333_v40  ;;  %v813_v40 = vstv %s2411_s6  ;;  %s2417_s6 = sld [smem:[#allocation8 + $0x5]] }
 0x17b   : > { %v353_v25 = vadd.f32 %v351_v53, %v347_v47 }
 0x17c   : > { %v473_v34 = vpop.permute.xlu0 %472  ;;  %v455_v35 = vpop.permute.xlu1 %454 }
 0x17d   : > { %v478_v52 = vadd.f32 %v473_v34, %v464_v48  ;;  %v459_v57 = vadd.f32 %v455_v35, %v445_v51  ;;  %v793_v34 = vstv %s2409_s28  ;;  %v827_v48 = vstv %s2412_s11  ;;  %s2406_s28 = sld [smem:[#allocation8 + $0x1]]  ;;  %s3219_s11 = sld [smem:[#allocation3 + $0x30]] }
 0x17e   : > { %v939_v51 = vstv %s2423_s12  ;;  %s3223_s12 = sld [smem:[#allocation3 + $0xf]] }
 0x17f   : > { %v465_v63 = vadd.f32 %v463_v61, %v459_v57 }
 0x180   : > { %v375_v44 = vpop.permute.xlu0 %374  ;;  %v363_v45 = vpop.permute.xlu1 %362 }
 0x181   : > { %v380_v49 = vadd.f32 %v375_v44, %v366_v42  ;;  %v367_v31 = vadd.f32 %v363_v45, %v353_v25  ;;  %v925_v45 = vstv %s2422_s8  ;;  %v959_v25 = vstv %s2425_s25  ;;  %s2410_s8 = sld [smem:[#allocation3 + $0xc]]  ;;  %s3233_s25 = sld [smem:[#allocation9 + $0x1]] }
 0x183   : > { %v386_v58 = vmul.f32 %v385_v50, %v380_v49  ;;  %vm383_vm3 = vcmp.ge.f32.partialorder %v380_v49, 0.0 }
 0x184   : > { %v487_v55 = vpop.permute.xlu0 %486  ;;  %v475_v56 = vpop.permute.xlu1 %474 }
 0x185   : > { %v492_v59 = vadd.f32 %v487_v55, %v478_v52  ;;  %v388_v1 = vsel %vm383_vm3, %v380_v49, %v386_v58  ;;  %v479_v4 = vadd.f32 %v475_v56, %v465_v63  ;;  %v847_v55 = vstv %s2414_s13  ;;  %s3228_s13 = sld [smem:[#allocation3 + $0x33]] }
 0x186   : > { %v973_v63 = vstv %s2426_s27  ;;  %s2456_s27 = sld [smem:[#allocation3 + $0x13]] }
 0x187   : > { %vm495_vm4 = vcmp.ge.f32.partialorder %v492_v59, 0.0  ;;  %v498_v60 = vmul.f32 %v497_v54, %v492_v59 }
 0x188   : > { %v377_v62 = vpop.permute.xlu1 %376 }
 0x189   : > { %v381_v0 = vadd.f32 %v377_v62, %v367_v31  ;;  %v500_v2 = vsel %vm495_vm4, %v492_v59, %v498_v60  ;;  %v861_v60 = vstv %s2415_s14  ;;  %s3238_s14 = sld [smem:[#allocation9 + $0x5]]  ;;  %vm748_vm4 = vcmask 130048  }
 0x18a   : > { %v502_v3 = vadd.f32 %v500_v2, %v388_v1 }
 0x18b   : > { %v387_v6 = vmul.f32 %v385_v50, %v381_v0  ;;  %vm384_vm5 = vcmp.ge.f32.partialorder %v381_v0, 0.0 }
 0x18c   : > { %v489_v5 = vpop.permute.xlu1 %488  ;;  %506 = vrot.lane.b32.xlu0 %v502_v3, %s2807_s24 }
 0x18d   : > { %v493_v8 = vadd.f32 %v489_v5, %v479_v4  ;;  %v389_v38 = vsel %vm384_vm5, %v381_v0, %v387_v6 }
 0x18f   : > { %vm496_vm6 = vcmp.ge.f32.partialorder %v493_v8, 0.0  ;;  %v499_v10 = vmul.f32 %v497_v54, %v493_v8 }
 0x190   : > { %756 = vrot.lane.b32.xlu0 %v2404_v9, %s2807_s24 }
 0x191   : > { %v501_v12 = vsel %vm496_vm6, %v493_v8, %v499_v10 }
 0x192   : > { %v503_v13 = vadd.f32 %v501_v12, %v389_v38  ;;  %v773_v38 = vstv %s2407_s21  ;;  %s2467_s21 = sld [smem:[#allocation3 + $0x37]] }
 0x194   : > { %508 = vrot.lane.b32.xlu1 %v503_v13, %s2807_s24 }
 0x198   : > { %758 = vrot.lane.b32.xlu1 %v2405_v7, %s2807_s24 }
 0x1fe   : > { %v507_v14 = vpop.permute.xlu0 %506 }
 0x1ff   : > { %512 = vst.msk [vmem:[#allocation2 + $0x1] sm:$0xff] %vm269_vm2, %v507_v14  ;;  %v771_v14 = vstv %s2406_s28  ;;  %s2457_s28 = sld [smem:[#allocation3 + $0x14]] }
 0x202   : > { %v757_v16 = vpop.permute.xlu0 %756 }
 0x206   : > { %v509_v15 = vpop.permute.xlu1 %508  ;;  %v3143_v18 = vld [vmem:[#allocation2] sm:$0xff] }
 0x207   : > { %513 = vst.msk [vmem:[#allocation2 + $0x9] sm:$0xff] %vm269_vm2, %v509_v15  ;;  %v3145_v19 = vld [vmem:[#allocation2 + $0x1] sm:$0xff] }
 0x20a   : > { %v759_v20 = vpop.permute.xlu1 %758 }
 0x20e   : > { %v3147_v21 = vld [vmem:[#allocation2 + $0x8] sm:$0xff] }
 0x20f   : > { %v3149_v22 = vld [vmem:[#allocation2 + $0x9] sm:$0xff] }
 0x210   : > { %v3151_v23 = vld [vmem:[#allocation2 + $0x2] sm:$0xff]  ;;  %v3153_v24 = vld [vmem:[#allocation2 + $0xa] sm:$0xff] }
 0x211   : > { %762 = vst.msk [vmem:[#allocation2 + $0x1] sm:$0xff] %vm269_vm2, %v757_v16  ;;  %763 = vst.msk [vmem:[#allocation2 + $0x9] sm:$0xff] %vm269_vm2, %v759_v20  ;;  %v885_v16 = vstv %s2418_s26  ;;  %s2468_s26 = sld [smem:[#allocation3 + $0x38]] }
 0x218   : > { %v3157_v27 = vld [vmem:[#allocation2] sm:$0xff]  ;;  %v3159_v28 = vld [vmem:[#allocation2 + $0x8] sm:$0xff] }
 0x219   : > { %v780_v29 = vmul.f32 %v779_v26, %v3157_v27  ;;  %v781_v30 = vmul.f32 %v779_v26, %v3159_v28  ;;  %v892_v11 = vmul.f32 %v891_v32, %v3157_v27  ;;  %v893_v33 = vmul.f32 %v891_v32, %v3159_v28  ;;  %v3175_v41 = vld [vmem:[#allocation2 + $0x1] sm:$0xff]  ;;  %v3178_v42 = vld [vmem:[#allocation2 + $0x9] sm:$0xff] }
 0x21a   : > { %v794_v35 = vmul.f32 %v793_v34, %v3157_v27  ;;  %v795_v17 = vmul.f32 %v793_v34, %v3159_v28  ;;  %v906_v37 = vmul.f32 %v905_v36, %v3157_v27  ;;  %v907_v39 = vmul.f32 %v905_v36, %v3159_v28  ;;  %v3194_v53 = vld [vmem:[#allocation2 + $0x2] sm:$0xff]  ;;  %v3198_v56 = vld [vmem:[#allocation2 + $0xa] sm:$0xff] }
 0x21b   : > { %784 = vrot.lane.b32.xlu0 %v780_v29, %s2809_s9  ;;  %786 = vrot.lane.b32.xlu1 %v781_v30, %s2809_s9  ;;  %v814_v43 = vmul.f32 %v813_v40, %v3175_v41  ;;  %v815_v44 = vmul.f32 %v813_v40, %v3178_v42  ;;  %v926_v46 = vmul.f32 %v925_v45, %v3175_v41 }
 0x21c   : > { %v927_v47 = vmul.f32 %v925_v45, %v3178_v42  ;;  %v828_v49 = vmul.f32 %v827_v48, %v3175_v41  ;;  %v829_v50 = vmul.f32 %v827_v48, %v3178_v42  ;;  %v940_v52 = vmul.f32 %v939_v51, %v3175_v41 }
 0x21d   : > { %v941_v54 = vmul.f32 %v939_v51, %v3178_v42  ;;  %v848_v57 = vmul.f32 %v847_v55, %v3194_v53  ;;  %v849_v58 = vmul.f32 %v847_v55, %v3198_v56  ;;  %v960_v59 = vmul.f32 %v959_v25, %v3194_v53 }
 0x21e   : > { %v961_v31 = vmul.f32 %v959_v25, %v3198_v56  ;;  %v862_v61 = vmul.f32 %v861_v60, %v3194_v53  ;;  %v863_v62 = vmul.f32 %v861_v60, %v3198_v56  ;;  %v974_v0 = vmul.f32 %v973_v63, %v3194_v53 }
 0x21f   : > { %896 = vrot.lane.b32.xlu0 %v892_v11, %s2809_s9  ;;  %898 = vrot.lane.b32.xlu1 %v893_v33, %s2809_s9  ;;  %v975_v1 = vmul.f32 %v973_v63, %v3198_v56  ;;  %v774_v13 = vmul.f32 %v773_v38, %v3157_v27  ;;  %v775_v15 = vmul.f32 %v773_v38, %v3159_v28  ;;  %v883_v11 = vstv %s2417_s6  ;;  %s2459_s6 = sld [smem:[#allocation3 + $0x16]] }
 0x220   : > { %v886_v29 = vmul.f32 %v885_v16, %v3157_v27  ;;  %v887_v33 = vmul.f32 %v885_v16, %v3159_v28  ;;  %v919_v48 = vstv %s3219_s11  ;;  %s2460_s11 = sld [smem:[#allocation3 + $0x17]] }
 0x221   : > { %v776_v26 = vadd.f32 %v774_v13, %v771_v14  ;;  %v777_v32 = vadd.f32 %v775_v15, %v771_v14  ;;  %v921_v25 = vmul.f32 %v919_v48, %v3178_v42 }
 0x223   : > { %798 = vrot.lane.b32.xlu0 %v794_v35, %s2810_s10  ;;  %800 = vrot.lane.b32.xlu1 %v795_v17, %s2810_s10  ;;  %v807_v17 = vstv %s2410_s8  ;;  %s2470_s8 = sld [smem:[#allocation3 + $0x3a]] }
 0x224   : > { %v808_v27 = vmul.f32 %v807_v17, %v3175_v41 }
 0x227   : > { %910 = vrot.lane.b32.xlu0 %v906_v37, %s2810_s10  ;;  %912 = vrot.lane.b32.xlu1 %v907_v39, %s2810_s10  ;;  %v888_v37 = vadd.f32 %v886_v29, %v883_v11  ;;  %v877_v29 = vstv %s3233_s25  ;;  %s2473_s25 = sld [smem:[#allocation3 + $0x3d]] }
 0x22b   : > { %818 = vrot.lane.b32.xlu0 %v814_v43, %s2809_s9  ;;  %820 = vrot.lane.b32.xlu1 %v815_v44, %s2809_s9  ;;  %v889_v43 = vadd.f32 %v887_v33, %v883_v11  ;;  %v989_v33 = vstv %s3238_s14  ;;  %s2463_s14 = sld [smem:[#allocation3 + $0x1a]] }
 0x22f   : > { %930 = vrot.lane.b32.xlu0 %v926_v46, %s2809_s9  ;;  %932 = vrot.lane.b32.xlu1 %v927_v47, %s2809_s9  ;;  %v809_v47 = vmul.f32 %v807_v17, %v3178_v42 }
 0x233   : > { %832 = vrot.lane.b32.xlu0 %v828_v49, %s2810_s10  ;;  %834 = vrot.lane.b32.xlu1 %v829_v50, %s2810_s10 }
 0x237   : > { %944 = vrot.lane.b32.xlu0 %v940_v52, %s2810_s10  ;;  %946 = vrot.lane.b32.xlu1 %v941_v54, %s2810_s10 }
 0x23b   : > { %852 = vrot.lane.b32.xlu0 %v848_v57, %s2809_s9  ;;  %854 = vrot.lane.b32.xlu1 %v849_v58, %s2809_s9  ;;  %v920_v57 = vmul.f32 %v919_v48, %v3175_v41  ;;  %v2453_v48 = vld [vmem:[%s3015_s20 + $0x28] sm:$0xff] }
 0x23f   : > { %964 = vrot.lane.b32.xlu0 %v960_v59, %s2809_s9  ;;  %966 = vrot.lane.b32.xlu1 %v961_v31, %s2809_s9  ;;  %v841_v59 = vstv %s3223_s12  ;;  %s2471_s12 = sld [smem:[#allocation3 + $0x3b]] }
 0x243   : > { %866 = vrot.lane.b32.xlu0 %v862_v61, %s2810_s10  ;;  %868 = vrot.lane.b32.xlu1 %v863_v62, %s2810_s10 }
 0x247   : > { %978 = vrot.lane.b32.xlu0 %v974_v0, %s2810_s10  ;;  %980 = vrot.lane.b32.xlu1 %v975_v1, %s2810_s10 }
 0x28d   : > { %v785_v2 = vpop.permute.xlu0 %784  ;;  %v787_v3 = vpop.permute.xlu1 %786 }
 0x28e   : > { %v790_v34 = vadd.f32 %v785_v2, %v776_v26  ;;  %v791_v35 = vadd.f32 %v787_v3, %v777_v32  ;;  %v842_v2 = vmul.f32 %v841_v59, %v3194_v53 }
 0x291   : > { %v897_v4 = vpop.permute.xlu0 %896  ;;  %v899_v5 = vpop.permute.xlu1 %898 }
 0x292   : > { %v902_v45 = vadd.f32 %v897_v4, %v888_v37  ;;  %v903_v46 = vadd.f32 %v899_v5, %v889_v43  ;;  %v843_v4 = vmul.f32 %v841_v59, %v3198_v56  ;;  %v953_v5 = vstv %s3228_s13  ;;  %s2462_s13 = sld [smem:[#allocation3 + $0x19]] }
 0x293   : > { %v1271_v59 = vstv %s2456_s27  ;;  %s2474_s27 = sld [smem:[#allocation3 + $0x3e]] }
 0x295   : > { %v799_v6 = vpop.permute.xlu0 %798  ;;  %v801_v8 = vpop.permute.xlu1 %800 }
 0x296   : > { %v804_v39 = vadd.f32 %v799_v6, %v790_v34  ;;  %v805_v44 = vadd.f32 %v801_v8, %v791_v35 }
 0x298   : > { %v810_v50 = vadd.f32 %v808_v27, %v804_v39  ;;  %v811_v54 = vadd.f32 %v809_v47, %v805_v44  ;;  %v2452_v47 = vld [vmem:[%s3015_s20 + $0x20] sm:$0xff] }
 0x299   : > { %v911_v9 = vpop.permute.xlu0 %910  ;;  %v913_v10 = vpop.permute.xlu1 %912 }
 0x29a   : > { %v916_v49 = vadd.f32 %v911_v9, %v902_v45  ;;  %v917_v52 = vadd.f32 %v913_v10, %v903_v46 }
 0x29c   : > { %v922_v60 = vadd.f32 %v920_v57, %v916_v49  ;;  %v923_v63 = vadd.f32 %v921_v25, %v917_v52 }
 0x29d   : > { %v819_v12 = vpop.permute.xlu0 %818  ;;  %v821_v7 = vpop.permute.xlu1 %820 }
 0x29e   : > { %v824_v55 = vadd.f32 %v819_v12, %v810_v50  ;;  %v825_v58 = vadd.f32 %v821_v7, %v811_v54  ;;  %v954_v12 = vmul.f32 %v953_v5, %v3194_v53  ;;  %v955_v7 = vmul.f32 %v953_v5, %v3198_v56 }
 0x29f   : > { %v1397_v5 = vstv %s2468_s26  ;;  %s2454_s26 = sld [smem:[#allocation8 + $0x2]] }
 0x2a1   : > { %v931_v20 = vpop.permute.xlu0 %930  ;;  %v933_v30 = vpop.permute.xlu1 %932 }
 0x2a2   : > { %v936_v1 = vadd.f32 %v931_v20, %v922_v60  ;;  %v937_v3 = vadd.f32 %v933_v30, %v923_v63  ;;  %v1383_v63 = vstv %s2467_s21  ;;  %s2384_s21 = sld [smem:[#allocation3 + $0x49]] }
 0x2a5   : > { %v833_v36 = vpop.permute.xlu0 %832  ;;  %v835_v40 = vpop.permute.xlu1 %834 }
 0x2a6   : > { %v838_v61 = vadd.f32 %v833_v36, %v824_v55  ;;  %v839_v0 = vadd.f32 %v835_v40, %v825_v58 }
 0x2a8   : > { %v844_v6 = vadd.f32 %v842_v2, %v838_v61  ;;  %v845_v10 = vadd.f32 %v843_v4, %v839_v0  ;;  %v1285_v2 = vstv %s2457_s28  ;;  %s2455_s28 = sld [smem:[#allocation3 + $0x12]] }
 0x2a9   : > { %v945_v28 = vpop.permute.xlu0 %944  ;;  %v947_v51 = vpop.permute.xlu1 %946 }
 0x2aa   : > { %v950_v42 = vadd.f32 %v945_v28, %v936_v1  ;;  %v951_v9 = vadd.f32 %v947_v51, %v937_v3 }
 0x2ac   : > { %v956_v15 = vadd.f32 %v954_v12, %v950_v42  ;;  %v957_v26 = vadd.f32 %v955_v7, %v951_v9  ;;  %v1417_v12 = vstv %s2470_s8  ;;  %s2465_s8 = sld [smem:[#allocation8 + $0x6]] }
 0x2ad   : > { %v853_v31 = vpop.permute.xlu0 %852  ;;  %v855_v62 = vpop.permute.xlu1 %854 }
 0x2ae   : > { %v858_v38 = vadd.f32 %v853_v31, %v844_v6  ;;  %v859_v13 = vadd.f32 %v855_v62, %v845_v10 }
 0x2b1   : > { %v965_v41 = vpop.permute.xlu0 %964  ;;  %v967_v8 = vpop.permute.xlu1 %966 }
 0x2b2   : > { %v970_v32 = vadd.f32 %v965_v41, %v956_v15  ;;  %v971_v11 = vadd.f32 %v967_v8, %v957_v26  ;;  %v1305_v8 = vstv %s2459_s6  ;;  %s2466_s6 = sld [smem:[#allocation3 + $0x36]] }
 0x2b5   : > { %v867_v14 = vpop.permute.xlu0 %866  ;;  %v869_v16 = vpop.permute.xlu1 %868 }
 0x2b6   : > { %v872_v20 = vadd.f32 %v867_v14, %v858_v38  ;;  %v873_v30 = vadd.f32 %v869_v16, %v859_v13  ;;  %v1319_v14 = vstv %s2460_s11  ;;  %s2458_s11 = sld [smem:[#allocation3 + $0x15]] }
 0x2b8   : > { %v878_v35 = vmul.f32 %v877_v29, %v872_v20  ;;  %v879_v37 = vmul.f32 %v877_v29, %v873_v30  ;;  %vm875_vm7 = vcmp.ge.f32.partialorder %v872_v20, 0.0  ;;  %vm876_vm8 = vcmp.ge.f32.partialorder %v873_v30, 0.0 }
 0x2b9   : > { %v979_v34 = vpop.permute.xlu0 %978  ;;  %v981_v17 = vpop.permute.xlu1 %980 }
 0x2ba   : > { %v984_v36 = vadd.f32 %v979_v34, %v970_v32  ;;  %v985_v53 = vadd.f32 %v981_v17, %v971_v11  ;;  %v880_v40 = vsel %vm875_vm7, %v872_v20, %v878_v35  ;;  %v881_v44 = vsel %vm876_vm8, %v873_v30, %v879_v37 }
 0x2bb   : > { %v1431_v20 = vstv %s2471_s12  ;;  %v1339_v32 = vstv %s2462_s13  ;;  %v1451_v35 = vstv %s2473_s25  ;;  %v1353_v37 = vstv %s2463_s14  ;;  %s3336_s12 = sld [smem:[#allocation3 + $0x39]]  ;;  %s3340_s13 = sld [smem:[#allocation3 + $0x18]] }
 0x2bc   : > { %vm987_vm9 = vcmp.ge.f32.partialorder %v984_v36, 0.0  ;;  %v990_v56 = vmul.f32 %v989_v33, %v984_v36  ;;  %vm988_vm10 = vcmp.ge.f32.partialorder %v985_v53, 0.0  ;;  %v991_v39 = vmul.f32 %v989_v33, %v985_v53  ;;  %s3345_s25 = sld [smem:[#allocation3 + $0x3c]]  ;;  %s3350_s14 = sld [smem:[#allocation9 + $0x2]] }
 0x2be   : > { %v992_v43 = vsel %vm987_vm9, %v984_v36, %v990_v56  ;;  %v993_v45 = vsel %vm988_vm10, %v985_v53, %v991_v39  ;;  %v1465_v39 = vstv %s2474_s27  ;;  %s3355_s27 = sld [smem:[#allocation9 + $0x6]] }
 0x2bf   : > { %v994_v27 = vadd.f32 %v992_v43, %v880_v40  ;;  %v995_v46 = vadd.f32 %v993_v45, %v881_v44  ;;  %v2501_v44 = vld [vmem:[%s3015_s20 + $0x38] sm:$0xff]  ;;  %v2500_v45 = vld [vmem:[%s3015_s20 + $0x30] sm:$0xff] }
 0x2c1   : > { %998 = vrot.lane.b32.xlu0 %v994_v27, %s2807_s24  ;;  %1000 = vrot.lane.b32.xlu1 %v995_v46, %s2807_s24  ;;  %v529_v27 = vstv %s2384_s21  ;;  %s2385_s21 = sld [smem:[#allocation3 + $0x4a]] }
 0x2c2   : > { %v531_v46 = vmul.f32 %v529_v27, %v3147_v21 }
 0x2c5   : > { %1248 = vrot.lane.b32.xlu0 %v2452_v47, %s2807_s24  ;;  %1250 = vrot.lane.b32.xlu1 %v2453_v48, %s2807_s24  ;;  %v530_v47 = vmul.f32 %v529_v27, %v3143_v18 }
 0x333   : > { %v999_v28 = vpop.permute.xlu0 %998  ;;  %v1001_v49 = vpop.permute.xlu1 %1000 }
 0x334   : > { %1004 = vst.msk [vmem:[#allocation2 + $0x1] sm:$0xff] %vm269_vm2, %v999_v28  ;;  %1005 = vst.msk [vmem:[#allocation2 + $0x9] sm:$0xff] %vm269_vm2, %v1001_v49 }
 0x337   : > { %v1251_v52 = vpop.permute.xlu1 %1250  ;;  %v1249_v54 = vpop.permute.xlu0 %1248 }
 0x33b   : > { %v3252_v50 = vld [vmem:[#allocation2] sm:$0xff]  ;;  %v3256_v55 = vld [vmem:[#allocation2 + $0x9] sm:$0xff] }
 0x33c   : > { %v3254_v51 = vld [vmem:[#allocation2 + $0x1] sm:$0xff]  ;;  %v3258_v57 = vld [vmem:[#allocation2 + $0xa] sm:$0xff] }
 0x33d   : > { %v3260_v58 = vld [vmem:[#allocation2 + $0x8] sm:$0xff] }
 0x33e   : > { %v3262_v25 = vld [vmem:[#allocation2 + $0x2] sm:$0xff] }
 0x33f   : > { %1255 = vst.msk [vmem:[#allocation2 + $0x9] sm:$0xff] %vm269_vm2, %v1251_v52  ;;  %1254 = vst.msk [vmem:[#allocation2 + $0x1] sm:$0xff] %vm269_vm2, %v1249_v54 }
 0x346   : > { %v3266_v31 = vld [vmem:[#allocation2 + $0x8] sm:$0xff]  ;;  %v3268_v60 = vld [vmem:[#allocation2] sm:$0xff] }
 0x347   : > { %v1273_v61 = vmul.f32 %v1271_v59, %v3266_v31  ;;  %v1272_v62 = vmul.f32 %v1271_v59, %v3268_v60  ;;  %v1385_v0 = vmul.f32 %v1383_v63, %v3266_v31  ;;  %v1384_v1 = vmul.f32 %v1383_v63, %v3268_v60  ;;  %v3284_v6 = vld [vmem:[#allocation2 + $0x9] sm:$0xff]  ;;  %v3286_v9 = vld [vmem:[#allocation2 + $0x1] sm:$0xff] }
 0x348   : > { %v1287_v3 = vmul.f32 %v1285_v2, %v3266_v31  ;;  %v1286_v4 = vmul.f32 %v1285_v2, %v3268_v60  ;;  %v1399_v41 = vmul.f32 %v1397_v5, %v3266_v31  ;;  %v1398_v42 = vmul.f32 %v1397_v5, %v3268_v60  ;;  %v3304_v30 = vld [vmem:[#allocation2 + $0xa] sm:$0xff]  ;;  %v3306_v11 = vld [vmem:[#allocation2 + $0x2] sm:$0xff] }
 0x349   : > { %1278 = vrot.lane.b32.xlu1 %v1273_v61, %s2809_s9  ;;  %1276 = vrot.lane.b32.xlu0 %v1272_v62, %s2809_s9  ;;  %v1307_v10 = vmul.f32 %v1305_v8, %v3284_v6  ;;  %v1306_v38 = vmul.f32 %v1305_v8, %v3286_v9  ;;  %v1419_v13 = vmul.f32 %v1417_v12, %v3284_v6  ;;  %v1265_v63 = vstv %s2455_s28  ;;  %s2387_s28 = sld [smem:[#allocation3 + $0x4c]] }
 0x34a   : > { %v1418_v7 = vmul.f32 %v1417_v12, %v3286_v9  ;;  %v1321_v15 = vmul.f32 %v1319_v14, %v3284_v6  ;;  %v1320_v16 = vmul.f32 %v1319_v14, %v3286_v9  ;;  %v1433_v26 = vmul.f32 %v1431_v20, %v3284_v6 }
 0x34b   : > { %v1432_v29 = vmul.f32 %v1431_v20, %v3286_v9  ;;  %v1341_v33 = vmul.f32 %v1339_v32, %v3304_v30  ;;  %v1340_v34 = vmul.f32 %v1339_v32, %v3306_v11  ;;  %v1453_v17 = vmul.f32 %v1451_v35, %v3304_v30 }
 0x34c   : > { %v1452_v36 = vmul.f32 %v1451_v35, %v3306_v11  ;;  %v1355_v53 = vmul.f32 %v1353_v37, %v3304_v30  ;;  %v1354_v56 = vmul.f32 %v1353_v37, %v3306_v11  ;;  %v1467_v40 = vmul.f32 %v1465_v39, %v3304_v30 }
 0x34d   : > { %1390 = vrot.lane.b32.xlu1 %v1385_v0, %s2809_s9  ;;  %1388 = vrot.lane.b32.xlu0 %v1384_v1, %s2809_s9  ;;  %v1466_v43 = vmul.f32 %v1465_v39, %v3306_v11  ;;  %v1267_v2 = vmul.f32 %v1265_v63, %v3266_v31  ;;  %v1377_v5 = vstv %s2466_s6  ;;  %s2390_s6 = sld [smem:[#allocation3 + $0x4f]] }
 0x34e   : > { %v1378_v12 = vmul.f32 %v1377_v5, %v3268_v60 }
 0x351   : > { %1292 = vrot.lane.b32.xlu1 %v1287_v3, %s2810_s10  ;;  %1290 = vrot.lane.b32.xlu0 %v1286_v4, %s2810_s10  ;;  %v1266_v3 = vmul.f32 %v1265_v63, %v3268_v60  ;;  %v1263_v4 = vstv %s2454_s26  ;;  %s2388_s26 = sld [smem:[#allocation3 + $0x4d]] }
 0x352   : > { %v1269_v8 = vadd.f32 %v1267_v2, %v1263_v4 }
 0x355   : > { %1404 = vrot.lane.b32.xlu1 %v1399_v41, %s2810_s10  ;;  %1402 = vrot.lane.b32.xlu0 %v1398_v42, %s2810_s10 }
 0x359   : > { %1312 = vrot.lane.b32.xlu1 %v1307_v10, %s2809_s9  ;;  %1310 = vrot.lane.b32.xlu0 %v1306_v38, %s2809_s9  ;;  %v1268_v10 = vadd.f32 %v1266_v3, %v1263_v4  ;;  %v1379_v38 = vmul.f32 %v1377_v5, %v3266_v31 }
 0x35d   : > { %1424 = vrot.lane.b32.xlu1 %v1419_v13, %s2809_s9  ;;  %1422 = vrot.lane.b32.xlu0 %v1418_v7, %s2809_s9  ;;  %v1375_v13 = vstv %s2465_s8  ;;  %s2391_s8 = sld [smem:[#allocation3 + $0x50]] }
 0x361   : > { %1326 = vrot.lane.b32.xlu1 %v1321_v15, %s2810_s10  ;;  %1324 = vrot.lane.b32.xlu0 %v1320_v16, %s2810_s10  ;;  %v1299_v15 = vstv %s2458_s11  ;;  %s2395_s11 = sld [smem:[#allocation3 + $0x6d]] }
 0x362   : > { %v1301_v31 = vmul.f32 %v1299_v15, %v3284_v6  ;;  %v1300_v60 = vmul.f32 %v1299_v15, %v3286_v9  ;;  %v1369_v15 = vstv %s3350_s14  ;;  %s2401_s14 = sld [smem:[#allocation3 + $0x73]] }
 0x365   : > { %1438 = vrot.lane.b32.xlu1 %v1433_v26, %s2810_s10  ;;  %1436 = vrot.lane.b32.xlu0 %v1432_v29, %s2810_s10  ;;  %v1381_v26 = vadd.f32 %v1379_v38, %v1375_v13  ;;  %v1380_v29 = vadd.f32 %v1378_v12, %v1375_v13 }
 0x369   : > { %1346 = vrot.lane.b32.xlu1 %v1341_v33, %s2809_s9  ;;  %1344 = vrot.lane.b32.xlu0 %v1340_v34, %s2809_s9 }
 0x36d   : > { %1458 = vrot.lane.b32.xlu1 %v1453_v17, %s2809_s9  ;;  %1456 = vrot.lane.b32.xlu0 %v1452_v36, %s2809_s9  ;;  %v1411_v17 = vstv %s3336_s12  ;;  %s2396_s12 = sld [smem:[#allocation3 + $0x6e]] }
 0x36e   : > { %v1412_v27 = vmul.f32 %v1411_v17, %v3286_v9 }
 0x371   : > { %1360 = vrot.lane.b32.xlu1 %v1355_v53, %s2810_s10  ;;  %1358 = vrot.lane.b32.xlu0 %v1354_v56, %s2810_s10 }
 0x375   : > { %1472 = vrot.lane.b32.xlu1 %v1467_v40, %s2810_s10  ;;  %1470 = vrot.lane.b32.xlu0 %v1466_v43, %s2810_s10 }
 0x379   : > { %1742 = vrot.lane.b32.xlu1 %v2501_v44, %s2807_s24  ;;  %1740 = vrot.lane.b32.xlu0 %v2500_v45, %s2807_s24  ;;  %v1413_v45 = vmul.f32 %v1411_v17, %v3284_v6 }
 0x37d   : > { %536 = vrot.lane.b32.xlu1 %v531_v46, %s2809_s9  ;;  %534 = vrot.lane.b32.xlu0 %v530_v47, %s2809_s9  ;;  %v1333_v46 = vstv %s3340_s13  ;;  %s2398_s13 = sld [smem:[#allocation3 + $0x70]] }
 0x37e   : > { %v1334_v63 = vmul.f32 %v1333_v46, %v3306_v11 }
 0x3bb   : > { %v1279_v48 = vpop.permute.xlu1 %1278  ;;  %v1277_v28 = vpop.permute.xlu0 %1276 }
 0x3bc   : > { %v1283_v7 = vadd.f32 %v1279_v48, %v1269_v8  ;;  %v1282_v14 = vadd.f32 %v1277_v28, %v1268_v10 }
 0x3bf   : > { %v1391_v49 = vpop.permute.xlu1 %1390  ;;  %v1389_v52 = vpop.permute.xlu0 %1388 }
 0x3c0   : > { %v1395_v34 = vadd.f32 %v1391_v49, %v1381_v26  ;;  %v1394_v35 = vadd.f32 %v1389_v52, %v1380_v29  ;;  %v1481_v26 = vstv %s3355_s27  ;;  %s2402_s27 = sld [smem:[#allocation3 + $0x74]] }
 0x3c3   : > { %v1293_v54 = vpop.permute.xlu1 %1292  ;;  %v1291_v59 = vpop.permute.xlu0 %1290 }
 0x3c4   : > { %v1297_v32 = vadd.f32 %v1293_v54, %v1283_v7  ;;  %v1296_v33 = vadd.f32 %v1291_v59, %v1282_v14 }
 0x3c6   : > { %v1303_v39 = vadd.f32 %v1301_v31, %v1297_v32  ;;  %v1302_v40 = vadd.f32 %v1300_v60, %v1296_v33 }
 0x3c7   : > { %v1405_v61 = vpop.permute.xlu1 %1404  ;;  %v1403_v62 = vpop.permute.xlu0 %1402 }
 0x3c8   : > { %v1409_v53 = vadd.f32 %v1405_v61, %v1395_v34  ;;  %v1408_v56 = vadd.f32 %v1403_v62, %v1394_v35  ;;  %v1335_v62 = vmul.f32 %v1333_v46, %v3304_v30  ;;  %v577_v46 = vstv %s2388_s26  ;;  %s3409_s26 = sld [smem:[#allocation3 + $0x1c]] }
 0x3ca   : > { %v1415_v28 = vadd.f32 %v1413_v45, %v1409_v53  ;;  %v1414_v49 = vadd.f32 %v1412_v27, %v1408_v56 }
 0x3cb   : > { %v1313_v0 = vpop.permute.xlu1 %1312  ;;  %v1311_v1 = vpop.permute.xlu0 %1310 }
 0x3cc   : > { %v1317_v43 = vadd.f32 %v1313_v0, %v1303_v39  ;;  %v1316_v44 = vadd.f32 %v1311_v1, %v1302_v40  ;;  %v1445_v0 = vstv %s3345_s25  ;;  %v543_v39 = vstv %s2385_s21  ;;  %s2399_s25 = sld [smem:[#allocation3 + $0x71]]  ;;  %s2383_s21 = sld [smem:[#allocation3 + $0x48]] }
 0x3cd   : > { %v545_v40 = vmul.f32 %v543_v39, %v3147_v21 }
 0x3cf   : > { %v1425_v41 = vpop.permute.xlu1 %1424  ;;  %v1423_v42 = vpop.permute.xlu0 %1422 }
 0x3d0   : > { %v1429_v59 = vadd.f32 %v1425_v41, %v1415_v28  ;;  %v1428_v61 = vadd.f32 %v1423_v42, %v1414_v49  ;;  %v1447_v41 = vmul.f32 %v1445_v0, %v3304_v30  ;;  %v1446_v42 = vmul.f32 %v1445_v0, %v3306_v11 }
 0x3d1   : > { %v597_v28 = vstv %s2390_s6  ;;  %s3429_s6 = sld [smem:[#allocation3 + $0x6c]] }
 0x3d2   : > { %v599_v49 = vmul.f32 %v597_v28, %v3153_v24 }
 0x3d3   : > { %v1327_v16 = vpop.permute.xlu1 %1326  ;;  %v1325_v20 = vpop.permute.xlu0 %1324 }
 0x3d4   : > { %v1331_v52 = vadd.f32 %v1327_v16, %v1317_v43  ;;  %v1330_v54 = vadd.f32 %v1325_v20, %v1316_v44  ;;  %v544_v43 = vmul.f32 %v543_v39, %v3143_v18  ;;  %v563_v44 = vstv %s2387_s28  ;;  %s2382_s28 = sld [smem:[#allocation8 + $0x8]] }
 0x3d5   : > { %v565_v45 = vmul.f32 %v563_v44, %v3149_v22  ;;  %v564_v27 = vmul.f32 %v563_v44, %v3145_v19  ;;  %v1763_v44 = vstv %s3409_s26  ;;  %s3488_s26 = sld [smem:[#allocation3 + $0x72]] }
 0x3d6   : > { %v1337_v3 = vadd.f32 %v1335_v62, %v1331_v52  ;;  %v1336_v4 = vadd.f32 %v1334_v63, %v1330_v54  ;;  %v598_v52 = vmul.f32 %v597_v28, %v3151_v23  ;;  %v611_v54 = vstv %s2391_s8  ;;  %s3431_s8 = sld [smem:[#allocation3 + $0x40]] }
 0x3d7   : > { %v1439_v36 = vpop.permute.xlu1 %1438  ;;  %v1437_v37 = vpop.permute.xlu0 %1436  ;;  %v641_v62 = vstv %s2395_s11  ;;  %s3433_s11 = sld [smem:[#allocation3 + $0x4b]] }
 0x3d8   : > { %v1443_v9 = vadd.f32 %v1439_v36, %v1429_v59  ;;  %v1442_v2 = vadd.f32 %v1437_v37, %v1428_v61  ;;  %v613_v59 = vmul.f32 %v611_v54, %v3153_v24  ;;  %v612_v61 = vmul.f32 %v611_v54, %v3151_v23 }
 0x3d9   : > { %v643_v63 = vmul.f32 %v641_v62, %v3147_v21  ;;  %v642_v0 = vmul.f32 %v641_v62, %v3143_v18  ;;  %v635_v54 = vstv %s3429_s6  ;;  %s3501_s6 = sld [smem:[#allocation3 + $0x20]] }
 0x3da   : > { %v1449_v12 = vadd.f32 %v1447_v41, %v1443_v9  ;;  %v1448_v13 = vadd.f32 %v1446_v42, %v1442_v2  ;;  %v675_v2 = vstv %s2398_s13  ;;  %v709_v42 = vstv %s2401_s14  ;;  %s3444_s13 = sld [smem:[#allocation3 + $0x1d]]  ;;  %s3460_s14 = sld [smem:[#allocation3 + $0x41]] }
 0x3db   : > { %v1347_v47 = vpop.permute.xlu1 %1346  ;;  %v1345_v48 = vpop.permute.xlu0 %1344 }
 0x3dc   : > { %v1351_v5 = vadd.f32 %v1347_v47, %v1337_v3  ;;  %v1350_v8 = vadd.f32 %v1345_v48, %v1336_v4  ;;  %v579_v47 = vmul.f32 %v577_v46, %v3149_v22  ;;  %v578_v48 = vmul.f32 %v577_v46, %v3145_v19 }
 0x3dd   : > { %v677_v3 = vmul.f32 %v675_v2, %v3149_v22  ;;  %v676_v4 = vmul.f32 %v675_v2, %v3145_v19  ;;  %v1875_v62 = vstv %s3431_s8  ;;  %v637_v2 = vmul.f32 %v635_v54, %v3147_v21  ;;  %s3513_s8 = sld [smem:[#allocation9 + $0x8]] }
 0x3df   : > { %v1459_v1 = vpop.permute.xlu1 %1458  ;;  %v1457_v6 = vpop.permute.xlu0 %1456 }
 0x3e0   : > { %v1463_v16 = vadd.f32 %v1459_v1, %v1449_v12  ;;  %v1462_v20 = vadd.f32 %v1457_v6, %v1448_v13  ;;  %v655_v1 = vstv %s2396_s12  ;;  %v723_v12 = vstv %s2402_s27  ;;  %s3441_s12 = sld [smem:[#allocation8 + $0xc]]  ;;  %s3471_s27 = sld [smem:[#allocation3 + $0x4e]] }
 0x3e1   : > { %v657_v6 = vmul.f32 %v655_v1, %v3147_v21  ;;  %v656_v9 = vmul.f32 %v655_v1, %v3143_v18  ;;  %v725_v13 = vmul.f32 %v723_v12, %v3153_v24 }
 0x3e3   : > { %v1361_v10 = vpop.permute.xlu1 %1360  ;;  %v1359_v38 = vpop.permute.xlu0 %1358 }
 0x3e4   : > { %v1365_v7 = vadd.f32 %v1361_v10, %v1351_v5  ;;  %v1364_v14 = vadd.f32 %v1359_v38, %v1350_v8  ;;  %v689_v5 = vstv %s2399_s25  ;;  %v711_v10 = vmul.f32 %v709_v42, %v3153_v24  ;;  %s3450_s25 = sld [smem:[#allocation3 + $0x6f]] }
 0x3e5   : > { %v691_v8 = vmul.f32 %v689_v5, %v3149_v22  ;;  %v690_v41 = vmul.f32 %v689_v5, %v3145_v19  ;;  %v710_v38 = vmul.f32 %v709_v42, %v3151_v23 }
 0x3e6   : > { %v1371_v33 = vmul.f32 %v1369_v15, %v1365_v7  ;;  %v1370_v34 = vmul.f32 %v1369_v15, %v1364_v14  ;;  %vm1368_vm11 = vcmp.ge.f32.partialorder %v1365_v7, 0.0  ;;  %vm1367_vm12 = vcmp.ge.f32.partialorder %v1364_v14, 0.0 }
 0x3e7   : > { %v1473_v29 = vpop.permute.xlu1 %1472  ;;  %v1471_v32 = vpop.permute.xlu0 %1470 }
 0x3e8   : > { %v1477_v35 = vadd.f32 %v1473_v29, %v1463_v16  ;;  %v1476_v31 = vadd.f32 %v1471_v32, %v1462_v20  ;;  %v1373_v60 = vsel %vm1368_vm11, %v1365_v7, %v1371_v33  ;;  %v1372_v36 = vsel %vm1367_vm12, %v1364_v14, %v1370_v34 }
 0x3e9   : > { %v724_v7 = vmul.f32 %v723_v12, %v3151_v23 }
 0x3ea   : > { %vm1480_vm13 = vcmp.ge.f32.partialorder %v1477_v35, 0.0  ;;  %v1483_v30 = vmul.f32 %v1481_v26, %v1477_v35  ;;  %vm1479_vm14 = vcmp.ge.f32.partialorder %v1476_v31, 0.0  ;;  %v1482_v11 = vmul.f32 %v1481_v26, %v1476_v31 }
 0x3eb   : > { %v1743_v14 = vpop.permute.xlu1 %1742  ;;  %v1741_v15 = vpop.permute.xlu0 %1740 }
 0x3ec   : > { %v1485_v17 = vsel %vm1480_vm13, %v1477_v35, %v1483_v30  ;;  %v1484_v37 = vsel %vm1479_vm14, %v1476_v31, %v1482_v11 }
 0x3ed   : > { %v1487_v53 = vadd.f32 %v1485_v17, %v1373_v60  ;;  %v1486_v56 = vadd.f32 %v1484_v37, %v1372_v36  ;;  %v523_v37 = vstv %s2383_s21  ;;  %s3476_s21 = sld [smem:[#allocation3 + $0x1f]] }
 0x3ee   : > { %v525_v39 = vmul.f32 %v523_v37, %v3147_v21 }
 0x3ef   : > { %1492 = vrot.lane.b32.xlu1 %v1487_v53, %s2807_s24  ;;  %1490 = vrot.lane.b32.xlu0 %v1486_v56, %s2807_s24  ;;  %v537_v16 = vpop.permute.xlu1 %536  ;;  %v535_v20 = vpop.permute.xlu0 %534 }
 0x3f3   : > { %550 = vrot.lane.b32.xlu1 %v545_v40, %s2810_s10  ;;  %548 = vrot.lane.b32.xlu0 %v544_v43, %s2810_s10  ;;  %v524_v40 = vmul.f32 %v523_v37, %v3143_v18  ;;  %v521_v43 = vstv %s2382_s28  ;;  %s3486_s28 = sld [smem:[#allocation3 + $0x43]] }
 0x3f4   : > { %v527_v46 = vadd.f32 %v525_v39, %v521_v43 }
 0x3f7   : > { %570 = vrot.lane.b32.xlu1 %v565_v45, %s2809_s9  ;;  %568 = vrot.lane.b32.xlu0 %v564_v27, %s2809_s9 }
 0x3fb   : > { %584 = vrot.lane.b32.xlu1 %v579_v47, %s2810_s10  ;;  %582 = vrot.lane.b32.xlu0 %v578_v48, %s2810_s10  ;;  %v526_v47 = vadd.f32 %v524_v40, %v521_v43 }
 0x3ff   : > { %604 = vrot.lane.b32.xlu1 %v599_v49, %s2809_s9  ;;  %602 = vrot.lane.b32.xlu0 %v598_v52, %s2809_s9 }
 0x403   : > { %618 = vrot.lane.b32.xlu1 %v613_v59, %s2810_s10  ;;  %616 = vrot.lane.b32.xlu0 %v612_v61, %s2810_s10  ;;  %v541_v59 = vadd.f32 %v537_v16, %v527_v46  ;;  %v540_v61 = vadd.f32 %v535_v20, %v526_v47  ;;  %v591_v47 = vstv %s3471_s27  ;;  %s2522_s27 = sld [smem:[#allocation3 + $0x47]] }
 0x407   : > { %648 = vrot.lane.b32.xlu1 %v643_v63, %s2809_s9  ;;  %646 = vrot.lane.b32.xlu0 %v642_v0, %s2809_s9  ;;  %v557_v63 = vstv %s3433_s11  ;;  %s3519_s11 = sld [smem:[#allocation3 + $0x44]] }
 0x408   : > { %v558_v42 = vmul.f32 %v557_v63, %v3145_v19 }
 0x40b   : > { %662 = vrot.lane.b32.xlu1 %v657_v6, %s2810_s10  ;;  %660 = vrot.lane.b32.xlu0 %v656_v9, %s2810_s10 }
 0x40f   : > { %682 = vrot.lane.b32.xlu1 %v677_v3, %s2809_s9  ;;  %680 = vrot.lane.b32.xlu0 %v676_v4, %s2809_s9  ;;  %v636_v3 = vmul.f32 %v635_v54, %v3143_v18  ;;  %v1797_v54 = vstv %s3476_s21  ;;  %s3565_s21 = scalar_lea.vmem [#allocation12], %s2361_s29  ;;  %s2431_s29 = sld [smem:[#allocation3 + $0x53]] }
 0x413   : > { %696 = vrot.lane.b32.xlu1 %v691_v8, %s2810_s10  ;;  %694 = vrot.lane.b32.xlu0 %v690_v41, %s2810_s10  ;;  %v633_v8 = vstv %s3441_s12  ;;  %v559_v41 = vmul.f32 %v557_v63, %v3149_v22  ;;  %s3523_s12 = sld [smem:[#allocation9 + $0xc]] }
 0x417   : > { %716 = vrot.lane.b32.xlu1 %v711_v10, %s2809_s9  ;;  %714 = vrot.lane.b32.xlu0 %v710_v38, %s2809_s9  ;;  %v1777_v10 = vstv %s3444_s13  ;;  %v669_v38 = vstv %s3450_s25  ;;  %s3525_s13 = sld [smem:[#allocation3 + $0x22]]  ;;  %s3542_s25 = sld [smem:[#allocation3 + $0x46]] }
 0x418   : > { %v671_v37 = vmul.f32 %v669_v38, %v3149_v22  ;;  %v670_v39 = vmul.f32 %v669_v38, %v3145_v19 }
 0x41b   : > { %730 = vrot.lane.b32.xlu1 %v725_v13, %s2810_s10  ;;  %728 = vrot.lane.b32.xlu0 %v724_v7, %s2810_s10  ;;  %v639_v7 = vadd.f32 %v637_v2, %v633_v8  ;;  %v1909_v2 = vstv %s3486_s28  ;;  %s2430_s28 = sld [smem:[#allocation3 + $0x52]] }
 0x461   : > { %v1493_v26 = vpop.permute.xlu1 %1492  ;;  %v1491_v29 = vpop.permute.xlu0 %1490 }
 0x462   : > { %1497 = vst.msk [vmem:[#allocation2 + $0x9] sm:$0xff] %vm269_vm2, %v1493_v26  ;;  %1496 = vst.msk [vmem:[#allocation2 + $0x1] sm:$0xff] %vm269_vm2, %v1491_v29  ;;  %v1889_v29 = vstv %s3460_s14  ;;  %s2511_s14 = sld [smem:[#allocation3 + $0x23]] }
 0x465   : > { %v551_v32 = vpop.permute.xlu1 %550  ;;  %v549_v33 = vpop.permute.xlu0 %548 }
 0x466   : > { %v555_v6 = vadd.f32 %v551_v32, %v541_v59  ;;  %v554_v9 = vadd.f32 %v549_v33, %v540_v61 }
 0x468   : > { %v561_v12 = vadd.f32 %v559_v41, %v555_v6  ;;  %v560_v13 = vadd.f32 %v558_v42, %v554_v9  ;;  %v593_v6 = vmul.f32 %v591_v47, %v3153_v24  ;;  %v592_v9 = vmul.f32 %v591_v47, %v3151_v23 }
 0x469   : > { %v3411_v34 = vld [vmem:[#allocation2 + $0x9] sm:$0xff]  ;;  %v3415_v31 = vld [vmem:[#allocation2] sm:$0xff]  ;;  %v3417_v30 = vpop.permute.xlu1 %570  ;;  %v3419_v11 = vpop.permute.xlu0 %568 }
 0x46a   : > { %v3413_v35 = vld [vmem:[#allocation2 + $0xa] sm:$0xff]  ;;  %v3423_v17 = vld [vmem:[#allocation2 + $0x1] sm:$0xff]  ;;  %v575_v40 = vadd.f32 %v3417_v30, %v561_v12  ;;  %v574_v43 = vadd.f32 %v3419_v11, %v560_v13 }
 0x46b   : > { %v3421_v60 = vld [vmem:[#allocation2 + $0x8] sm:$0xff] }
 0x46c   : > { %v3425_v36 = vld [vmem:[#allocation2 + $0x2] sm:$0xff] }
 0x46d   : > { %1746 = vst.msk [vmem:[#allocation2 + $0x1] sm:$0xff] %vm269_vm2, %v1741_v15  ;;  %1747 = vst.msk [vmem:[#allocation2 + $0x9] sm:$0xff] %vm269_vm2, %v1743_v14  ;;  %v3435_v53 = vpop.permute.xlu1 %584  ;;  %v3437_v56 = vpop.permute.xlu0 %582  ;;  %v638_v14 = vadd.f32 %v636_v3, %v633_v8  ;;  %v703_v3 = vstv %s3488_s26  ;;  %s2433_s26 = sld [smem:[#allocation3 + $0x55]] }
 0x46e   : > { %v589_v59 = vadd.f32 %v3435_v53, %v575_v40  ;;  %v588_v19 = vadd.f32 %v3437_v56, %v574_v43  ;;  %v705_v38 = vmul.f32 %v703_v3, %v3153_v24  ;;  %v704_v12 = vmul.f32 %v703_v3, %v3151_v23 }
 0x46f   : > { %v1923_v40 = vstv %s3519_s11  ;;  %v739_v43 = vstv %s3523_s12  ;;  %s2437_s11 = sld [smem:[#allocation3 + $0x59]]  ;;  %s2441_s12 = sld [smem:[#allocation3 + $0x76]] }
 0x471   : > { %v3446_v45 = vpop.permute.xlu1 %604  ;;  %v3448_v27 = vpop.permute.xlu0 %602 }
 0x474   : > { %v3452_v48 = vld [vmem:[#allocation2 + $0x8] sm:$0xff]  ;;  %v3454_v28 = vld [vmem:[#allocation2] sm:$0xff] }
 0x475   : > { %v1765_v49 = vmul.f32 %v1763_v44, %v3452_v48  ;;  %v1764_v52 = vmul.f32 %v1763_v44, %v3454_v28  ;;  %v3465_v0 = vpop.permute.xlu1 %618  ;;  %v3467_v1 = vpop.permute.xlu0 %616  ;;  %v1877_v4 = vmul.f32 %v1875_v62, %v3452_v48  ;;  %v1876_v5 = vmul.f32 %v1875_v62, %v3454_v28  ;;  %v3505_v61 = vld [vmem:[#allocation2 + $0x9] sm:$0xff]  ;;  %v3507_v11 = vld [vmem:[#allocation2 + $0x1] sm:$0xff] }
 0x476   : > { %v1779_v15 = vmul.f32 %v1777_v10, %v3452_v48  ;;  %v1778_v16 = vmul.f32 %v1777_v10, %v3454_v28  ;;  %v1799_v53 = vmul.f32 %v1797_v54, %v3505_v61  ;;  %v1798_v56 = vmul.f32 %v1797_v54, %v3507_v11 }
 0x477   : > { %1770 = vrot.lane.b32.xlu1 %v1765_v49, %s2809_s9  ;;  %1768 = vrot.lane.b32.xlu0 %v1764_v52, %s2809_s9  ;;  %v1891_v49 = vmul.f32 %v1889_v29, %v3452_v48  ;;  %v1890_v52 = vmul.f32 %v1889_v29, %v3454_v28  ;;  %v1911_v13 = vmul.f32 %v1909_v2, %v3505_v61 }
 0x478   : > { %v1925_v54 = vmul.f32 %v1923_v40, %v3505_v61 }
 0x479   : > { %v649_v18 = vpop.permute.xlu1 %648  ;;  %v647_v21 = vpop.permute.xlu0 %646 }
 0x47a   : > { %v653_v20 = vadd.f32 %v649_v18, %v639_v7  ;;  %v652_v26 = vadd.f32 %v647_v21, %v638_v14  ;;  %v1910_v7 = vmul.f32 %v1909_v2, %v3507_v11  ;;  %v1811_v14 = vstv %s3501_s6  ;;  %s2434_s6 = sld [smem:[#allocation3 + $0x56]] }
 0x47b   : > { %1882 = vrot.lane.b32.xlu1 %v1877_v4, %s2809_s9  ;;  %1880 = vrot.lane.b32.xlu0 %v1876_v5, %s2809_s9  ;;  %v595_v4 = vadd.f32 %v593_v6, %v589_v59  ;;  %v594_v5 = vadd.f32 %v592_v9, %v588_v19  ;;  %v1924_v59 = vmul.f32 %v1923_v40, %v3507_v11 }
 0x47d   : > { %v663_v32 = vpop.permute.xlu1 %662  ;;  %v661_v33 = vpop.permute.xlu0 %660 }
 0x47e   : > { %v667_v44 = vadd.f32 %v663_v32, %v653_v20  ;;  %v666_v46 = vadd.f32 %v661_v33, %v652_v26  ;;  %v627_v33 = vstv %s3513_s8  ;;  %s2436_s8 = sld [smem:[#allocation3 + $0x58]] }
 0x47f   : > { %1784 = vrot.lane.b32.xlu1 %v1779_v15, %s2810_s10  ;;  %1782 = vrot.lane.b32.xlu0 %v1778_v16, %s2810_s10  ;;  %v609_v15 = vadd.f32 %v3446_v45, %v595_v4  ;;  %v608_v16 = vadd.f32 %v3448_v27, %v594_v5  ;;  %v1812_v45 = vmul.f32 %v1811_v14, %v3507_v11  ;;  %v1943_v5 = vstv %s3542_s25  ;;  %s2444_s25 = sld [smem:[#allocation3 + $0x79]] }
 0x480   : > { %v673_v22 = vadd.f32 %v671_v37, %v667_v44  ;;  %v672_v30 = vadd.f32 %v670_v39, %v666_v46  ;;  %v1813_v37 = vmul.f32 %v1811_v14, %v3505_v61 }
 0x481   : > { %v683_v62 = vpop.permute.xlu1 %682  ;;  %v681_v63 = vpop.permute.xlu0 %680  ;;  %v623_v29 = vadd.f32 %v3465_v0, %v609_v15  ;;  %v622_v32 = vadd.f32 %v3467_v1, %v608_v16  ;;  %v1831_v0 = vstv %s3525_s13  ;;  %v1021_v16 = vstv %s2430_s28  ;;  %s2442_s13 = sld [smem:[#allocation3 + $0x77]]  ;;  %s2448_s28 = sld [smem:[#allocation3 + $0x7d]] }
 0x482   : > { %v687_v8 = vadd.f32 %v683_v62, %v673_v22  ;;  %v686_v41 = vadd.f32 %v681_v63, %v672_v30  ;;  %v3550_v30 = vld [vmem:[#allocation2 + $0xa] sm:$0xff]  ;;  %v3552_v62 = vld [vmem:[#allocation2 + $0x2] sm:$0xff] }
 0x483   : > { %1896 = vrot.lane.b32.xlu1 %v1891_v49, %s2810_s10  ;;  %1894 = vrot.lane.b32.xlu0 %v1890_v52, %s2810_s10  ;;  %v629_v47 = vmul.f32 %v627_v33, %v623_v29  ;;  %v628_v1 = vmul.f32 %v627_v33, %v622_v32  ;;  %vm626_vm15 = vcmp.ge.f32.partialorder %v623_v29, 0.0  ;;  %vm625_vm0 = vcmp.ge.f32.partialorder %v622_v32, 0.0 }
 0x484   : > { %v1833_v3 = vmul.f32 %v1831_v0, %v3550_v30  ;;  %v1832_v4 = vmul.f32 %v1831_v0, %v3552_v62  ;;  %v1089_v40 = vstv %s2436_s8  ;;  %s2503_s8 = sld [smem:[#allocation3 + $0x1b]] }
 0x485   : > { %v697_v42 = vpop.permute.xlu1 %696  ;;  %v695_v10 = vpop.permute.xlu0 %694  ;;  %v631_v63 = vsel %vm626_vm15, %v623_v29, %v629_v47  ;;  %v630_v6 = vsel %vm625_vm0, %v622_v32, %v628_v1  ;;  %v1055_v32 = vstv %s2433_s26  ;;  %v1133_v1 = vstv %s2441_s12  ;;  %s2479_s26 = sld [smem:[#allocation3 + $0x5c]]  ;;  %s2514_s12 = sld [smem:[#allocation3 + $0x3f]] }
 0x486   : > { %v701_v18 = vadd.f32 %v697_v42, %v687_v8  ;;  %v700_v21 = vadd.f32 %v695_v10, %v686_v41  ;;  %v2640_v8 = vld [vmem:[%s3015_s20 + $0x8] sm:$0xff]  ;;  %v2641_v42 = vld [vmem:[%s3015_s20] sm:$0xff]  ;;  %v1057_v33 = vmul.f32 %v1055_v32, %v3256_v55 }
 0x487   : > { %1804 = vrot.lane.b32.xlu1 %v1799_v53, %s2809_s9  ;;  %1802 = vrot.lane.b32.xlu0 %v1798_v56, %s2809_s9 }
 0x488   : > { %v707_v20 = vadd.f32 %v705_v38, %v701_v18  ;;  %v706_v26 = vadd.f32 %v704_v12, %v700_v21  ;;  %v1945_v18 = vmul.f32 %v1943_v5, %v3550_v30  ;;  %v1944_v21 = vmul.f32 %v1943_v5, %v3552_v62 }
 0x489   : > { %v717_v24 = vpop.permute.xlu1 %716  ;;  %v715_v23 = vpop.permute.xlu0 %714  ;;  %v1845_v38 = vstv %s2511_s14  ;;  %s2445_s14 = sld [smem:[#allocation3 + $0x7a]]  ;;  %v1215_v5 = vstv %s2448_s28  ;;  %s3654_s28 = sld [smem:[#allocation3 + $0x45]] }
 0x48a   : > { %v721_v27 = vadd.f32 %v717_v24, %v707_v20  ;;  %v720_v39 = vadd.f32 %v715_v23, %v706_v26  ;;  %v1847_v12 = vmul.f32 %v1845_v38, %v3550_v30  ;;  %v1023_v20 = vmul.f32 %v1021_v16, %v3260_v58 }
 0x48b   : > { %1916 = vrot.lane.b32.xlu1 %v1911_v13, %s2809_s9  ;;  %1914 = vrot.lane.b32.xlu0 %v1910_v7, %s2809_s9  ;;  %v1846_v13 = vmul.f32 %v1845_v38, %v3552_v62  ;;  %v1957_v7 = vstv %s2522_s27  ;;  %v1022_v26 = vmul.f32 %v1021_v16, %v3252_v50  ;;  %v1035_v24 = vstv %s2431_s29  ;;  %s2447_s27 = sld [smem:[#allocation3 + $0x7c]]  ;;  %s2478_s29 = sld [smem:[#allocation3 + $0x5b]] }
 0x48c   : > { %v1959_v14 = vmul.f32 %v1957_v7, %v3550_v30  ;;  %v1958_v15 = vmul.f32 %v1957_v7, %v3552_v62  ;;  %v1037_v23 = vmul.f32 %v1035_v24, %v3260_v58  ;;  %v1036_v29 = vmul.f32 %v1035_v24, %v3252_v50 }
 0x48d   : > { %v731_v44 = vpop.permute.xlu1 %730  ;;  %v729_v46 = vpop.permute.xlu0 %728 }
 0x48e   : > { %v735_v49 = vadd.f32 %v731_v44, %v721_v27  ;;  %v734_v52 = vadd.f32 %v729_v46, %v720_v39  ;;  %v1090_v44 = vmul.f32 %v1089_v40, %v3262_v25  ;;  %v1103_v46 = vstv %s2437_s11  ;;  %s2502_s11 = sld [smem:[#allocation8 + $0x3]] }
 0x48f   : > { %1818 = vrot.lane.b32.xlu1 %v1813_v37, %s2810_s10  ;;  %1816 = vrot.lane.b32.xlu0 %v1812_v45, %s2810_s10  ;;  %v1056_v37 = vmul.f32 %v1055_v32, %v3254_v51  ;;  %v1069_v45 = vstv %s2434_s6  ;;  %v1105_v0 = vmul.f32 %v1103_v46, %v3258_v57  ;;  %v1104_v47 = vmul.f32 %v1103_v46, %v3262_v25  ;;  %s2481_s6 = sld [smem:[#allocation3 + $0x5e]] }
 0x490   : > { %vm738_vm1 = vcmp.ge.f32.partialorder %v735_v49, 0.0  ;;  %v741_v19 = vmul.f32 %v739_v43, %v735_v49  ;;  %vm737_vm3 = vcmp.ge.f32.partialorder %v734_v52, 0.0  ;;  %v740_v22 = vmul.f32 %v739_v43, %v734_v52 }
 0x491   : > { %v1071_v27 = vmul.f32 %v1069_v45, %v3256_v55  ;;  %v1070_v39 = vmul.f32 %v1069_v45, %v3254_v51  ;;  %v1091_v43 = vmul.f32 %v1089_v40, %v3258_v57 }
 0x492   : > { %v743_v9 = vsel %vm738_vm1, %v735_v49, %v741_v19  ;;  %v742_v53 = vsel %vm737_vm3, %v734_v52, %v740_v22  ;;  %v1135_v49 = vmul.f32 %v1133_v1, %v3260_v58  ;;  %v1134_v52 = vmul.f32 %v1133_v1, %v3252_v50 }
 0x493   : > { %1930 = vrot.lane.b32.xlu1 %v1925_v54, %s2810_s10  ;;  %1928 = vrot.lane.b32.xlu0 %v1924_v59, %s2810_s10  ;;  %v745_v56 = vadd.f32 %v743_v9, %v631_v63  ;;  %v744_v2 = vadd.f32 %v742_v53, %v630_v6  ;;  %v1147_v54 = vstv %s2442_s13  ;;  %v1167_v22 = vstv %s2444_s25  ;;  %s2513_s13 = sld [smem:[#allocation8 + $0x7]]  ;;  %s2506_s25 = sld [smem:[#allocation3 + $0x1e]] }
 0x494   : > { %v1149_v59 = vmul.f32 %v1147_v54, %v3260_v58  ;;  %v1148_v19 = vmul.f32 %v1147_v54, %v3252_v50  ;;  %v1169_v63 = vmul.f32 %v1167_v22, %v3256_v55  ;;  %v1168_v6 = vmul.f32 %v1167_v22, %v3254_v51 }
 0x495   : > { %v747_v41 = vadd.f32 %v2640_v8, %v745_v56  ;;  %v746_v10 = vadd.f32 %v2641_v42, %v744_v2  ;;  %v1181_v9 = vstv %s2445_s14  ;;  %v1201_v2 = vstv %s2447_s27  ;;  %s3645_s14 = sld [smem:[#allocation3 + $0x42]]  ;;  %s3649_s27 = sld [smem:[#allocation3 + $0x21]] }
 0x496   : > { %v1183_v53 = vmul.f32 %v1181_v9, %v3256_v55  ;;  %v1182_v56 = vmul.f32 %v1181_v9, %v3254_v51  ;;  %v1217_v8 = vmul.f32 %v1215_v5, %v3258_v57  ;;  %v1513_v42 = vstv %s2478_s29  ;;  %s3659_s29 = sld [smem:[#allocation9 + $0x3]] }
 0x497   : > { %1838 = vrot.lane.b32.xlu1 %v1833_v3, %s2809_s9  ;;  %1836 = vrot.lane.b32.xlu0 %v1832_v4, %s2809_s9  ;;  %750 = vst.msk [vmem:[%s3565_s21 + $0x8] sm:$0xff] %vm748_vm4, %v747_v41  ;;  %749 = vst.msk [vmem:[%s3565_s21] sm:$0xff] %vm748_vm4, %v746_v10  ;;  %v1203_v3 = vmul.f32 %v1201_v2, %v3258_v57  ;;  %v1202_v4 = vmul.f32 %v1201_v2, %v3262_v25 }
 0x498   : > { %v1216_v41 = vmul.f32 %v1215_v5, %v3262_v25  ;;  %v1515_v10 = vmul.f32 %v1513_v42, %v3421_v60  ;;  %v1755_v40 = vstv %s2502_s11  ;;  %s3674_s11 = sld [smem:[#allocation3 + $0x80]] }
 0x49b   : > { %1950 = vrot.lane.b32.xlu1 %v1945_v18, %s2809_s9  ;;  %1948 = vrot.lane.b32.xlu0 %v1944_v21, %s2809_s9  ;;  %v1514_v18 = vmul.f32 %v1513_v42, %v3415_v31  ;;  %v1527_v21 = vstv %s2479_s26  ;;  %s3664_s26 = sld [smem:[#allocation9 + $0x7]] }
 0x49c   : > { %v1529_v38 = vmul.f32 %v1527_v21, %v3421_v60 }
 0x49f   : > { %1852 = vrot.lane.b32.xlu1 %v1847_v12, %s2810_s10  ;;  %1850 = vrot.lane.b32.xlu0 %v1846_v13, %s2810_s10  ;;  %v1528_v12 = vmul.f32 %v1527_v21, %v3415_v31  ;;  %v1547_v13 = vstv %s2481_s6  ;;  %s3669_s6 = sld [smem:[#allocation3 + $0x5f]] }
 0x4a0   : > { %v1549_v7 = vmul.f32 %v1547_v13, %v3411_v34 }
 0x4a3   : > { %1964 = vrot.lane.b32.xlu1 %v1959_v14, %s2810_s10  ;;  %1962 = vrot.lane.b32.xlu0 %v1958_v15, %s2810_s10  ;;  %v1548_v14 = vmul.f32 %v1547_v13, %v3423_v17 }
 0x4a7   : > { %1028 = vrot.lane.b32.xlu1 %v1023_v20, %s2809_s9  ;;  %1026 = vrot.lane.b32.xlu0 %v1022_v26, %s2809_s9 }
 0x4ab   : > { %1042 = vrot.lane.b32.xlu1 %v1037_v23, %s2810_s10  ;;  %1040 = vrot.lane.b32.xlu0 %v1036_v29, %s2810_s10 }
 0x4af   : > { %1062 = vrot.lane.b32.xlu1 %v1057_v33, %s2809_s9  ;;  %1060 = vrot.lane.b32.xlu0 %v1056_v37, %s2809_s9  ;;  %v1757_v33 = vstv %s2503_s8  ;;  %s3671_s8 = sld [smem:[#allocation3 + $0x7f]] }
 0x4b3   : > { %1076 = vrot.lane.b32.xlu1 %v1071_v27, %s2810_s10  ;;  %1074 = vrot.lane.b32.xlu0 %v1070_v39, %s2810_s10  ;;  %v1759_v27 = vmul.f32 %v1757_v33, %v3452_v48  ;;  %v1758_v39 = vmul.f32 %v1757_v33, %v3454_v28 }
 0x4b7   : > { %1096 = vrot.lane.b32.xlu1 %v1091_v43, %s2809_s9  ;;  %1094 = vrot.lane.b32.xlu0 %v1090_v44, %s2809_s9  ;;  %v1869_v43 = vstv %s2514_s12  ;;  %s2429_s12 = sld [smem:[#allocation3 + $0x51]] }
 0x4b8   : > { %v1871_v1 = vmul.f32 %v1869_v43, %v3452_v48 }
 0x4bb   : > { %1110 = vrot.lane.b32.xlu1 %v1105_v0, %s2810_s10  ;;  %1108 = vrot.lane.b32.xlu0 %v1104_v47, %s2810_s10  ;;  %v1761_v0 = vadd.f32 %v1759_v27, %v1755_v40  ;;  %v1760_v47 = vadd.f32 %v1758_v39, %v1755_v40 }
 0x4bf   : > { %1140 = vrot.lane.b32.xlu1 %v1135_v49, %s2809_s9  ;;  %1138 = vrot.lane.b32.xlu0 %v1134_v52, %s2809_s9  ;;  %v1870_v49 = vmul.f32 %v1869_v43, %v3454_v28  ;;  %v1867_v52 = vstv %s2513_s13  ;;  %s3678_s13 = sld [smem:[#allocation3 + $0x82]] }
 0x4c1   : > { %v1872_v9 = vadd.f32 %v1870_v49, %v1867_v52 }
 0x4c3   : > { %1154 = vrot.lane.b32.xlu1 %v1149_v59, %s2810_s10  ;;  %1152 = vrot.lane.b32.xlu0 %v1148_v19, %s2810_s10  ;;  %v1791_v19 = vstv %s2506_s25  ;;  %s3682_s25 = sld [smem:[#allocation8 + $0x9]] }
 0x4c4   : > { %v1793_v48 = vmul.f32 %v1791_v19, %v3505_v61  ;;  %v1792_v28 = vmul.f32 %v1791_v19, %v3507_v11  ;;  %v1861_v19 = vstv %s3659_s29  ;;  %s3715_s29 = sld [smem:[#allocation3 + $0x61]] }
 0x4c7   : > { %1174 = vrot.lane.b32.xlu1 %v1169_v63, %s2809_s9  ;;  %1172 = vrot.lane.b32.xlu0 %v1168_v6, %s2809_s9  ;;  %v1873_v6 = vadd.f32 %v1871_v1, %v1867_v52 }
 0x4cb   : > { %1188 = vrot.lane.b32.xlu1 %v1183_v53, %s2810_s10  ;;  %1186 = vrot.lane.b32.xlu0 %v1182_v56, %s2810_s10 }
 0x4cf   : > { %1208 = vrot.lane.b32.xlu1 %v1203_v3, %s2809_s9  ;;  %1206 = vrot.lane.b32.xlu0 %v1202_v4, %s2809_s9  ;;  %v1903_v4 = vstv %s3645_s14  ;;  %s3698_s14 = sld [smem:[#allocation3 + $0x83]] }
 0x4d0   : > { %v1904_v13 = vmul.f32 %v1903_v4, %v3507_v11 }
 0x4d3   : > { %1222 = vrot.lane.b32.xlu1 %v1217_v8, %s2810_s10  ;;  %1220 = vrot.lane.b32.xlu0 %v1216_v41, %s2810_s10 }
 0x4d7   : > { %1520 = vrot.lane.b32.xlu1 %v1515_v10, %s2809_s9  ;;  %1518 = vrot.lane.b32.xlu0 %v1514_v18, %s2809_s9 }
 0x4db   : > { %1534 = vrot.lane.b32.xlu1 %v1529_v38, %s2810_s10  ;;  %1532 = vrot.lane.b32.xlu0 %v1528_v12, %s2810_s10  ;;  %v1905_v12 = vmul.f32 %v1903_v4, %v3505_v61 }
 0x4df   : > { %1554 = vrot.lane.b32.xlu1 %v1549_v7, %s2809_s9  ;;  %1552 = vrot.lane.b32.xlu0 %v1548_v14, %s2809_s9  ;;  %v1825_v7 = vstv %s3649_s27  ;;  %s3700_s27 = sld [smem:[#allocation3 + $0x54]] }
 0x4e0   : > { %v1826_v33 = vmul.f32 %v1825_v7, %v3552_v62 }
 0x4e9   : > { %v1771_v15 = vpop.permute.xlu1 %1770  ;;  %v1769_v16 = vpop.permute.xlu0 %1768 }
 0x4ea   : > { %v1775_v54 = vadd.f32 %v1771_v15, %v1761_v0  ;;  %v1774_v59 = vadd.f32 %v1769_v16, %v1760_v47 }
 0x4ed   : > { %v1883_v20 = vpop.permute.xlu1 %1882  ;;  %v1881_v26 = vpop.permute.xlu0 %1880 }
 0x4ee   : > { %v1887_v2 = vadd.f32 %v1883_v20, %v1873_v6  ;;  %v1886_v3 = vadd.f32 %v1881_v26, %v1872_v9  ;;  %v1973_v6 = vstv %s3664_s26  ;;  %s3723_s26 = sld [smem:[#allocation3 + $0x78]] }
 0x4f1   : > { %v1785_v24 = vpop.permute.xlu1 %1784  ;;  %v1783_v23 = vpop.permute.xlu0 %1782 }
 0x4f2   : > { %v1789_v53 = vadd.f32 %v1785_v24, %v1775_v54  ;;  %v1788_v56 = vadd.f32 %v1783_v23, %v1774_v59 }
 0x4f4   : > { %v1795_v10 = vadd.f32 %v1793_v48, %v1789_v53  ;;  %v1794_v18 = vadd.f32 %v1792_v28, %v1788_v56 }
 0x4f5   : > { %v1897_v29 = vpop.permute.xlu1 %1896  ;;  %v1895_v32 = vpop.permute.xlu0 %1894 }
 0x4f6   : > { %v1901_v41 = vadd.f32 %v1897_v29, %v1887_v2  ;;  %v1900_v42 = vadd.f32 %v1895_v32, %v1886_v3  ;;  %v1827_v32 = vmul.f32 %v1825_v7, %v3550_v30 }
 0x4f8   : > { %v1907_v16 = vadd.f32 %v1905_v12, %v1901_v41  ;;  %v1906_v20 = vadd.f32 %v1904_v13, %v1900_v42 }
 0x4f9   : > { %v1805_v37 = vpop.permute.xlu1 %1804  ;;  %v1803_v45 = vpop.permute.xlu0 %1802 }
 0x4fa   : > { %v1809_v21 = vadd.f32 %v1805_v37, %v1795_v10  ;;  %v1808_v38 = vadd.f32 %v1803_v45, %v1794_v18  ;;  %v1937_v37 = vstv %s3654_s28  ;;  %s3713_s28 = sld [smem:[#allocation8 + $0xd]] }
 0x4fd   : > { %v1917_v44 = vpop.permute.xlu1 %1916  ;;  %v1915_v46 = vpop.permute.xlu0 %1914 }
 0x4fe   : > { %v1921_v23 = vadd.f32 %v1917_v44, %v1907_v16  ;;  %v1920_v29 = vadd.f32 %v1915_v46, %v1906_v20  ;;  %v1939_v44 = vmul.f32 %v1937_v37, %v3550_v30  ;;  %v1938_v46 = vmul.f32 %v1937_v37, %v3552_v62 }
 0x501   : > { %v1819_v22 = vpop.permute.xlu1 %1818  ;;  %v1817_v63 = vpop.permute.xlu0 %1816 }
 0x502   : > { %v1823_v26 = vadd.f32 %v1819_v22, %v1809_v21  ;;  %v1822_v24 = vadd.f32 %v1817_v63, %v1808_v38  ;;  %v1561_v21 = vstv %s3669_s6  ;;  %v1625_v38 = vstv %s3671_s8  ;;  %s3729_s6 = sld [smem:[#allocation3 + $0x85]]  ;;  %s3740_s8 = sld [smem:[#allocation3 + $0x57]] }
 0x503   : > { %v1562_v7 = vmul.f32 %v1561_v21, %v3423_v17 }
 0x504   : > { %v1829_v39 = vadd.f32 %v1827_v32, %v1823_v26  ;;  %v1828_v40 = vadd.f32 %v1826_v33, %v1822_v24  ;;  %v1015_v26 = vstv %s2429_s12  ;;  %v1627_v24 = vmul.f32 %v1625_v38, %v3421_v60  ;;  %s3755_s12 = sld [smem:[#allocation3 + $0x7b]] }
 0x505   : > { %v1931_v5 = vpop.permute.xlu1 %1930  ;;  %v1929_v8 = vpop.permute.xlu0 %1928  ;;  %v1017_v37 = vmul.f32 %v1015_v26, %v3260_v58 }
 0x506   : > { %v1935_v11 = vadd.f32 %v1931_v5, %v1921_v23  ;;  %v1934_v27 = vadd.f32 %v1929_v8, %v1920_v29  ;;  %v1659_v29 = vstv %s3678_s13  ;;  %s3757_s13 = sld [smem:[#allocation3 + $0x86]] }
 0x508   : > { %v1941_v49 = vadd.f32 %v1939_v44, %v1935_v11  ;;  %v1940_v52 = vadd.f32 %v1938_v46, %v1934_v27  ;;  %v1660_v27 = vmul.f32 %v1659_v29, %v3423_v17  ;;  %v1661_v44 = vmul.f32 %v1659_v29, %v3411_v34 }
 0x509   : > { %v1839_v14 = vpop.permute.xlu1 %1838  ;;  %v1837_v15 = vpop.permute.xlu0 %1836  ;;  %v1563_v46 = vmul.f32 %v1561_v21, %v3411_v34  ;;  %v1693_v21 = vstv %s3729_s6  ;;  %s3812_s6 = sld [smem:[#allocation8 + $0xe]] }
 0x50a   : > { %v1843_v43 = vadd.f32 %v1839_v14, %v1829_v39  ;;  %v1842_v0 = vadd.f32 %v1837_v15, %v1828_v40  ;;  %v1626_v14 = vmul.f32 %v1625_v38, %v3415_v31  ;;  %v1639_v15 = vstv %s3674_s11  ;;  %s3745_s11 = sld [smem:[#allocation3 + $0x62]] }
 0x50b   : > { %v1640_v23 = vmul.f32 %v1639_v15, %v3415_v31  ;;  %v1641_v11 = vmul.f32 %v1639_v15, %v3421_v60  ;;  %v1694_v29 = vmul.f32 %v1693_v21, %v3425_v36 }
 0x50d   : > { %v1951_v45 = vpop.permute.xlu1 %1950  ;;  %v1949_v61 = vpop.permute.xlu0 %1948 }
 0x50e   : > { %v1955_v22 = vadd.f32 %v1951_v45, %v1941_v49  ;;  %v1954_v63 = vadd.f32 %v1949_v61, %v1940_v52  ;;  %v1016_v45 = vmul.f32 %v1015_v26, %v3252_v50  ;;  %v1013_v61 = vstv %s3682_s25  ;;  %s3776_s25 = sld [smem:[#allocation9 + $0x9]] }
 0x50f   : > { %v1673_v52 = vstv %s3698_s14  ;;  %s2477_s14 = sld [smem:[#allocation3 + $0x5a]] }
 0x511   : > { %v1853_v47 = vpop.permute.xlu1 %1852  ;;  %v1851_v1 = vpop.permute.xlu0 %1850 }
 0x512   : > { %v1857_v54 = vadd.f32 %v1853_v47, %v1843_v43  ;;  %v1856_v59 = vadd.f32 %v1851_v1, %v1842_v0  ;;  %v1019_v43 = vadd.f32 %v1017_v37, %v1013_v61  ;;  %v1018_v0 = vadd.f32 %v1016_v45, %v1013_v61 }
 0x513   : > { %v1695_v37 = vmul.f32 %v1693_v21, %v3413_v35  ;;  %v1595_v45 = vstv %s3745_s11  ;;  %s3819_s11 = sld [smem:[#allocation3 + $0x65]] }
 0x514   : > { %v1863_v56 = vmul.f32 %v1861_v19, %v1857_v54  ;;  %v1862_v30 = vmul.f32 %v1861_v19, %v1856_v59  ;;  %vm1860_vm5 = vcmp.ge.f32.partialorder %v1857_v54, 0.0  ;;  %vm1859_vm6 = vcmp.ge.f32.partialorder %v1856_v59, 0.0 }
 0x515   : > { %v1965_v9 = vpop.permute.xlu1 %1964  ;;  %v1963_v53 = vpop.permute.xlu0 %1962 }
 0x516   : > { %v1969_v2 = vadd.f32 %v1965_v9, %v1955_v22  ;;  %v1968_v62 = vadd.f32 %v1963_v53, %v1954_v63  ;;  %v1865_v5 = vsel %vm1860_vm5, %v1857_v54, %v1863_v56  ;;  %v1864_v8 = vsel %vm1859_vm6, %v1856_v59, %v1862_v30 }
 0x517   : > { %v1049_v54 = vstv %s3700_s27  ;;  %v1125_v53 = vstv %s3713_s28  ;;  %v1674_v56 = vmul.f32 %v1673_v52, %v3423_v17  ;;  %v1675_v30 = vmul.f32 %v1673_v52, %v3411_v34  ;;  %s2526_s27 = sld [smem:[#allocation3 + $0x64]]  ;;  %s2476_s28 = sld [smem:[#allocation8 + $0xa]] }
 0x518   : > { %vm1972_vm7 = vcmp.ge.f32.partialorder %v1969_v2, 0.0  ;;  %v1975_v3 = vmul.f32 %v1973_v6, %v1969_v2  ;;  %vm1971_vm8 = vcmp.ge.f32.partialorder %v1968_v62, 0.0  ;;  %v1974_v48 = vmul.f32 %v1973_v6, %v1968_v62 }
 0x519   : > { %v1029_v28 = vpop.permute.xlu1 %1028  ;;  %v1027_v4 = vpop.permute.xlu0 %1026 }
 0x51a   : > { %v1977_v41 = vsel %vm1972_vm7, %v1969_v2, %v1975_v3  ;;  %v1976_v42 = vsel %vm1971_vm8, %v1968_v62, %v1974_v48  ;;  %v1033_v1 = vadd.f32 %v1029_v28, %v1019_v43  ;;  %v1032_v49 = vadd.f32 %v1027_v4, %v1018_v0 }
 0x51b   : > { %v1979_v10 = vadd.f32 %v1977_v41, %v1865_v5  ;;  %v1978_v18 = vadd.f32 %v1976_v42, %v1864_v8  ;;  %v1051_v2 = vmul.f32 %v1049_v54, %v3256_v55  ;;  %v1050_v62 = vmul.f32 %v1049_v54, %v3254_v51 }
 0x51c   : > { %v1581_v3 = vstv %s3715_s29  ;;  %v1596_v0 = vmul.f32 %v1595_v45, %v3425_v36  ;;  %s2488_s29 = sld [smem:[#allocation3 + $0x7e]] }
 0x51d   : > { %v1043_v12 = vpop.permute.xlu1 %1042  ;;  %1984 = vrot.lane.b32.xlu0 %v1979_v10, %s2807_s24  ;;  %1982 = vrot.lane.b32.xlu1 %v1978_v18, %s2807_s24  ;;  %v1041_v13 = vpop.permute.xlu0 %1040  ;;  %s3695_s24 = sld [smem:[#allocation3 + $0x75]]  ;;  %v1582_v41 = vmul.f32 %v1581_v3, %v3425_v36  ;;  %v1583_v42 = vmul.f32 %v1581_v3, %v3413_v35 }
 0x51e   : > { %v1047_v22 = vadd.f32 %v1043_v12, %v1033_v1  ;;  %v1046_v63 = vadd.f32 %v1041_v13, %v1032_v49 }
 0x520   : > { %v1053_v28 = vadd.f32 %v1051_v2, %v1047_v22  ;;  %v1052_v4 = vadd.f32 %v1050_v62, %v1046_v63 }
 0x521   : > { %v3687_v16 = vpop.permute.xlu1 %1062  ;;  %1566 = vrot.lane.b32.xlu0 %v1562_v7, %s2810_s10  ;;  %1630 = vrot.lane.b32.xlu1 %v1626_v14, %s2809_s9  ;;  %v3691_v20 = vpop.permute.xlu0 %1060 }
 0x522   : > { %v1067_v14 = vadd.f32 %v3687_v16, %v1053_v28  ;;  %v1066_v15 = vadd.f32 %v3691_v20, %v1052_v4 }
 0x523   : > { %v1127_v47 = vstv %s3695_s24  ;;  %s3784_s24 = sld [smem:[#allocation9 + $0xd]] }
 0x524   : > { %v1129_v6 = vmul.f32 %v1127_v47, %v3260_v58  ;;  %v1128_v9 = vmul.f32 %v1127_v47, %v3252_v50  ;;  %v1161_v58 = vstv %s3723_s26  ;;  %s3810_s26 = sld [smem:[#allocation3 + $0x88]] }
 0x525   : > { %v3702_v32 = vpop.permute.xlu1 %1076  ;;  %1632 = vrot.lane.b32.xlu0 %v1627_v24, %s2809_s9  ;;  %1644 = vrot.lane.b32.xlu1 %v1640_v23, %s2810_s10  ;;  %v3706_v33 = vpop.permute.xlu0 %1074  ;;  %v1163_v13 = vmul.f32 %v1161_v58, %v3256_v55  ;;  %v1162_v7 = vmul.f32 %v1161_v58, %v3254_v51  ;;  %v1083_v23 = vstv %s3740_s8  ;;  %v1119_v58 = vstv %s3776_s25  ;;  %s3816_s8 = sld [smem:[#allocation3 + $0x5d]]  ;;  %s3842_s25 = sld [smem:[#allocation3 + $0x67]] }
 0x526   : > { %v1131_v5 = vadd.f32 %v1129_v6, %v1125_v53  ;;  %v1130_v8 = vadd.f32 %v1128_v9, %v1125_v53  ;;  %v1081_v61 = vadd.f32 %v3702_v32, %v1067_v14  ;;  %v1080_v55 = vadd.f32 %v3706_v33, %v1066_v15  ;;  %v2642_v14 = vld [vmem:[%s3015_s20 + $0x18] sm:$0xff] }
 0x527   : > { %v1085_v20 = vmul.f32 %v1083_v23, %v3258_v57  ;;  %v1084_v43 = vmul.f32 %v1083_v23, %v3262_v25  ;;  %v1597_v32 = vmul.f32 %v1595_v45, %v3413_v35  ;;  %v1707_v33 = vstv %s3757_s13  ;;  %s3831_s13 = sld [smem:[#allocation3 + $0x89]] }
 0x528   : > { %v1708_v53 = vmul.f32 %v1707_v33, %v3425_v36 }
 0x529   : > { %v3717_v39 = vpop.permute.xlu1 %1096  ;;  %1646 = vrot.lane.b32.xlu0 %v1641_v11, %s2810_s10  ;;  %1664 = vrot.lane.b32.xlu1 %v1660_v27, %s2809_s9  ;;  %v3721_v40 = vpop.permute.xlu0 %1094  ;;  %v1086_v47 = vadd.f32 %v1084_v43, %v1080_v55 }
 0x52b   : > { %v1100_v2 = vadd.f32 %v3721_v40, %v1086_v47 }
 0x52d   : > { %v3732_v59 = vpop.permute.xlu1 %1110  ;;  %1666 = vrot.lane.b32.xlu0 %v1661_v44, %s2809_s9  ;;  %1568 = vrot.lane.b32.xlu1 %v1563_v46, %s2810_s10  ;;  %v3736_v19 = vpop.permute.xlu0 %1108  ;;  %v1195_v44 = vstv %s3755_s12  ;;  %v1087_v46 = vadd.f32 %v1085_v20, %v1081_v61  ;;  %s3828_s12 = sld [smem:[#allocation3 + $0x81]] }
 0x52e   : > { %v1197_v6 = vmul.f32 %v1195_v44, %v3258_v57  ;;  %v1196_v9 = vmul.f32 %v1195_v44, %v3262_v25  ;;  %v1114_v25 = vadd.f32 %v3736_v19, %v1100_v2 }
 0x530   : > { %v1120_v40 = vmul.f32 %v1119_v58, %v1114_v25  ;;  %vm1117_vm10 = vcmp.ge.f32.partialorder %v1114_v25, 0.0 }
 0x531   : > { %v1141_v48 = vpop.permute.xlu1 %1140  ;;  %1678 = vrot.lane.b32.xlu0 %v1674_v56, %s2810_s10  ;;  %1680 = vrot.lane.b32.xlu1 %v1675_v30, %s2810_s10  ;;  %v1139_v50 = vpop.permute.xlu0 %1138  ;;  %v1709_v56 = vmul.f32 %v1707_v33, %v3413_v35  ;;  %v1101_v30 = vadd.f32 %v3717_v39, %v1087_v46  ;;  %v1619_v33 = vstv %s2488_s29  ;;  %s3877_s29 = sld [smem:[#allocation3 + $0x8c]] }
 0x532   : > { %v1145_v10 = vadd.f32 %v1141_v48, %v1131_v5  ;;  %v1144_v18 = vadd.f32 %v1139_v50, %v1130_v8  ;;  %v1231_v5 = vstv %s3784_s24  ;;  %v1122_v21 = vsel %vm1117_vm10, %v1114_v25, %v1120_v40  ;;  %s3846_s24 = sld [smem:[#allocation3 + $0x60]] }
 0x533   : > { %v1115_v57 = vadd.f32 %v3732_v59, %v1101_v30  ;;  %v1617_v30 = vstv %s3812_s6  ;;  %s3891_s6 = sld [smem:[#allocation9 + $0xe]] }
 0x535   : > { %v1155_v38 = vpop.permute.xlu1 %1154  ;;  %1586 = vrot.lane.b32.xlu0 %v1582_v41, %s2809_s9  ;;  %1588 = vrot.lane.b32.xlu1 %v1583_v42, %s2809_s9  ;;  %v1153_v12 = vpop.permute.xlu0 %1152  ;;  %v1121_v41 = vmul.f32 %v1119_v58, %v1115_v57  ;;  %vm1118_vm9 = vcmp.ge.f32.partialorder %v1115_v57, 0.0  ;;  %v2019_v58 = vstv %s3819_s11  ;;  %s3904_s11 = sld [smem:[#allocation3 + $0x8e]] }
 0x536   : > { %v1159_v26 = vadd.f32 %v1155_v38, %v1145_v10  ;;  %v1158_v24 = vadd.f32 %v1153_v12, %v1144_v18 }
 0x537   : > { %v1123_v18 = vsel %vm1118_vm9, %v1115_v57, %v1121_v41 }
 0x538   : > { %v1165_v11 = vadd.f32 %v1163_v13, %v1159_v26  ;;  %v1164_v51 = vadd.f32 %v1162_v7, %v1158_v24  ;;  %v2643_v26 = vld [vmem:[%s3015_s20 + $0x10] sm:$0xff] }
 0x539   : > { %v1175_v27 = vpop.permute.xlu1 %1174  ;;  %1698 = vrot.lane.b32.xlu0 %v1694_v29, %s2809_s9  ;;  %1700 = vrot.lane.b32.xlu1 %v1695_v37, %s2809_s9  ;;  %v1173_v16 = vpop.permute.xlu0 %1172 }
 0x53a   : > { %v1179_v1 = vadd.f32 %v1175_v27, %v1165_v11  ;;  %v1178_v49 = vadd.f32 %v1173_v16, %v1164_v51  ;;  %v1507_v27 = vstv %s2477_s14  ;;  %s3852_s14 = sld [smem:[#allocation3 + $0x8b]] }
 0x53b   : > { %v1508_v43 = vmul.f32 %v1507_v27, %v3415_v31  ;;  %v1509_v44 = vmul.f32 %v1507_v27, %v3421_v60 }
 0x53d   : > { %v1189_v52 = vpop.permute.xlu1 %1188  ;;  %1600 = vrot.lane.b32.xlu0 %v1596_v0, %s2810_s10  ;;  %1602 = vrot.lane.b32.xlu1 %v1597_v32, %s2810_s10  ;;  %v1187_v54 = vpop.permute.xlu0 %1186  ;;  %v2005_v0 = vstv %s2526_s27  ;;  %v1505_v32 = vstv %s2476_s28  ;;  %s3858_s27 = sld [smem:[#allocation3 + $0x84]]  ;;  %s3860_s28 = sld [smem:[#allocation3 + $0x68]] }
 0x53e   : > { %v1193_v22 = vadd.f32 %v1189_v52, %v1179_v1  ;;  %v1192_v63 = vadd.f32 %v1187_v54, %v1178_v49 }
 0x540   : > { %v1199_v62 = vadd.f32 %v1197_v6, %v1193_v22  ;;  %v1198_v3 = vadd.f32 %v1196_v9, %v1192_v63  ;;  %v1510_v22 = vadd.f32 %v1508_v43, %v1505_v32  ;;  %v2117_v63 = vstv %s3810_s26  ;;  %s3883_s26 = sld [smem:[#allocation9 + $0xa]] }
 0x541   : > { %v1209_v48 = vpop.permute.xlu1 %1208  ;;  %1712 = vrot.lane.b32.xlu0 %v1708_v53, %s2810_s10  ;;  %1714 = vrot.lane.b32.xlu1 %v1709_v56, %s2810_s10  ;;  %v1207_v50 = vpop.permute.xlu0 %1206  ;;  %v1511_v6 = vadd.f32 %v1509_v44, %v1505_v32  ;;  %v1620_v9 = vmul.f32 %v1619_v33, %v3415_v31  ;;  %v1621_v53 = vmul.f32 %v1619_v33, %v3421_v60  ;;  %v2151_v32 = vstv %s3852_s14  ;;  %s2528_s14 = sld [smem:[#allocation3 + $0x66]] }
 0x542   : > { %v1213_v28 = vadd.f32 %v1209_v48, %v1199_v62  ;;  %v1212_v4 = vadd.f32 %v1207_v50, %v1198_v3  ;;  %v1541_v48 = vstv %s3816_s8  ;;  %s3893_s8 = sld [smem:[#allocation3 + $0x6a]] }
 0x543   : > { %v1622_v60 = vadd.f32 %v1620_v9, %v1617_v30 }
 0x545   : > { %v1223_v8 = vpop.permute.xlu1 %1222  ;;  %v1221_v39 = vpop.permute.xlu0 %1220 }
 0x546   : > { %v1227_v42 = vadd.f32 %v1223_v8, %v1213_v28  ;;  %v1226_v10 = vadd.f32 %v1221_v39, %v1212_v4  ;;  %v1623_v28 = vadd.f32 %v1621_v53, %v1617_v30  ;;  %v1543_v4 = vmul.f32 %v1541_v48, %v3411_v34 }
 0x548   : > { %vm1230_vm11 = vcmp.ge.f32.partialorder %v1227_v42, 0.0  ;;  %v1233_v59 = vmul.f32 %v1231_v5, %v1227_v42  ;;  %vm1229_vm12 = vcmp.ge.f32.partialorder %v1226_v10, 0.0  ;;  %v1232_v19 = vmul.f32 %v1231_v5, %v1226_v10 }
 0x549   : > { %v1521_v23 = vpop.permute.xlu1 %1520  ;;  %v1519_v29 = vpop.permute.xlu0 %1518  ;;  %v1542_v5 = vmul.f32 %v1541_v48, %v3423_v17 }
 0x54a   : > { %v1235_v38 = vsel %vm1230_vm11, %v1227_v42, %v1233_v59  ;;  %v1234_v12 = vsel %vm1229_vm12, %v1226_v10, %v1232_v19  ;;  %v1524_v56 = vadd.f32 %v1519_v29, %v1510_v22  ;;  %v1525_v3 = vadd.f32 %v1521_v23, %v1511_v6 }
 0x54b   : > { %v1237_v13 = vadd.f32 %v1235_v38, %v1123_v18  ;;  %v1236_v7 = vadd.f32 %v1234_v12, %v1122_v21  ;;  %v1653_v19 = vstv %s3828_s12  ;;  %v2131_v18 = vstv %s3831_s13  ;;  %s3916_s12 = sld [smem:[#allocation3 + $0x6b]]  ;;  %s2544_s13 = sld [smem:[#allocation3 + $0x8f]] }
 0x54c   : > { %v2053_v6 = vstv %s3860_s28  ;;  %s2539_s28 = sld [smem:[#allocation3 + $0x8a]] }
 0x54d   : > { %v1239_v15 = vadd.f32 %v2642_v14, %v1237_v13  ;;  %v1238_v24 = vadd.f32 %v2643_v26, %v1236_v7  ;;  %v1535_v37 = vpop.permute.xlu1 %1534  ;;  %v1533_v45 = vpop.permute.xlu0 %1532  ;;  %v1654_v14 = vmul.f32 %v1653_v19, %v3423_v17 }
 0x54e   : > { %v1538_v25 = vadd.f32 %v1533_v45, %v1524_v56  ;;  %v1539_v31 = vadd.f32 %v1535_v37, %v1525_v3  ;;  %v2039_v37 = vstv %s3842_s25  ;;  %s2525_s25 = sld [smem:[#allocation3 + $0x63]] }
 0x54f   : > { %2451 = vst.msk [vmem:[%s3565_s21 + $0x18] sm:$0xff] %vm748_vm4, %v1239_v15  ;;  %2450 = vst.msk [vmem:[%s3565_s21 + $0x10] sm:$0xff] %vm748_vm4, %v1238_v24  ;;  %v1655_v15 = vmul.f32 %v1653_v19, %v3411_v34  ;;  %v1575_v34 = vstv %s3846_s24  ;;  %s2524_s24 = sld [smem:[#allocation8 + $0xb]] }
 0x550   : > { %v1544_v59 = vadd.f32 %v1542_v5, %v1538_v25  ;;  %v1545_v21 = vadd.f32 %v1543_v4, %v1539_v31  ;;  %v1576_v44 = vmul.f32 %v1575_v34, %v3425_v36  ;;  %v2165_v31 = vstv %s3877_s29  ;;  %s2542_s29 = sld [smem:[#allocation3 + $0x8d]] }
 0x551   : > { %v3804_v61 = vpop.permute.xlu1 %1554  ;;  %v3806_v55 = vpop.permute.xlu0 %1552  ;;  %v1611_v5 = vstv %s3883_s26  ;;  %s2534_s26 = sld [smem:[#allocation9 + $0xb]] }
 0x552   : > { %v1558_v23 = vadd.f32 %v3806_v55, %v1544_v59  ;;  %v2073_v59 = vstv %s3893_s8  ;;  %s2554_s8 = sshll.u32 %s2860_s19, 10  ;;  %s2228_s19 = scalar_lea.sflag [#allocation5], %s3009_s23 }
 0x58f   : > { %v1983_v11 = vpop.permute.xlu1 %1982  ;;  %v1985_v51 = vpop.permute.xlu0 %1984 }
 0x590   : > { %1988 = vst.msk [vmem:[#allocation2 + $0x1] sm:$0xff] %vm269_vm2, %v1983_v11  ;;  %1989 = vst.msk [vmem:[#allocation2 + $0x9] sm:$0xff] %vm269_vm2, %v1985_v51  ;;  %v1559_v11 = vadd.f32 %v3804_v61, %v1545_v21 }
 0x593   : > { %v1631_v16 = vpop.permute.xlu1 %1630  ;;  %v3814_v20 = vpop.permute.xlu0 %1566 }
 0x594   : > { %v1636_v41 = vadd.f32 %v1631_v16, %v1622_v60  ;;  %v1572_v17 = vadd.f32 %v3814_v20, %v1558_v23  ;;  %v1687_v20 = vstv %s3858_s27  ;;  %s2535_s27 = sld [smem:[#allocation8 + $0xf]] }
 0x595   : > { %v1688_v48 = vmul.f32 %v1687_v20, %v3425_v36 }
 0x597   : > { %v1645_v46 = vpop.permute.xlu1 %1644  ;;  %v1633_v47 = vpop.permute.xlu0 %1632  ;;  %v3822_v1 = vld [vmem:[#allocation2] sm:$0xff]  ;;  %v3824_v49 = vld [vmem:[#allocation2 + $0x8] sm:$0xff] }
 0x598   : > { %v2006_v52 = vmul.f32 %v2005_v0, %v3822_v1  ;;  %v2007_v54 = vmul.f32 %v2005_v0, %v3824_v49  ;;  %v2118_v50 = vmul.f32 %v2117_v63, %v3822_v1  ;;  %v2119_v57 = vmul.f32 %v2117_v63, %v3824_v49  ;;  %v3867_v29 = vld [vmem:[#allocation2 + $0x1] sm:$0xff]  ;;  %v3870_v45 = vld [vmem:[#allocation2 + $0x9] sm:$0xff] }
 0x599   : > { %v1637_v40 = vadd.f32 %v1633_v47, %v1623_v28  ;;  %v2020_v42 = vmul.f32 %v2019_v58, %v3822_v1  ;;  %v2021_v10 = vmul.f32 %v2019_v58, %v3824_v49  ;;  %v1650_v38 = vadd.f32 %v1645_v46, %v1636_v41 }
 0x59a   : > { %2010 = vrot.lane.b32.xlu1 %v2006_v52, %s2809_s9  ;;  %2012 = vrot.lane.b32.xlu0 %v2007_v54, %s2809_s9  ;;  %v2132_v26 = vmul.f32 %v2131_v18, %v3822_v1  ;;  %v2133_v24 = vmul.f32 %v2131_v18, %v3824_v49  ;;  %v2040_v0 = vmul.f32 %v2039_v37, %v3867_v29 }
 0x59b   : > { %v1665_v2 = vpop.permute.xlu1 %1664  ;;  %v1647_v62 = vpop.permute.xlu0 %1646  ;;  %v1656_v51 = vadd.f32 %v1654_v14, %v1650_v38  ;;  %v2041_v61 = vmul.f32 %v2039_v37, %v3870_v45  ;;  %v1577_v47 = vmul.f32 %v1575_v34, %v3413_v35  ;;  %v1578_v52 = vadd.f32 %v1576_v44, %v1572_v17  ;;  %v2644_v17 = vld [vmem:[%s3015_s20 + $0x28] sm:$0xff] }
 0x59c   : > { %v1651_v12 = vadd.f32 %v1647_v62, %v1637_v40  ;;  %v2152_v63 = vmul.f32 %v2151_v32, %v3867_v29  ;;  %v2153_v30 = vmul.f32 %v2151_v32, %v3870_v45  ;;  %v2055_v25 = vmul.f32 %v2053_v6, %v3870_v45 }
 0x59d   : > { %v1670_v33 = vadd.f32 %v1665_v2, %v1656_v51  ;;  %v1689_v2 = vmul.f32 %v1687_v20, %v3413_v35  ;;  %v2054_v58 = vmul.f32 %v2053_v6, %v3867_v29  ;;  %v2185_v34 = vstv %s3904_s11  ;;  %s2241_s11 = sshll.u32 %s3565_s21, 4  ;;  %s3963_s11 = int_to_ptr.vmem [resolvable:$true] %s2241_s11 }
 0x59e   : > { %2122 = vrot.lane.b32.xlu1 %v2118_v50, %s2809_s9  ;;  %2124 = vrot.lane.b32.xlu0 %v2119_v57, %s2809_s9  ;;  %v1657_v27 = vadd.f32 %v1655_v15, %v1651_v12  ;;  %v3912_v12 = vld [vmem:[#allocation2 + $0xa] sm:$0xff]  ;;  %v2087_v32 = vstv %s3916_s12 }
 0x59f   : > { %v1569_v8 = vpop.permute.xlu1 %1568  ;;  %v1667_v39 = vpop.permute.xlu0 %1666  ;;  %v2075_v15 = vmul.f32 %v2073_v59, %v3912_v12  ;;  %v2089_v44 = vmul.f32 %v2087_v32, %v3912_v12 }
 0x5a0   : > { %v1573_v43 = vadd.f32 %v1569_v8, %v1559_v11  ;;  %v1671_v46 = vadd.f32 %v1667_v39, %v1657_v27  ;;  %v1723_v39 = vstv %s3891_s6  ;;  %s2545_s6 = sld [smem:[#allocation9 + $0xf]] }
 0x5a2   : > { %2024 = vrot.lane.b32.xlu1 %v2020_v42, %s2810_s10  ;;  %2026 = vrot.lane.b32.xlu0 %v2021_v10, %s2810_s10  ;;  %v1579_v56 = vadd.f32 %v1577_v47, %v1573_v43  ;;  %v2167_v42 = vmul.f32 %v2165_v31, %v3870_v45  ;;  %v2166_v10 = vmul.f32 %v2165_v31, %v3867_v29 }
 0x5a3   : > { %v1681_v13 = vpop.permute.xlu1 %1680  ;;  %v1679_v7 = vpop.permute.xlu0 %1678 }
 0x5a4   : > { %v1685_v9 = vadd.f32 %v1681_v13, %v1671_v46  ;;  %v1684_v53 = vadd.f32 %v1679_v7, %v1670_v33  ;;  %v3914_v13 = vld [vmem:[#allocation2 + $0x2] sm:$0xff]  ;;  %v2199_v46 = vstv %s2544_s13 }
 0x5a5   : > { %v2088_v33 = vmul.f32 %v2087_v32, %v3914_v13  ;;  %v2201_v47 = vmul.f32 %v2199_v46, %v3912_v12  ;;  %v2200_v20 = vmul.f32 %v2199_v46, %v3914_v13 }
 0x5a6   : > { %2136 = vrot.lane.b32.xlu1 %v2132_v26, %s2810_s10  ;;  %2138 = vrot.lane.b32.xlu0 %v2133_v24, %s2810_s10  ;;  %v1691_v60 = vadd.f32 %v1689_v2, %v1685_v9  ;;  %v1690_v28 = vadd.f32 %v1688_v48, %v1684_v53  ;;  %v2074_v26 = vmul.f32 %v2073_v59, %v3914_v13  ;;  %v1997_v9 = vstv %s2524_s24  ;;  %s2721_s24 = scalar_lea.vmem %s3963_s11, 1024 }
 0x5a7   : > { %v1589_v16 = vpop.permute.xlu1 %1588  ;;  %v1587_v55 = vpop.permute.xlu0 %1586  ;;  %v2033_v2 = vstv %s2528_s14  ;;  %p2722_p3 = scmp.ne.s32.totalorder %s3963_s11, %s2721_s24 }
 0x5a8   : > { %v1593_v62 = vadd.f32 %v1589_v16, %v1579_v56  ;;  %v1592_v3 = vadd.f32 %v1587_v55, %v1578_v52  ;;  %v2645_v55 = vld [vmem:[%s3015_s20 + $0x20] sm:$0xff]  ;;  %v1999_v52 = vstv %s2525_s25  ;;  %s3961_s25 = scalar_lea.hbm %s4017_s4, %s2554_s8 }
 0x5a9   : > { %v2001_v6 = vmul.f32 %v1999_v52, %v3824_v49  ;;  %p2723_p10 = pnand %p2722_p3, %p4035_p5 }
 0x5aa   : > { %2044 = vrot.lane.b32.xlu1 %v2040_v0, %s2809_s9  ;;  %2046 = vrot.lane.b32.xlu0 %v2041_v61, %s2809_s9  ;;  %v2187_v0 = vmul.f32 %v2185_v34, %v3912_v12  ;;  %v2186_v61 = vmul.f32 %v2185_v34, %v3914_v13 }
 0x5ab   : > { %v1701_v54 = vpop.permute.xlu1 %1700  ;;  %v1699_v22 = vpop.permute.xlu0 %1698  ;;  %p2724_p1 = pneg %p2723_p10 }
 0x5ac   : > { %v1705_v36 = vadd.f32 %v1701_v54, %v1691_v60  ;;  %v1704_v8 = vadd.f32 %v1699_v22, %v1690_v28  ;;  %v2034_v28 = vmul.f32 %v2033_v2, %v3867_v29 }
 0x5ae   : > { %2156 = vrot.lane.b32.xlu1 %v2152_v63, %s2809_s9  ;;  %2158 = vrot.lane.b32.xlu0 %v2153_v30, %s2809_s9  ;;  %v2000_v63 = vmul.f32 %v1999_v52, %v3822_v1 }
 0x5af   : > { %v1603_v50 = vpop.permute.xlu1 %1602  ;;  %v1601_v57 = vpop.permute.xlu0 %1600 }
 0x5b0   : > { %v1607_v35 = vadd.f32 %v1603_v50, %v1593_v62  ;;  %v1606_v4 = vadd.f32 %v1601_v57, %v1592_v3  ;;  %v2002_v62 = vadd.f32 %v2000_v63, %v1997_v9  ;;  %v2003_v3 = vadd.f32 %v2001_v6, %v1997_v9 }
 0x5b1   : > { %v2109_v57 = vstv %s2535_s27 }
 0x5b2   : > { %2060 = vrot.lane.b32.xlu1 %v2055_v25, %s2810_s10  ;;  %2058 = vrot.lane.b32.xlu0 %v2054_v58, %s2810_s10  ;;  %v1613_v19 = vmul.f32 %v1611_v5, %v1607_v35  ;;  %v1612_v18 = vmul.f32 %v1611_v5, %v1606_v4  ;;  %vm1610_vm2 = vcmp.ge.f32.partialorder %v1607_v35, 0.0  ;;  %vm1609_vm13 = vcmp.ge.f32.partialorder %v1606_v4, 0.0 }
 0x5b3   : > { %v1715_v41 = vpop.permute.xlu1 %1714  ;;  %v1713_v40 = vpop.permute.xlu0 %1712 }
 0x5b4   : > { %v1719_v21 = vadd.f32 %v1715_v41, %v1705_v36  ;;  %v1718_v38 = vadd.f32 %v1713_v40, %v1704_v8  ;;  %v1615_v24 = vsel %vm1610_vm2, %v1607_v35, %v1613_v19  ;;  %v1614_v23 = vsel %vm1609_vm13, %v1606_v4, %v1612_v18 }
 0x5b5   : > { %v2035_v35 = vmul.f32 %v2033_v2, %v3870_v45 }
 0x5b6   : > { %vm1722_vm14 = vcmp.ge.f32.partialorder %v1719_v21, 0.0  ;;  %v1725_v7 = vmul.f32 %v1723_v39, %v1719_v21  ;;  %vm1721_vm15 = vcmp.ge.f32.partialorder %v1718_v38, 0.0  ;;  %v1724_v14 = vmul.f32 %v1723_v39, %v1718_v38  ;;  %2172 = vrot.lane.b32.xlu1 %v2167_v42, %s2810_s10  ;;  %2170 = vrot.lane.b32.xlu0 %v2166_v10, %s2810_s10 }
 0x5b7   : > { %v2145_v39 = vstv %s2539_s28 }
 0x5b8   : > { %v1727_v37 = vsel %vm1722_vm14, %v1719_v21, %v1725_v7  ;;  %v1726_v11 = vsel %vm1721_vm15, %v1718_v38, %v1724_v14  ;;  %v2146_v18 = vmul.f32 %v2145_v39, %v3867_v29  ;;  %v2147_v21 = vmul.f32 %v2145_v39, %v3870_v45 }
 0x5b9   : > { %v1729_v51 = vadd.f32 %v1727_v37, %v1615_v24  ;;  %v1728_v27 = vadd.f32 %v1726_v11, %v1614_v23  ;;  %v2179_v45 = vstv %s2542_s29 }
 0x5ba   : > { %2080 = vrot.lane.b32.xlu1 %v2075_v15, %s2809_s9  ;;  %2078 = vrot.lane.b32.xlu0 %v2074_v26, %s2809_s9 }
 0x5bb   : > { %v1731_v16 = vadd.f32 %v2644_v17, %v1729_v51  ;;  %v1730_v43 = vadd.f32 %v2645_v55, %v1728_v27 }
 0x5bd   : > { %2499 = vst.msk [vmem:[%s3565_s21 + $0x28] sm:$0xff] %vm748_vm4, %v1731_v16  ;;  %2498 = vst.msk [vmem:[%s3565_s21 + $0x20] sm:$0xff] %vm748_vm4, %v1730_v43 }
 0x5be   : > { %2192 = vrot.lane.b32.xlu1 %v2187_v0, %s2809_s9  ;;  %2190 = vrot.lane.b32.xlu0 %v2186_v61, %s2809_s9  ;;  %s2536_s9 = sld [smem:[#allocation3 + $0x87]] }
 0x5c2   : > { %2094 = vrot.lane.b32.xlu1 %v2089_v44, %s2810_s10  ;;  %2092 = vrot.lane.b32.xlu0 %v2088_v33, %s2810_s10 }
 0x5c4   : > { %v2111_v53 = vstv %s2536_s9  ;;  %s2811_s9 = smov [#allocation12]  }
 0x5c5   : > { %v2112_v48 = vmul.f32 %v2111_v53, %v3822_v1  ;;  %v2113_v50 = vmul.f32 %v2111_v53, %v3824_v49  ;;  %s2725_s14 = sshll.u32 %s2811_s9, 4  ;;  %s2726_s14 = int_to_ptr.vmem [resolvable:$false] %s2725_s14 }
 0x5c6   : > { %2206 = vrot.lane.b32.xlu1 %v2201_v47, %s2810_s10  ;;  %2204 = vrot.lane.b32.xlu0 %v2200_v20, %s2810_s10  ;;  %s2531_s10 = sld [smem:[#allocation3 + $0x69]]  ;;  %v2181_v47 = vmul.f32 %v2179_v45, %v3912_v12  ;;  %v2180_v20 = vmul.f32 %v2179_v45, %v3914_v13  ;;  %s2727_s27 = scalar_lea.vmem %s2726_s14, 2048 }
 0x5c7   : > { %v2114_v4 = vadd.f32 %v2112_v48, %v2109_v57  ;;  %v2115_v5 = vadd.f32 %v2113_v50, %v2109_v57  ;;  %v2103_v48 = vstv %s2534_s26  ;;  %p2728_p6 = scmp.lt.s32.totalorder %s3963_s11, %s2726_s14  ;;  %p2729_p9 = scmp.lt.s32.totalorder %s2727_s27, %s2721_s24 }
 0x5c9   : > { %p2730_p13 = por %p2729_p9, %p2728_p6 }
 0x5cb   : > { %p2731_p12 = pnand %p2730_p13, %p2724_p1 }
 0x5cc   : > { %v2067_v23 = vstv %s2531_s10 }
 0x5cd   : > { %v2069_v16 = vmul.f32 %v2067_v23, %v3912_v12  ;;  %v2068_v29 = vmul.f32 %v2067_v23, %v3914_v13  ;;  %v2215_v13 = vstv %s2545_s6 }
 0x60c   : > { %v2011_v54 = vpop.permute.xlu1 %2010  ;;  %v2013_v22 = vpop.permute.xlu0 %2012 }
 0x60d   : > { %v2016_v25 = vadd.f32 %v2011_v54, %v2002_v62  ;;  %v2017_v58 = vadd.f32 %v2013_v22, %v2003_v3 }
 0x610   : > { %v2123_v56 = vpop.permute.xlu1 %2122  ;;  %v2125_v30 = vpop.permute.xlu0 %2124 }
 0x611   : > { %v2128_v41 = vadd.f32 %v2123_v56, %v2114_v4  ;;  %v2129_v40 = vadd.f32 %v2125_v30, %v2115_v5 }
 0x614   : > { %v2025_v31 = vpop.permute.xlu1 %2024  ;;  %v2027_v60 = vpop.permute.xlu0 %2026 }
 0x615   : > { %v2030_v36 = vadd.f32 %v2025_v31, %v2016_v25  ;;  %v2031_v8 = vadd.f32 %v2027_v60, %v2017_v58 }
 0x617   : > { %v2036_v42 = vadd.f32 %v2034_v28, %v2030_v36  ;;  %v2037_v1 = vadd.f32 %v2035_v35, %v2031_v8 }
 0x618   : > { %v2137_v10 = vpop.permute.xlu1 %2136  ;;  %v2139_v49 = vpop.permute.xlu0 %2138 }
 0x619   : > { %v2142_v59 = vadd.f32 %v2137_v10, %v2128_v41  ;;  %v2143_v19 = vadd.f32 %v2139_v49, %v2129_v40  ;;  %v2647_v10 = vld [vmem:[%s3015_s20 + $0x30] sm:$0xff] }
 0x61b   : > { %v2148_v38 = vadd.f32 %v2146_v18, %v2142_v59  ;;  %v2149_v7 = vadd.f32 %v2147_v21, %v2143_v19 }
 0x61c   : > { %v2045_v14 = vpop.permute.xlu1 %2044  ;;  %v2047_v15 = vpop.permute.xlu0 %2046 }
 0x61d   : > { %v2050_v37 = vadd.f32 %v2045_v14, %v2036_v42  ;;  %v2051_v11 = vadd.f32 %v2047_v15, %v2037_v1  ;;  %v2646_v42 = vld [vmem:[%s3015_s20 + $0x38] sm:$0xff] }
 0x620   : > { %v2157_v26 = vpop.permute.xlu1 %2156  ;;  %v2159_v24 = vpop.permute.xlu0 %2158 }
 0x621   : > { %v2162_v55 = vadd.f32 %v2157_v26, %v2148_v38  ;;  %v2163_v43 = vadd.f32 %v2159_v24, %v2149_v7 }
 0x624   : > { %v2061_v51 = vpop.permute.xlu1 %2060  ;;  %v2059_v27 = vpop.permute.xlu0 %2058 }
 0x625   : > { %v2065_v34 = vadd.f32 %v2061_v51, %v2051_v11  ;;  %v2064_v17 = vadd.f32 %v2059_v27, %v2050_v37 }
 0x627   : > { %v2071_v0 = vadd.f32 %v2069_v16, %v2065_v34  ;;  %v2070_v61 = vadd.f32 %v2068_v29, %v2064_v17 }
 0x628   : > { %v2173_v32 = vpop.permute.xlu1 %2172  ;;  %v2171_v44 = vpop.permute.xlu0 %2170 }
 0x629   : > { %v2177_v33 = vadd.f32 %v2173_v32, %v2163_v43  ;;  %v2176_v46 = vadd.f32 %v2171_v44, %v2162_v55 }
 0x62b   : > { %v2183_v52 = vadd.f32 %v2181_v47, %v2177_v33  ;;  %v2182_v54 = vadd.f32 %v2180_v20, %v2176_v46 }
 0x62c   : > { %v2081_v22 = vpop.permute.xlu1 %2080  ;;  %v2079_v63 = vpop.permute.xlu0 %2078 }
 0x62d   : > { %v2085_v53 = vadd.f32 %v2081_v22, %v2071_v0  ;;  %v2084_v56 = vadd.f32 %v2079_v63, %v2070_v61 }
 0x630   : > { %v2193_v6 = vpop.permute.xlu1 %2192  ;;  %v2191_v9 = vpop.permute.xlu0 %2190 }
 0x631   : > { %v2197_v50 = vadd.f32 %v2193_v6, %v2183_v52  ;;  %v2196_v12 = vadd.f32 %v2191_v9, %v2182_v54 }
 0x634   : > { %v2095_v30 = vpop.permute.xlu1 %2094  ;;  %v2093_v2 = vpop.permute.xlu0 %2092 }
 0x635   : > { %v2099_v62 = vadd.f32 %v2095_v30, %v2085_v53  ;;  %v2098_v3 = vadd.f32 %v2093_v2, %v2084_v56 }
 0x637   : > { %v2105_v58 = vmul.f32 %v2103_v48, %v2099_v62  ;;  %v2104_v31 = vmul.f32 %v2103_v48, %v2098_v3  ;;  %vm2102_vm0 = vcmp.ge.f32.partialorder %v2099_v62, 0.0  ;;  %vm2101_vm1 = vcmp.ge.f32.partialorder %v2098_v3, 0.0 }
 0x638   : > { %v2207_v57 = vpop.permute.xlu1 %2206  ;;  %v2205_v25 = vpop.permute.xlu0 %2204 }
 0x639   : > { %v2211_v60 = vadd.f32 %v2207_v57, %v2197_v50  ;;  %v2210_v28 = vadd.f32 %v2205_v25, %v2196_v12  ;;  %v2107_v5 = vsel %vm2102_vm0, %v2099_v62, %v2105_v58  ;;  %v2106_v36 = vsel %vm2101_vm1, %v2098_v3, %v2104_v31 }
 0x63b   : > { %vm2214_vm3 = vcmp.ge.f32.partialorder %v2211_v60, 0.0  ;;  %v2217_v35 = vmul.f32 %v2215_v13, %v2211_v60  ;;  %vm2213_vm5 = vcmp.ge.f32.partialorder %v2210_v28, 0.0  ;;  %v2216_v4 = vmul.f32 %v2215_v13, %v2210_v28 }
 0x63d   : > { %v2219_v8 = vsel %vm2214_vm3, %v2211_v60, %v2217_v35  ;;  %v2218_v39 = vsel %vm2213_vm5, %v2210_v28, %v2216_v4 }
 0x63e   : > { %v2221_v41 = vadd.f32 %v2219_v8, %v2107_v5  ;;  %v2220_v40 = vadd.f32 %v2218_v39, %v2106_v36 }
 0x640   : > { %v2223_v1 = vadd.f32 %v2646_v42, %v2221_v41  ;;  %v2222_v49 = vadd.f32 %v2647_v10, %v2220_v40 }
 0x642   : > { %2547 = vst.msk [vmem:[%s3565_s21 + $0x38] sm:$0xff] %vm748_vm4, %v2223_v1  ;;  %2546 = vst.msk [vmem:[%s3565_s21 + $0x30] sm:$0xff] %vm748_vm4, %v2222_v49 }
 0x643   : > { %2734 = shalt.err (!%p2731_p12)
}
 0x644   : > { %s2735_s20 = scalar_lea.hbm %s3961_s25, 1024  ;;  %s2739_s10 = scalar_lea.hbm %s4017_s4, 2048 }
 0x645   : > { %p2736_p2 = scmp.ne.s32.totalorder %s3961_s25, %s2735_s20  ;;  %p2740_p0 = scmp.lt.u32.totalorder %s3961_s25, %s4017_s4 }
 0x646   : > { %p2741_p11 = scmp.lt.u32.totalorder %s2739_s10, %s2735_s20  ;;  %p2743_p3 = scmp.lt.u32.totalorder %s2735_s20, %s3961_s25 }
 0x647   : > { %p2737_p4 = pnand %p2736_p2, %p4035_p5 }
 0x648   : > { %p2742_p8 = por %p2741_p11, %p2740_p0 }
 0x649   : > { %p2738_p7 = pneg %p2737_p4 }
 0x64a   : > { %p2744_p10 = por %p2743_p3, %p2742_p8 }
 0x64c   : > { %p2745_p1 = pnand %p2744_p10, %p2738_p7 }
 0x64e   : > { %2748 = shalt.err (!%p2745_p1)
}
 0x64f   : > { %s2812_s6 = smov 128   ;;  %s2813_s8 = smov 8  }
 0x650   : > { %2569 = dma.vmem_to_hbm [thread:$0]  (%p4035_p5), %s3963_s11, 1024, %s3961_s25, %s2228_s19, %s2812_s6, %s2812_s6, %s2813_s8  }
 0x651 PF: > { %s2256_s12 = sand.u32 1, %s2787_s15   ;;  %p4036_p6 = scmp.ne.s32.totalorder %s4022_s22, 0 }
 0x652   : > { %p4037_p9 = scmp.ge.s32.totalorder %s2799_s18, 2  ;;  %s2257_s13 = scalar_lea.sflag [#allocation5], %s2256_s12 }
 0x654   : > { %p2586_p13 = pnand %p4037_p9, %p4036_p6 }
 0x656   : > { %2782 = dma.done.wait (!%p2586_p13), %s2257_s13, 1024  }
 0x657   : > { %2784 = vsyncadd (!%p2586_p13), %s2257_s13, 4294966272  ;;  %p20_p12 = scmp.ge.s32.totalorder %s2901_s5, 4   ;;  %s4038_s15 = smov %s2791_s16 }
 0x658   : > { %s4039_s16 = smov %s2795_s17  ;;  %s4040_s17 = smov %s2945_s30 }
 0x659   : > { %s4041_s18 = smov %s2901_s5  ;;  %22 = sbr.rel (!%p20_p12) target bundleno = 8 (0x8), region = 101 }
 0x660   :  { %2262 = vsyncpa [#allocation4], 1 }
 0x661   :  { %2264 = vsyncpa [#allocation4 + $0x1], 1 }
 0x662   :  { %2265 = vsyncpa [#allocation5], 1 }
 0x663   :  { %2267 = vsyncpa [#allocation5 + $0x1], 1 }
 0x664   :  { %2268 = vsyncpa [#allocation6], 1 }
 0x665   :  { %2270 = vsyncpa [#allocation6 + $0x1], 1 }
 0x666   :  { %2271 = vsyncpa [#allocation7], 1 }
 0x667   :  { %2273 = vsyncpa [#allocation7 + $0x1], 1 }
 0x668   :  { %2274 = vsyncpa [#allocation10], 1 }

</bundles_post_ra>
